<compile_context>
chip_gen: v7x
topology: tpu7x:2x2x1
jax: 0.10.0
libtpu: 0.0.40
codegen_flags: <defaults>
</compile_context>

<pallas_src>
import jax
import jax.numpy as jnp
from jax.experimental import pallas as pl
from jax.experimental.pallas import tpu as pltpu

IMG_SIZE = 784
H1 = 256
H2 = 64
H2_PAD = 128  # bottleneck padded to a full 128-lane tile (exact, free FLOPs)


def _round_up(x, m):
    return ((x + m - 1) // m) * m


def _device_defaults():
    """Per-generation tile cap and scoped-VMEM request (v7x has only 64 MiB/TC)."""
    kind = ""
    try:
        kind = jax.devices()[0].device_kind.lower()
    except Exception:
        pass
    if "v7" in kind or "7x" in kind:
        return {"max_batch_tile": 2048, "vmem_limit": 48 * 1024 * 1024}
    return {"max_batch_tile": 4096, "vmem_limit": 64 * 1024 * 1024}


def _ae_kernel(x_ref, w1_ref, b1_ref, w2_ref, b2_ref, w3_ref, b3_ref,
               w4_ref, b4_ref, o_ref):
    compute_dtype = w1_ref.dtype  # bf16 (or f32) -- MXU input dtype

    def layer(h, w_ref, b_ref):
        acc = jnp.dot(h, w_ref[...], preferred_element_type=jnp.float32)
        return jnp.maximum(acc + b_ref[...], 0.0)  # bias + ReLU in f32

    # Cast the input tile inside VMEM (avoids a separate HBM cast pass).
    h0 = x_ref[...].astype(compute_dtype)
    h1 = layer(h0, w1_ref, b1_ref).astype(compute_dtype)
    h2 = layer(h1, w2_ref, b2_ref).astype(compute_dtype)
    h3 = layer(h2, w3_ref, b3_ref).astype(compute_dtype)
    h4 = layer(h3, w4_ref, b4_ref)  # final activation kept in f32 for the cast/store

    o_ref[...] = h4.astype(o_ref.dtype)


def prepare_params(params, compute_dtype=jnp.bfloat16):
    """One-time weight prep: cast to compute dtype and zero-pad the 64-wide
    bottleneck to 128 (W2 cols / b2 / W3 rows).  Call once, reuse per forward."""
    w1 = jnp.asarray(params["w1"], jnp.float32).astype(compute_dtype)
    w2 = jnp.pad(jnp.asarray(params["w2"], jnp.float32),
                 ((0, 0), (0, H2_PAD - H2))).astype(compute_dtype)
    w3 = jnp.pad(jnp.asarray(params["w3"], jnp.float32),
                 ((0, H2_PAD - H2), (0, 0))).astype(compute_dtype)
    w4 = jnp.asarray(params["w4"], jnp.float32).astype(compute_dtype)
    b1 = jnp.asarray(params["b1"], jnp.float32).reshape(1, H1)
    b2 = jnp.pad(jnp.asarray(params["b2"], jnp.float32).reshape(1, H2),
                 ((0, 0), (0, H2_PAD - H2)))
    b3 = jnp.asarray(params["b3"], jnp.float32).reshape(1, H1)
    b4 = jnp.asarray(params["b4"], jnp.float32).reshape(1, IMG_SIZE)
    return (w1, b1, w2, b2, w3, b3, w4, b4)


def autoencoder_forward(x, prepared_params, *, batch_tile=2048, out_dtype=None,
                        vmem_limit_bytes=None):
    """x: (B, 784) in any float dtype.  prepared_params: output of prepare_params().

    batch_tile: rows per grid step (multiple of 8).  Large tiles (1024-2048+)
    amortize the ~0.35us per-step pipeline overhead; capped per device.
    out_dtype: defaults to the compute dtype (bf16) to halve output HBM traffic.
    """
    B, F = x.shape
    assert F == IMG_SIZE

    w1, b1, w2, b2, w3, b3, w4, b4 = prepared_params
    compute_dtype = w1.dtype
    if out_dtype is None:
        out_dtype = compute_dtype

    defaults = _device_defaults()
    if vmem_limit_bytes is None:
        vmem_limit_bytes = defaults["vmem_limit"]
    batch_tile = min(batch_tile, defaults["max_batch_tile"])
    assert batch_tile % 8 == 0

    # Clamp the tile for small batches; no batch padding -- Pallas handles the
    # ragged last block (partial reads, OOB writes dropped).
    bt = min(batch_tile, _round_up(B, 8))
    # Keep at least 2 grid steps when possible so both v7x TensorCores get work.
    if B >= 16 and pl.cdiv(B, bt) < 2:
        bt = max(8, _round_up(pl.cdiv(B, 2), 8))
    grid = (pl.cdiv(B, bt),)

    consts = (w1, b1, w2, b2, w3, b3, w4, b4)

    def full(arr):
        # Whole-array block, constant block index -> resident in VMEM, DMA'd once.
        nd = arr.ndim
        return pl.BlockSpec(arr.shape, lambda i: (0,) * nd)

    # Advisory cost estimate for XLA scheduling around the custom call.
    flops = 2 * B * (IMG_SIZE * H1 + H1 * H2_PAD + H2_PAD * H1 + H1 * IMG_SIZE)
    bytes_accessed = (
        x.size * x.dtype.itemsize
        + B * IMG_SIZE * jnp.dtype(out_dtype).itemsize
        + sum(a.size * a.dtype.itemsize for a in consts)
    )
    cost = pl.CostEstimate(flops=flops, transcendentals=0,
                           bytes_accessed=bytes_accessed)

    return pl.pallas_call(
        _ae_kernel,
        out_shape=jax.ShapeDtypeStruct((B, IMG_SIZE), out_dtype),
        grid_spec=pltpu.PrefetchScalarGridSpec(
            num_scalar_prefetch=0,
            grid=grid,
            in_specs=[
                pl.BlockSpec((bt, IMG_SIZE), lambda i: (i, 0)),  # x tile
                *[full(a) for a in consts],
            ],
            out_specs=pl.BlockSpec((bt, IMG_SIZE), lambda i: (i, 0)),
        ),
        compiler_params=pltpu.CompilerParams(
            # Batch axis is independent -> megacore-shardable (grid >= 2).
            dimension_semantics=("parallel",),
            vmem_limit_bytes=vmem_limit_bytes,
        ),
        cost_estimate=cost,
    )(x, *consts)


def init_params(key):
    """Deterministic init mirroring the PyTorch module:
    weights ~ N(0, 0.05); biases use nn.Linear's default U(-1/sqrt(fan_in), 1/sqrt(fan_in))."""
    dims = [(IMG_SIZE, H1), (H1, H2), (H2, H1), (H1, IMG_SIZE)]
    params = {}
    for idx, (fan_in, fan_out) in enumerate(dims, start=1):
        key, kw, kb = jax.random.split(key, 3)
        w = 0.05 * jax.random.normal(kw, (fan_in, fan_out), dtype=jnp.float32)
        bound = 1.0 / jnp.sqrt(jnp.float32(fan_in))
        b = jax.random.uniform(kb, (1, fan_out), dtype=jnp.float32,
                               minval=-bound, maxval=bound)
        params[f"w{idx}"] = w
        params[f"b{idx}"] = b
    return params


def _reference_forward(x, params, compute_dtype=jnp.bfloat16, out_dtype=None):
    """Pure-JAX reference using the same mixed precision as the kernel."""
    if out_dtype is None:
        out_dtype = compute_dtype
    h = x.astype(compute_dtype)
    for i in range(1, 5):
        w = params[f"w{i}"].astype(compute_dtype)
        b = params[f"b{i}"].astype(jnp.float32)
        a = jnp.maximum(jnp.dot(h, w, preferred_element_type=jnp.float32) + b, 0.0)
        h = a.astype(compute_dtype) if i < 4 else a
    return h.astype(out_dtype)


if __name__ == "__main__":
    key = jax.random.PRNGKey(0)
    key, kx = jax.random.split(key)

    # Small example: B not a multiple of 8*tile (exercises the ragged-last-block
    # path) while still producing a 2-step grid (v7x megacore path).
    B = 200
    x = jax.random.normal(kx, (B, IMG_SIZE), dtype=jnp.float32)

    params = init_params(key)
    prepared = prepare_params(params)           # one-time cast/pad, reused per call

    out = autoencoder_forward(x, prepared)      # bf16 output by default
    out = jax.block_until_ready(out)

    ref = _reference_forward(x, params)
    assert out.shape == (B, IMG_SIZE)
    assert out.dtype == jnp.bfloat16
    assert jnp.allclose(out.astype(jnp.float32), ref.astype(jnp.float32),
                        atol=1e-2, rtol=1e-2), "mismatch vs. reference"

    print("KERNEL_OK")
</pallas_src>

<mosaic_0001>
module attributes {stable_mosaic.version = 11 : i64} {
  func.func @_ae_kernel(%arg0: i32, %arg1: memref<104x784xf32, #tpu.memory_space<vmem>>, %arg2: memref<784x256xbf16, #tpu.memory_space<vmem>>, %arg3: memref<1x256xf32, #tpu.memory_space<vmem>>, %arg4: memref<256x128xbf16, #tpu.memory_space<vmem>>, %arg5: memref<1x128xf32, #tpu.memory_space<vmem>>, %arg6: memref<128x256xbf16, #tpu.memory_space<vmem>>, %arg7: memref<1x256xf32, #tpu.memory_space<vmem>>, %arg8: memref<256x784xbf16, #tpu.memory_space<vmem>>, %arg9: memref<1x784xf32, #tpu.memory_space<vmem>>, %arg10: memref<104x784xbf16, #tpu.memory_space<vmem>>) attributes {dimension_semantics = [#tpu.dimension_semantics<parallel>], iteration_bounds = array<i64: 2>, scalar_prefetch = 0 : i64, scratch_operands = 0 : i64, tpu.core_type = #tpu.core_type<tc>, window_params = [{transform_indices = @transform_0, window_bounds = array<i64: 104, 784>}, {pipeline_mode = #tpu.pipeline_mode<synchronous>, transform_indices = @transform_1, window_bounds = array<i64: 784, 256>}, {pipeline_mode = #tpu.pipeline_mode<synchronous>, transform_indices = @transform_2, window_bounds = array<i64: 1, 256>}, {pipeline_mode = #tpu.pipeline_mode<synchronous>, transform_indices = @transform_3, window_bounds = array<i64: 256, 128>}, {pipeline_mode = #tpu.pipeline_mode<synchronous>, transform_indices = @transform_4, window_bounds = array<i64: 1, 128>}, {pipeline_mode = #tpu.pipeline_mode<synchronous>, transform_indices = @transform_5, window_bounds = array<i64: 128, 256>}, {pipeline_mode = #tpu.pipeline_mode<synchronous>, transform_indices = @transform_6, window_bounds = array<i64: 1, 256>}, {pipeline_mode = #tpu.pipeline_mode<synchronous>, transform_indices = @transform_7, window_bounds = array<i64: 256, 784>}, {pipeline_mode = #tpu.pipeline_mode<synchronous>, transform_indices = @transform_8, window_bounds = array<i64: 1, 784>}, {transform_indices = @transform_9, window_bounds = array<i64: 104, 784>}]} {
    %c0 = arith.constant 0 : index
    %c0_0 = arith.constant 0 : index
    %0 = vector.load %arg1[%c0, %c0_0] : memref<104x784xf32, #tpu.memory_space<vmem>>, vector<104x784xf32>
    %1 = arith.truncf %0 : vector<104x784xf32> to vector<104x784xbf16>
    %c0_1 = arith.constant 0 : index
    %c0_2 = arith.constant 0 : index
    %2 = vector.load %arg2[%c0_1, %c0_2] : memref<784x256xbf16, #tpu.memory_space<vmem>>, vector<784x256xbf16>
    %cst = arith.constant dense<0.000000e+00> : vector<104x256xf32>
    %3 = tpu.matmul %1, %2, %cst {dimension_numbers = #tpu.dot_dimension_numbers<[1], [0], [0], [1], [0, 0, 1, 1], [], []>} : vector<104x784xbf16>, vector<784x256xbf16>, vector<104x256xf32> -> vector<104x256xf32>
    %c0_3 = arith.constant 0 : index
    %c0_4 = arith.constant 0 : index
    %4 = vector.load %arg3[%c0_3, %c0_4] : memref<1x256xf32, #tpu.memory_space<vmem>>, vector<1x256xf32>
    %5 = vector.broadcast %4 : vector<1x256xf32> to vector<104x256xf32>
    %6 = arith.addf %3, %5 : vector<104x256xf32>
    %cst_5 = arith.constant 0.000000e+00 : f32
    %7 = vector.broadcast %cst_5 : f32 to vector<104x256xf32>
    %8 = arith.maximumf %6, %7 : vector<104x256xf32>
    %9 = arith.truncf %8 : vector<104x256xf32> to vector<104x256xbf16>
    %c0_6 = arith.constant 0 : index
    %c0_7 = arith.constant 0 : index
    %10 = vector.load %arg4[%c0_6, %c0_7] : memref<256x128xbf16, #tpu.memory_space<vmem>>, vector<256x128xbf16>
    %cst_8 = arith.constant dense<0.000000e+00> : vector<104x128xf32>
    %11 = tpu.matmul %9, %10, %cst_8 {dimension_numbers = #tpu.dot_dimension_numbers<[1], [0], [0], [1], [0, 0, 1, 1], [], []>} : vector<104x256xbf16>, vector<256x128xbf16>, vector<104x128xf32> -> vector<104x128xf32>
    %c0_9 = arith.constant 0 : index
    %c0_10 = arith.constant 0 : index
    %12 = vector.load %arg5[%c0_9, %c0_10] : memref<1x128xf32, #tpu.memory_space<vmem>>, vector<1x128xf32>
    %13 = vector.broadcast %12 : vector<1x128xf32> to vector<104x128xf32>
    %14 = arith.addf %11, %13 : vector<104x128xf32>
    %cst_11 = arith.constant 0.000000e+00 : f32
    %15 = vector.broadcast %cst_11 : f32 to vector<104x128xf32>
    %16 = arith.maximumf %14, %15 : vector<104x128xf32>
    %17 = arith.truncf %16 : vector<104x128xf32> to vector<104x128xbf16>
    %c0_12 = arith.constant 0 : index
    %c0_13 = arith.constant 0 : index
    %18 = vector.load %arg6[%c0_12, %c0_13] : memref<128x256xbf16, #tpu.memory_space<vmem>>, vector<128x256xbf16>
    %cst_14 = arith.constant dense<0.000000e+00> : vector<104x256xf32>
    %19 = tpu.matmul %17, %18, %cst_14 {dimension_numbers = #tpu.dot_dimension_numbers<[1], [0], [0], [1], [0, 0, 1, 1], [], []>} : vector<104x128xbf16>, vector<128x256xbf16>, vector<104x256xf32> -> vector<104x256xf32>
    %c0_15 = arith.constant 0 : index
    %c0_16 = arith.constant 0 : index
    %20 = vector.load %arg7[%c0_15, %c0_16] : memref<1x256xf32, #tpu.memory_space<vmem>>, vector<1x256xf32>
    %21 = vector.broadcast %20 : vector<1x256xf32> to vector<104x256xf32>
    %22 = arith.addf %19, %21 : vector<104x256xf32>
    %cst_17 = arith.constant 0.000000e+00 : f32
    %23 = vector.broadcast %cst_17 : f32 to vector<104x256xf32>
    %24 = arith.maximumf %22, %23 : vector<104x256xf32>
    %25 = arith.truncf %24 : vector<104x256xf32> to vector<104x256xbf16>
    %c0_18 = arith.constant 0 : index
    %c0_19 = arith.constant 0 : index
    %26 = vector.load %arg8[%c0_18, %c0_19] : memref<256x784xbf16, #tpu.memory_space<vmem>>, vector<256x784xbf16>
    %cst_20 = arith.constant dense<0.000000e+00> : vector<104x784xf32>
    %27 = tpu.matmul %25, %26, %cst_20 {dimension_numbers = #tpu.dot_dimension_numbers<[1], [0], [0], [1], [0, 0, 1, 1], [], []>} : vector<104x256xbf16>, vector<256x784xbf16>, vector<104x784xf32> -> vector<104x784xf32>
    %c0_21 = arith.constant 0 : index
    %c0_22 = arith.constant 0 : index
    %28 = vector.load %arg9[%c0_21, %c0_22] : memref<1x784xf32, #tpu.memory_space<vmem>>, vector<1x784xf32>
    %29 = vector.broadcast %28 : vector<1x784xf32> to vector<104x784xf32>
    %30 = arith.addf %27, %29 : vector<104x784xf32>
    %cst_23 = arith.constant 0.000000e+00 : f32
    %31 = vector.broadcast %cst_23 : f32 to vector<104x784xf32>
    %32 = arith.maximumf %30, %31 : vector<104x784xf32>
    %33 = arith.truncf %32 : vector<104x784xf32> to vector<104x784xbf16>
    %c0_24 = arith.constant 0 : index
    %c0_25 = arith.constant 0 : index
    %34 = vector.load %arg10[%c0_24, %c0_25] : memref<104x784xbf16, #tpu.memory_space<vmem>>, vector<104x784xbf16>
    tpu.vector_store %arg10[%c0_24, %c0_25], %33 {strides = array<i32>} : memref<104x784xbf16, #tpu.memory_space<vmem>>, vector<104x784xbf16>,
    return
  }
  func.func @transform_0(%arg0: i32) -> (i32, i32) {
    %c0_i32 = arith.constant 0 : i32
    %c0_i32_0 = arith.constant 0 : i32
    return %arg0, %c0_i32 : i32, i32
  }
  func.func @transform_1(%arg0: i32) -> (i32, i32) {
    %c0_i32 = arith.constant 0 : i32
    %c0_i32_0 = arith.constant 0 : i32
    %c0_i32_1 = arith.constant 0 : i32
    return %c0_i32, %c0_i32_0 : i32, i32
  }
  func.func @transform_2(%arg0: i32) -> (i32, i32) {
    %c0_i32 = arith.constant 0 : i32
    %c0_i32_0 = arith.constant 0 : i32
    %c0_i32_1 = arith.constant 0 : i32
    return %c0_i32, %c0_i32_0 : i32, i32
  }
  func.func @transform_3(%arg0: i32) -> (i32, i32) {
    %c0_i32 = arith.constant 0 : i32
    %c0_i32_0 = arith.constant 0 : i32
    %c0_i32_1 = arith.constant 0 : i32
    return %c0_i32, %c0_i32_0 : i32, i32
  }
  func.func @transform_4(%arg0: i32) -> (i32, i32) {
    %c0_i32 = arith.constant 0 : i32
    %c0_i32_0 = arith.constant 0 : i32
    %c0_i32_1 = arith.constant 0 : i32
    return %c0_i32, %c0_i32_0 : i32, i32
  }
  func.func @transform_5(%arg0: i32) -> (i32, i32) {
    %c0_i32 = arith.constant 0 : i32
    %c0_i32_0 = arith.constant 0 : i32
    %c0_i32_1 = arith.constant 0 : i32
    return %c0_i32, %c0_i32_0 : i32, i32
  }
  func.func @transform_6(%arg0: i32) -> (i32, i32) {
    %c0_i32 = arith.constant 0 : i32
    %c0_i32_0 = arith.constant 0 : i32
    %c0_i32_1 = arith.constant 0 : i32
    return %c0_i32, %c0_i32_0 : i32, i32
  }
  func.func @transform_7(%arg0: i32) -> (i32, i32) {
    %c0_i32 = arith.constant 0 : i32
    %c0_i32_0 = arith.constant 0 : i32
    %c0_i32_1 = arith.constant 0 : i32
    return %c0_i32, %c0_i32_0 : i32, i32
  }
  func.func @transform_8(%arg0: i32) -> (i32, i32) {
    %c0_i32 = arith.constant 0 : i32
    %c0_i32_0 = arith.constant 0 : i32
    %c0_i32_1 = arith.constant 0 : i32
    return %c0_i32, %c0_i32_0 : i32, i32
  }
  func.func @transform_9(%arg0: i32) -> (i32, i32) {
    %c0_i32 = arith.constant 0 : i32
    %c0_i32_0 = arith.constant 0 : i32
    return %arg0, %c0_i32 : i32, i32
  }
}

</mosaic_0001>

<bundles_post_ra>
// kernel: tpu_custom_call.1
= control target key start
LH: loop header
LB: loop body
LE: loop exit
PB: predicated region body
PF: predicated region fallthrough
CT: control target
= control target key end

     0   :  { %s6309_s0 = inlined_call_operand.hbm [shape: f32[200,784], index: 0, kind: input, shape index: {}]   ;;  %s6310_s1 = inlined_call_operand.hbm [shape: bf16[784,256], index: 1, kind: input, shape index: {}]   ;;  %s6311_s2 = inlined_call_operand.hbm [shape: f32[1,256], index: 2, kind: input, shape index: {}]   ;;  %s6312_s3 = inlined_call_operand.hbm [shape: bf16[256,128], index: 3, kind: input, shape index: {}]   ;;  %s6313_s4 = inlined_call_operand.hbm [shape: f32[1,128], index: 4, kind: input, shape index: {}]   ;;  %s6314_s5 = inlined_call_operand.hbm [shape: bf16[128,256], index: 5, kind: input, shape index: {}]   ;;  %s6315_s6 = inlined_call_operand.hbm [shape: f32[1,256], index: 6, kind: input, shape index: {}]   ;;  %s6316_s7 = inlined_call_operand.hbm [shape: bf16[256,784], index: 7, kind: input, shape index: {}]   ;;  %s6317_s8 = inlined_call_operand.hbm [shape: f32[1,784], index: 8, kind: input, shape index: {}]   ;;  %s6318_s9 = inlined_call_operand.hbm [shape: bf16[200,784], index: 9, kind: output, shape index: {}]  }
   0x1   :  { %6335 = sst [smem:[#allocation31_spill]] %s6310_s1 }
   0x2   :  { %6336 = sst [smem:[#allocation32_spill]] %s6318_s9 }
   0x3   :  { %14 = vsyncpa [#allocation3], 0 }
   0x4   :  { %16 = vsyncpa [#allocation3 + $0x1], 0 }
   0x5   :  { %17 = vsyncpa [#allocation6], 0 }
   0x6   :  { %18 = vsyncpa [#allocation9], 0 }
   0x7   :  { %19 = vsyncpa [#allocation12], 0 }
   0x8   :  { %20 = vsyncpa [#allocation15], 0 }
   0x9   :  { %21 = vsyncpa [#allocation4], 0 }
   0xa   :  { %23 = vsyncpa [#allocation4 + $0x1], 0  ;;  %s5422_s30 = smov 0   ;;  %s5424_s10 = smov 0  }
   0xb   :  { %s5426_s11 = smov 0   ;;  %s5428_s12 = smov 0  }
   0xc LB: > { %6337 = sst [smem:[#allocation24_spill]] %s5337_s30  ;;  %s5443_s13 = sadd.s32 4294967295, %s5349_s12   ;;  %s5349_s12 = sphi %s5428_s12, %s6374_s12   ;;  %s5345_s11 = sphi %s5426_s11, %s6378_s11   ;;  %s5341_s10 = sphi %s5424_s10, %s6377_s10   ;;  %s5337_s30 = sphi %s5422_s30, %s6376_s30  }
   0xd   : > { %6338 = sst [smem:[#allocation25_spill]] %s5443_s13  ;;  %s3918_s14 = sadd.s32 4294967294, %s5349_s12  }
   0xe   : > { %s5447_s15 = sadd.s32 1, %s5349_s12   ;;  %s36_s16 = sadd.s32 1, %s5345_s11 }
   0xf   : > { %6339 = sst [smem:[#allocation26_spill]] %s5447_s15  ;;  %s33_s17 = ssub.s32 %s5349_s12, %s5447_s15 }
  0x10   : > { %p43_p0 = scmp.ne.s32.totalorder %s5345_s11, %s5341_s10  ;;  %p34_p1 = scmp.eq.s32.totalorder %s33_s17, 0 }
  0x11   : > { %p44_p2 = scmp.eq.s32.totalorder %s5349_s12, 0  ;;  %p49_p3 = scmp.ne.s32.totalorder %s5341_s10, %s5337_s30 }
  0x12   : > { %p6321_p4 = scmp.eq.s32.totalorder %s5443_s13, 0  ;;  %p241_p7 = scmp.eq.s32.totalorder %s5443_s13, 1 }
  0x13   : > { %s5459_s18 = scalar_select %p34_p1, %s5345_s11, %s36_s16  }
  0x14   : > { %p5461_p5 = por %p44_p2, %p43_p0  ;;  %p5467_p6 = por %p6321_p4, %p49_p3 }
  0x15   : > { %6340 = sst [smem:[#allocation27_spill]] %s5459_s18  ;;  %p247_p8 = scmp.eq.s32.totalorder %s3918_s14, 1 }
  0x16   : > { %s6341_s19 = scalar_select %p5461_p5, 1, 0 }
  0x17   : > { %s6342_s20 = scalar_select %p5467_p6, 1, 0 }
  0x18   : > { %p3919_p9 = scmp.ge.s32.totalorder %s5349_s12, 1  ;;  %p254_p10 = scmp.lt.s32.totalorder %s5349_s12, 3 }
  0x19   : > { %6343 = sst [smem:[#allocation28_spill]] %s6342_s20  ;;  %p5474_p11 = por %p241_p7, %p43_p0 }
  0x1a   : > { %p5478_p12 = por %p247_p8, %p49_p3  ;;  %p5482_p13 = pnand %p3919_p9, %p254_p10 }
  0x1b   : > { %s6344_s21 = scalar_select %p5474_p11, 1, 0 }
  0x1c   : > { %s6346_s22 = scalar_select %p5478_p12, 1, 0 }
  0x1d   : > { %6345 = sst [smem:[#allocation29_spill]] %s6344_s21  ;;  %p4569_p1 = pneg %p5482_p13 }
  0x1e   : > { %6347 = sst [smem:[#allocation30_spill]] %s6346_s22  ;;  %s5351_s24 = smov [#allocation5]  }
  0x1f   : > { %s6348_s23 = scalar_select %p5482_p13, 1, 0 }
  0x20   : > { %s266_s25 = sshll.u32 %s5351_s24, 4  ;;  %p5490_p2 = pnand %p4569_p1, %p6321_p4  ;;  %s267_s25 = int_to_ptr.vmem [resolvable:$true] %s266_s25 }
  0x21   : > { %s5352_s27 = smov [#allocation8]   ;;  %s6350_s1 = sld [smem:[#allocation31_spill]] }
  0x22   : > { %s290_s28 = sshll.u32 %s5352_s27, 4  ;;  %p5504_p3 = pneg %p5490_p2  ;;  %s5494_s28 = int_to_ptr.vmem [resolvable:$true] %s290_s28 }
  0x27   : > { %s5015_s16 = scalar_lea.hbm %s6350_s1, 12544 }
  0x28   : > { %p5016_p0 = scmp.ne.s32.totalorder %s6350_s1, %s5015_s16  ;;  %p5022_p9 = scmp.lt.u32.totalorder %s5015_s16, %s6350_s1 }
  0x2a   : > { %p5018_p7 = pnand %p5504_p3, %p5016_p0 }
  0x2c   : > { %p5019_p8 = pneg %p5018_p7 }
  0x2e   : > { %p5024_p10 = pnand %p5022_p9, %p5019_p8 }
  0x30   : > { %5027 = shalt.err (!%p5024_p10)
}
  0x31   : > { %s5028_s29 = scalar_lea.vmem %s267_s25, 12544  ;;  %p5036_p11 = scmp.lt.s32.totalorder %s267_s25, %s267_s25 }
  0x32   : > { %p5029_p1 = scmp.ne.s32.totalorder %s267_s25, %s5028_s29  ;;  %p5037_p6 = scmp.lt.s32.totalorder %s5028_s29, %s5028_s29 }
  0x34   : > { %p5031_p4 = pnand %p5029_p1, %p5504_p3  ;;  %p5038_p13 = por %p5037_p6, %p5036_p11 }
  0x36   : > { %p5032_p12 = pneg %p5031_p4 }
  0x38   : > { %p5039_p5 = pnand %p5038_p13, %p5032_p12 }
  0x3a   : > { %5042 = shalt.err (!%p5039_p5)
}
  0x3b   : > { %s6328_s18 = smov 128   ;;  %s6329_s14 = smov 8  }
  0x3c   : > { %4572 = dma.hbm_to_vmem [thread:$0]  (!%p5490_p2), %s6350_s1, 12544, %s267_s25, [#allocation6], %s6328_s18, %s6328_s18, %s6329_s14  }
  0x3d   : > { %s5043_s22 = scalar_lea.hbm %s6312_s3, 2048 }
  0x3e   : > { %p5044_p4 = scmp.ne.s32.totalorder %s6312_s3, %s5043_s22  ;;  %p5050_p11 = scmp.lt.u32.totalorder %s5043_s22, %s6312_s3 }
  0x40   : > { %p5046_p5 = pnand %p5044_p4, %p5504_p3 }
  0x42   : > { %p5047_p6 = pneg %p5046_p5 }
  0x44   : > { %p5052_p12 = pnand %p5050_p11, %p5047_p6 }
  0x46   : > { %5055 = shalt.err (!%p5052_p12)
}
  0x47   : > { %s5056_s25 = scalar_lea.vmem %s5494_s28, 2048  ;;  %p5064_p8 = scmp.lt.s32.totalorder %s5494_s28, %s5494_s28 }
  0x48   : > { %p5057_p13 = scmp.ne.s32.totalorder %s5494_s28, %s5056_s25  ;;  %p5065_p9 = scmp.lt.s32.totalorder %s5056_s25, %s5056_s25 }
  0x4a   : > { %p5059_p0 = pnand %p5057_p13, %p5504_p3  ;;  %p5066_p10 = por %p5065_p9, %p5064_p8 }
  0x4c   : > { %p5060_p7 = pneg %p5059_p0 }
  0x4e   : > { %p5067_p1 = pnand %p5066_p10, %p5060_p7 }
  0x50   : > { %5070 = shalt.err (!%p5067_p1)
}
  0x51   : > { %s5355_s30 = smov 64   ;;  %s5356_s9 = smov 4  }
  0x52   : > { %4578 = dma.hbm_to_vmem [thread:$0]  (!%p5490_p2), %s6312_s3, 2048, %s5494_s28, [#allocation9], %s5355_s30, %s5355_s30, %s5356_s9  }
  0x53   : > { %s5357_s15 = smov [#allocation11]   ;;  %s5358_s17 = smov [#allocation14]  }
  0x54   : > { %s314_s16 = sshll.u32 %s5357_s15, 4  ;;  %s338_s27 = sshll.u32 %s5358_s17, 4  ;;  %s315_s16 = int_to_ptr.vmem [resolvable:$true] %s314_s16  ;;  %s339_s27 = int_to_ptr.vmem [resolvable:$true] %s338_s27 }
  0x55   : > { %s5071_s18 = scalar_lea.hbm %s6314_s5, 2048 }
  0x56   : > { %p5072_p4 = scmp.ne.s32.totalorder %s6314_s5, %s5071_s18  ;;  %p5078_p11 = scmp.lt.u32.totalorder %s5071_s18, %s6314_s5 }
  0x58   : > { %p5074_p5 = pnand %p5072_p4, %p5504_p3 }
  0x5a   : > { %p5075_p6 = pneg %p5074_p5 }
  0x5c   : > { %p5080_p12 = pnand %p5078_p11, %p5075_p6 }
  0x5e   : > { %5083 = shalt.err (!%p5080_p12)
}
  0x5f   : > { %s5084_s28 = scalar_lea.vmem %s315_s16, 2048  ;;  %p5092_p8 = scmp.lt.s32.totalorder %s315_s16, %s315_s16 }
  0x60   : > { %p5085_p13 = scmp.ne.s32.totalorder %s315_s16, %s5084_s28  ;;  %p5093_p9 = scmp.lt.s32.totalorder %s5084_s28, %s5084_s28 }
  0x62   : > { %p5087_p0 = pnand %p5085_p13, %p5504_p3  ;;  %p5094_p10 = por %p5093_p9, %p5092_p8 }
  0x64   : > { %p5088_p7 = pneg %p5087_p0 }
  0x66   : > { %p5095_p1 = pnand %p5094_p10, %p5088_p7 }
  0x68   : > { %5098 = shalt.err (!%p5095_p1)
}
  0x69   : > { %s6352_s1 = smov 8   ;;  %s6353_s14 = smov 128  }
  0x6a   : > { %4584 = dma.hbm_to_vmem [thread:$0]  (!%p5490_p2), %s6314_s5, 2048, %s315_s16, [#allocation12], %s6353_s14, %s6353_s14, %s6352_s1  }
  0x6b   : > { %s5099_s9 = scalar_lea.hbm %s6316_s7, 14336 }
  0x6c   : > { %p5100_p4 = scmp.ne.s32.totalorder %s6316_s7, %s5099_s9  ;;  %p5106_p11 = scmp.lt.u32.totalorder %s5099_s9, %s6316_s7 }
  0x6e   : > { %p5102_p5 = pnand %p5100_p4, %p5504_p3 }
  0x70   : > { %p5103_p6 = pneg %p5102_p5 }
  0x72   : > { %p5108_p12 = pnand %p5106_p11, %p5103_p6 }
  0x74   : > { %5111 = shalt.err (!%p5108_p12)
}
  0x75   : > { %s5112_s29 = scalar_lea.vmem %s339_s27, 14336  ;;  %p5120_p8 = scmp.lt.s32.totalorder %s339_s27, %s339_s27 }
  0x76   : > { %p5113_p13 = scmp.ne.s32.totalorder %s339_s27, %s5112_s29  ;;  %p5121_p9 = scmp.lt.s32.totalorder %s5112_s29, %s5112_s29 }
  0x78   : > { %p5115_p0 = pnand %p5113_p13, %p5504_p3  ;;  %p5122_p10 = por %p5121_p9, %p5120_p8 }
  0x7a   : > { %p5116_p7 = pneg %p5115_p0 }
  0x7c   : > { %p5123_p1 = pnand %p5122_p10, %p5116_p7 }
  0x7e   : > { %5126 = shalt.err (!%p5123_p1)
}
  0x7f   : > { %s5359_s16 = smov 448   ;;  %s5360_s25 = smov 28  }
  0x80   : > { %4590 = dma.hbm_to_vmem [thread:$0]  (!%p5490_p2), %s6316_s7, 14336, %s339_s27, [#allocation15], %s5359_s16, %s5359_s16, %s5360_s25  }
  0x81   : > { %s5361_s14 = smov [#allocation7]   ;;  %s5362_s20 = smov [#allocation10]  }
  0x82   : > { %s280_s13 = sshll.u32 %s5361_s14, 4  ;;  %s304_s18 = sshll.u32 %s5362_s20, 4  ;;  %s281_s13 = int_to_ptr.vmem [resolvable:$true] %s280_s13  ;;  %s305_s18 = int_to_ptr.vmem [resolvable:$true] %s304_s18 }
  0x83   : > { %s5127_s21 = scalar_lea.hbm %s6311_s2, 32 }
  0x84   : > { %p5128_p4 = scmp.ne.s32.totalorder %s6311_s2, %s5127_s21  ;;  %p5134_p11 = scmp.lt.u32.totalorder %s5127_s21, %s6311_s2 }
  0x86   : > { %p5130_p5 = pnand %p5128_p4, %p5504_p3 }
  0x88   : > { %p5131_p6 = pneg %p5130_p5 }
  0x8a   : > { %p5136_p12 = pnand %p5134_p11, %p5131_p6 }
  0x8c   : > { %5139 = shalt.err (!%p5136_p12)
}
  0x8d   : > { %s5140_s27 = scalar_lea.vmem %s281_s13, 32  ;;  %p5148_p8 = scmp.lt.s32.totalorder %s281_s13, %s281_s13 }
  0x8e   : > { %p5141_p13 = scmp.ne.s32.totalorder %s281_s13, %s5140_s27  ;;  %p5149_p9 = scmp.lt.s32.totalorder %s5140_s27, %s5140_s27 }
  0x90   : > { %p5143_p0 = pnand %p5141_p13, %p5504_p3  ;;  %p5150_p10 = por %p5149_p9, %p5148_p8 }
  0x92   : > { %p5144_p7 = pneg %p5143_p0 }
  0x94   : > { %p5151_p1 = pnand %p5150_p10, %p5144_p7 }
  0x96   : > { %5154 = shalt.err (!%p5151_p1)
}
  0x97   : > { %4575 = dma.hbm_to_vmem [thread:$0]  (!%p5490_p2), %s6311_s2, 32, %s281_s13, [#allocation6]  }
  0x98   : > { %s5155_s14 = scalar_lea.hbm %s6313_s4, 16 }
  0x99   : > { %p5156_p4 = scmp.ne.s32.totalorder %s6313_s4, %s5155_s14  ;;  %p5162_p11 = scmp.lt.u32.totalorder %s5155_s14, %s6313_s4 }
  0x9b   : > { %p5158_p5 = pnand %p5156_p4, %p5504_p3 }
  0x9d   : > { %p5159_p6 = pneg %p5158_p5 }
  0x9f   : > { %p5164_p12 = pnand %p5162_p11, %p5159_p6 }
  0xa1   : > { %5167 = shalt.err (!%p5164_p12)
}
  0xa2   : > { %s5168_s22 = scalar_lea.vmem %s305_s18, 16  ;;  %s5175_s13 = scalar_lea.vmem %s305_s18, 32 }
  0xa3   : > { %p5169_p13 = scmp.ne.s32.totalorder %s305_s18, %s5168_s22  ;;  %p5176_p8 = scmp.lt.s32.totalorder %s305_s18, %s305_s18 }
  0xa4   : > { %p5177_p9 = scmp.lt.s32.totalorder %s5175_s13, %s5168_s22 }
  0xa5   : > { %p5171_p0 = pnand %p5169_p13, %p5504_p3 }
  0xa6   : > { %p5178_p10 = por %p5177_p9, %p5176_p8 }
  0xa7   : > { %p5172_p7 = pneg %p5171_p0 }
  0xa9   : > { %p5179_p1 = pnand %p5178_p10, %p5172_p7 }
  0xab   : > { %5182 = shalt.err (!%p5179_p1)
}
  0xac   : > { %4581 = dma.hbm_to_vmem [thread:$0]  (!%p5490_p2), %s6313_s4, 16, %s305_s18, [#allocation9]  }
  0xad   : > { %s5363_s29 = smov [#allocation13]   ;;  %s5364_s16 = smov [#allocation16]  }
  0xae   : > { %s328_s27 = sshll.u32 %s5363_s29, 4  ;;  %s352_s25 = sshll.u32 %s5364_s16, 4  ;;  %s329_s27 = int_to_ptr.vmem [resolvable:$true] %s328_s27  ;;  %s353_s25 = int_to_ptr.vmem [resolvable:$true] %s352_s25 }
  0xaf   : > { %s5183_s14 = scalar_lea.hbm %s6315_s6, 32 }
  0xb0   : > { %p5184_p4 = scmp.ne.s32.totalorder %s6315_s6, %s5183_s14  ;;  %p5190_p11 = scmp.lt.u32.totalorder %s5183_s14, %s6315_s6 }
  0xb2   : > { %p5186_p5 = pnand %p5184_p4, %p5504_p3 }
  0xb4   : > { %p5187_p6 = pneg %p5186_p5 }
  0xb6   : > { %p5192_p12 = pnand %p5190_p11, %p5187_p6 }
  0xb8   : > { %5195 = shalt.err (!%p5192_p12)
}
  0xb9   : > { %s5196_s18 = scalar_lea.vmem %s329_s27, 32  ;;  %p5204_p8 = scmp.lt.s32.totalorder %s329_s27, %s329_s27 }
  0xba   : > { %p5197_p13 = scmp.ne.s32.totalorder %s329_s27, %s5196_s18  ;;  %p5205_p9 = scmp.lt.s32.totalorder %s5196_s18, %s5196_s18 }
  0xbc   : > { %p5199_p0 = pnand %p5197_p13, %p5504_p3  ;;  %p5206_p10 = por %p5205_p9, %p5204_p8 }
  0xbe   : > { %p5200_p7 = pneg %p5199_p0 }
  0xc0   : > { %p5207_p1 = pnand %p5206_p10, %p5200_p7 }
  0xc2   : > { %5210 = shalt.err (!%p5207_p1)
}
  0xc3   : > { %4587 = dma.hbm_to_vmem [thread:$0]  (!%p5490_p2), %s6315_s6, 32, %s329_s27, [#allocation12]  }
  0xc4   : > { %s5211_s29 = scalar_lea.hbm %s6317_s8, 112 }
  0xc5   : > { %p5212_p4 = scmp.ne.s32.totalorder %s6317_s8, %s5211_s29  ;;  %p5218_p11 = scmp.lt.u32.totalorder %s5211_s29, %s6317_s8 }
  0xc7   : > { %p5214_p5 = pnand %p5212_p4, %p5504_p3 }
  0xc9   : > { %p5215_p6 = pneg %p5214_p5 }
  0xcb   : > { %p5220_p12 = pnand %p5218_p11, %p5215_p6 }
  0xcd   : > { %5223 = shalt.err (!%p5220_p12)
}
  0xce   : > { %s5224_s20 = scalar_lea.vmem %s353_s25, 112  ;;  %s5231_s27 = scalar_lea.vmem %s353_s25, 128 }
  0xcf   : > { %p5225_p13 = scmp.ne.s32.totalorder %s353_s25, %s5224_s20  ;;  %p5232_p8 = scmp.lt.s32.totalorder %s353_s25, %s353_s25 }
  0xd0   : > { %p5233_p9 = scmp.lt.s32.totalorder %s5231_s27, %s5224_s20 }
  0xd1   : > { %p5227_p0 = pnand %p5225_p13, %p5504_p3 }
  0xd2   : > { %p5234_p10 = por %p5233_p9, %p5232_p8 }
  0xd3   : > { %p5228_p7 = pneg %p5227_p0 }
  0xd5   : > { %p5235_p1 = pnand %p5234_p10, %p5228_p7 }
  0xd7   : > { %5238 = shalt.err (!%p5235_p1)
}
  0xd8   : > { %4593 = dma.hbm_to_vmem [thread:$0]  (!%p5490_p2), %s6317_s8, 112, %s353_s25, [#allocation15]  }
  0xd9   : > { %p3928_p4 = scmp.ge.s32.totalorder %s5349_s12, 2 }
  0xda   : > { %p6354_p3 = scmp.ne.s32.totalorder (!%p3928_p4), %s6341_s19, 0 }
  0xdb   : > { %359 = sbr.rel (%p3928_p4) target bundleno = 262 (0x106), region = 48 }
  0xe2   : > { %362 = sbr.rel (!%p6354_p3) target bundleno = 262 (0x106), region = 52  ;;  %s363_s24 = sand.u32 (%p6354_p3), 1, %s5345_s11  }
  0xe3   : > { %s368_s21 = smul.u32 (%p6354_p3), 13, %s5349_s12  ;;  %s5667_s13 = scalar_lea.sflag (%p6354_p3), [#allocation3], %s363_s24 }
  0xe4   : > { %s4530_s18 = smul.u32 (%p6354_p3), 728, %s363_s24 }
  0xe5   : > { %s369_s22 = ssub.s32 (%p6354_p3), 25, %s368_s21 }
  0xe6   : > { %p370_p5 = scmp.lt.s32.totalorder (%p6354_p3), %s369_s22, 13  ;;  %s367_s15 = scalar_lea.vmem (%p6354_p3), [#allocation2], %s4530_s18 }
  0xe9   : > { %s6380_s22 = smov (!%p370_p5, %s369_s22), 13 }
  0xea   : > { %s5664_s26 = smul.u32 896, %s6380_s22 }
  0xec   : > { %s375_s25 = ssub.s32 11648, %s5664_s26 }
  0xed   : > { %376 = vsyncadd %s5667_s13, %s375_s25  ;;  %p3931_p2 = scmp.ne.s32.totalorder %s5664_s26, 0  ;;  %s4606_s19 = smul.u32 11648, %s5349_s12 }
  0xee   : > { %s382_s17 = sshll.u32 %s367_s15, 4  ;;  %s5243_s27 = scalar_lea.hbm %s6309_s0, 22400  ;;  %s5677_s17 = int_to_ptr.vmem [resolvable:$true] %s382_s17 }
  0xef   : > { %s5675_s28 = scalar_lea.hbm %s6309_s0, %s4606_s19 }
  0xf0   : > { %s5239_s1 = scalar_lea.hbm %s5675_s28, %s5664_s26  ;;  %p5244_p13 = scmp.lt.u32.totalorder %s5675_s28, %s6309_s0 }
  0xf1   : > { %p5240_p6 = scmp.ne.s32.totalorder %s5675_s28, %s5239_s1  ;;  %p5245_p0 = scmp.lt.u32.totalorder %s5243_s27, %s5239_s1 }
  0xf2   : > { %p5247_p8 = scmp.lt.u32.totalorder %s5239_s1, %s5675_s28 }
  0xf3   : > { %p5241_p11 = pnand %p5240_p6, %p3931_p2  ;;  %p5246_p7 = por %p5245_p0, %p5244_p13 }
  0xf5   : > { %p5242_p12 = pneg %p5241_p11  ;;  %p5248_p9 = por %p5247_p8, %p5246_p7 }
  0xf7   : > { %p5249_p10 = pnand %p5248_p9, %p5242_p12 }
  0xf9   : > { %5252 = shalt.err (!%p5249_p10)
}
  0xfa   : > { %s5253_s24 = scalar_lea.vmem %s5677_s17, %s5664_s26  ;;  %s5365_s21 = smov [#allocation2]  }
  0xfb   : > { %p5254_p1 = scmp.ne.s32.totalorder %s5677_s17, %s5253_s24  ;;  %s5257_s18 = sshll.u32 %s5365_s21, 4  ;;  %s5258_s18 = int_to_ptr.vmem [resolvable:$false] %s5257_s18 }
  0xfc   : > { %s5259_s22 = scalar_lea.vmem %s5258_s18, 23296  ;;  %p5260_p6 = scmp.lt.s32.totalorder %s5677_s17, %s5258_s18 }
  0xfd   : > { %p5255_p3 = pnand %p5254_p1, %p3931_p2  ;;  %p5261_p11 = scmp.lt.s32.totalorder %s5259_s22, %s5253_s24 }
  0xff   : > { %p5256_p5 = pneg %p5255_p3  ;;  %p5262_p13 = por %p5261_p11, %p5260_p6 }
 0x101   : > { %p5263_p0 = pnand %p5262_p13, %p5256_p5 }
 0x103   : > { %5266 = shalt.err (!%p5263_p0)
}
 0x104   : > { %s5366_s25 = smov 896   ;;  %s5367_s15 = smov 56  }
 0x105   : > { %388 = dma.hbm_to_vmem [thread:$0]  (%p3931_p2), %s5675_s28, %s5664_s26, %s5677_s17, %s5667_s13, %s5366_s25, %s5366_s25, %s5367_s15  }
 0x106 PF: > { %p6355_p12 = scmp.ne.s32.totalorder %s6348_s23, 0 }
 0x107   : > { %s6356_s19 = sld [smem:[#allocation28_spill]] (!%p6355_p12)  ;;  %s5707_s29 = sand.u32 (!%p6355_p12), 1, %s5341_s10  }
 0x108   : > { %394 = sbr.rel (%p6355_p12) target bundleno = 1632 (0x660), region = 56  ;;  %s397_s1 = scalar_lea.sflag (!%p6355_p12), [#allocation3], %s5707_s29 }
 0x109   : > { %s4532_s16 = smul.u32 (!%p6355_p12), 728, %s5707_s29 }
 0x10b   : > { %s5711_s14 = scalar_lea.vmem (!%p6355_p12), [#allocation2], %s4532_s16 }
 0x10d   : > { %p6357_p7 = scmp.ne.s32.totalorder (!%p6355_p12), %s6356_s19, 0 }
 0x10f   : > { %5312 = dma.done.wait (%p6357_p7), %s397_s1, 11648  }
 0x110   : > { %5314 = vsyncadd (%p6357_p7), %s397_s1, 4294955648  ;;  %s6358_s26 = sld [smem:[#allocation25_spill]] }
 0x116   : > { %p6359_p2 = scmp.eq.s32.totalorder %s6358_s26, 0 }
 0x118   : > { %5316 = dma.done.wait (%p6359_p2), [#allocation6], 12576   ;;  %p6360_p8 = pmov %p6359_p2 }
 0x119   : > { %p6361_p9 = pmov %p6359_p2 }
 0x11a   : > { %5318 = vsyncadd (%p6360_p8), [#allocation6], 4294954720 }
 0x11b   : > { %5320 = dma.done.wait (%p6361_p9), [#allocation9], 2064   ;;  %p6362_p10 = pmov %p6359_p2 }
 0x11c   : > { %p6363_p1 = pmov %p6359_p2 }
 0x11d   : > { %5322 = vsyncadd (%p6362_p10), [#allocation9], 4294965232 }
 0x11e   : > { %5324 = dma.done.wait (%p6363_p1), [#allocation12], 2080   ;;  %p6364_p3 = pmov %p6363_p1 }
 0x11f   : > { %p6365_p5 = pmov %p6363_p1 }
 0x120   : > { %5326 = vsyncadd (%p6364_p3), [#allocation12], 4294965216 }
 0x121   : > { %5328 = dma.done.wait (%p6365_p5), [#allocation15], 14448   ;;  %p6366_p6 = pmov %p6363_p1 }
 0x122   : > { %v4668_v0 = vld [vmem:[#allocation5 + $0x4] ss:$8 sps:$4 sm:$0xff]   ;;  %v4670_v1 = vld [vmem:[#allocation5] ss:$8 sps:$4 sm:$0xff]   ;;  %v4671_v2 = vld [vmem:[#allocation5 + $0x14] ss:$8 sps:$4 sm:$0xff]  }
 0x123   : > { %5330 = vsyncadd (%p6366_p6), [#allocation15], 4294952848  ;;  %1242 = vmatprep.subr.bf16.mxu0 %v4668_v0  ;;  %v4673_v3 = vld [vmem:[#allocation5 + $0x10] ss:$8 sps:$4 sm:$0xff]   ;;  %v4674_v4 = vld [vmem:[#allocation5 + $0x24] ss:$8 sps:$4 sm:$0xff]  }
 0x124   : > { %1243 = vmatpush1.bf16.msra.mxu0 %v4670_v1  ;;  %v4676_v5 = vld [vmem:[#allocation5 + $0x20] ss:$8 sps:$4 sm:$0xff]   ;;  %v4677_v6 = vld [vmem:[#allocation5 + $0x34] ss:$8 sps:$4 sm:$0xff]   ;;  %v4679_v7 = vld [vmem:[#allocation5 + $0x30] ss:$8 sps:$4 sm:$0xff]  }
 0x125   : > { %1244 = vmatprep.subr.bf16.mxu0 %v4671_v2  ;;  %v4680_v8 = vld [vmem:[#allocation5 + $0x44] ss:$8 sps:$4 sm:$0xff]   ;;  %v4682_v9 = vld [vmem:[#allocation5 + $0x40] ss:$8 sps:$4 sm:$0xff]   ;;  %v4683_v10 = vld [vmem:[#allocation5 + $0x54] ss:$8 sps:$4 sm:$0xff]  }
 0x126   : > { %v4685_v11 = vld [vmem:[#allocation5 + $0x50] ss:$8 sps:$4 sm:$0xff]   ;;  %v4686_v12 = vld [vmem:[#allocation5 + $0x64] ss:$8 sps:$4 sm:$0xff]   ;;  %v4688_v16 = vld [vmem:[#allocation5 + $0x60] ss:$8 sps:$4 sm:$0xff]  }
 0x127   : > { %v481_v13 = vld [vmem:[%s5711_s14 + $0x8] sm:$0xff]  ;;  %v488_v14 = vld [vmem:[%s5711_s14 + $0x40] sm:$0xff]  ;;  %v487_v37 = vld [vmem:[%s5711_s14 + $0x38] sm:$0xff]  ;;  %vm1220_vm0 = vcmask 130048   ;;  %s4533_s23 = smul.u32 364, %s5707_s29  ;;  %vm3697_vm1 = vcmask 125952  }
 0x128   : > { %1245 = vmatpush1.bf16.msra.mxu0 %v4673_v3  ;;  %v572_v15 = vpack.c.bf16 %v488_v14, %v481_v13  ;;  %v4689_v17 = vld [vmem:[#allocation5 + $0x74] ss:$8 sps:$4 sm:$0xff]   ;;  %v4691_v18 = vld [vmem:[#allocation5 + $0x70] ss:$8 sps:$4 sm:$0xff]   ;;  %v4692_v19 = vld [vmem:[#allocation5 + $0x84] ss:$8 sps:$4 sm:$0xff]  }
 0x129   : > { %1246 = vmatprep.subr.bf16.mxu0 %v4674_v4  ;;  %v4694_v20 = vld [vmem:[#allocation5 + $0x80] ss:$8 sps:$4 sm:$0xff]   ;;  %v4695_v21 = vld [vmem:[#allocation5 + $0x94] ss:$8 sps:$4 sm:$0xff]   ;;  %v4697_v22 = vld [vmem:[#allocation5 + $0x90] ss:$8 sps:$4 sm:$0xff]  }
 0x12a   : > { %1274 = vmatprep.mubr.bf16.mxu0 %v572_v15  ;;  %v4698_v23 = vld [vmem:[#allocation5 + $0xa4] ss:$8 sps:$4 sm:$0xff]   ;;  %v4700_v24 = vld [vmem:[#allocation5 + $0xa0] ss:$8 sps:$4 sm:$0xff]   ;;  %v4701_v25 = vld [vmem:[#allocation5 + $0xb4] ss:$8 sps:$4 sm:$0xff]  }
 0x12b   : > { %v4703_v26 = vld [vmem:[#allocation5 + $0xb0] ss:$8 sps:$4 sm:$0xff]   ;;  %v4704_v27 = vld [vmem:[#allocation5 + $0xc4] ss:$8 sps:$4 sm:$0xff]   ;;  %v4706_v28 = vld [vmem:[#allocation5 + $0xc0] ss:$8 sps:$4 sm:$0xff]  }
 0x12c   : > { %1247 = vmatpush1.bf16.msra.mxu0 %v4676_v5  ;;  %v4707_v29 = vld [vmem:[#allocation5 + $0xd4] ss:$8 sps:$4 sm:$0xff]   ;;  %v4709_v30 = vld [vmem:[#allocation5 + $0xd0] ss:$8 sps:$4 sm:$0xff]   ;;  %v4710_v31 = vld [vmem:[#allocation5 + $0xe4] ss:$8 sps:$4 sm:$0xff]  }
 0x12d   : > { %1248 = vmatprep.subr.bf16.mxu0 %v4677_v6  ;;  %v4712_v32 = vld [vmem:[#allocation5 + $0xe0] ss:$8 sps:$4 sm:$0xff]   ;;  %v4713_v33 = vld [vmem:[#allocation5 + $0xf4] ss:$8 sps:$4 sm:$0xff]   ;;  %v4715_v34 = vld [vmem:[#allocation5 + $0xf0] ss:$8 sps:$4 sm:$0xff]  }
 0x12e   : > { %v4718_v35 = vld [vmem:[#allocation5 + $0x104] ss:$8 sps:$4 sm:$0xff]   ;;  %v4716_v41 = vld [vmem:[#allocation5 + $0x100] ss:$8 sps:$4 sm:$0xff]   ;;  %v4721_v43 = vld [vmem:[#allocation5 + $0x114] ss:$8 sps:$4 sm:$0xff]  }
 0x12f   : > { %v480_v36 = vld [vmem:[%s5711_s14] sm:$0xff]  ;;  %v495_v38 = vld [vmem:[%s5711_s14 + $0x78] sm:$0xff]  ;;  %v502_v39 = vld [vmem:[%s5711_s14 + $0xb0] sm:$0xff]  ;;  %s6078_s13 = scalar_lea.vmem [#allocation17], %s4533_s23  ;;  %s3748_s17 = scalar_lea.sflag [#allocation4], %s5707_s29 }
 0x130   : > { %1249 = vmatpush1.bf16.msra.mxu0 %v4679_v7  ;;  %v571_v40 = vpack.c.bf16 %v487_v37, %v480_v36  ;;  %v579_v42 = vpack.c.bf16 %v502_v39, %v495_v38  ;;  %v4719_v44 = vld [vmem:[#allocation5 + $0x110] ss:$8 sps:$4 sm:$0xff]   ;;  %v4724_v45 = vld [vmem:[#allocation5 + $0x124] ss:$8 sps:$4 sm:$0xff]   ;;  %v4722_v51 = vld [vmem:[#allocation5 + $0x120] ss:$8 sps:$4 sm:$0xff]  }
 0x131   : > { %1250 = vmatprep.subr.bf16.mxu0 %v4680_v8  ;;  %v494_v46 = vld [vmem:[%s5711_s14 + $0x70] sm:$0xff]  ;;  %v501_v47 = vld [vmem:[%s5711_s14 + $0xa8] sm:$0xff]  ;;  %v516_v49 = vld [vmem:[%s5711_s14 + $0x120] sm:$0xff]  ;;  %s6367_s28 = sld [smem:[#allocation29_spill]] }
 0x132   : > { %v509_v48 = vld [vmem:[%s5711_s14 + $0xe8] sm:$0xff]  ;;  %v578_v50 = vpack.c.bf16 %v501_v47, %v494_v46  ;;  %v4730_v55 = vld [vmem:[#allocation5 + $0x144] ss:$8 sps:$4 sm:$0xff]   ;;  %v4728_v61 = vld [vmem:[#allocation5 + $0x140] ss:$8 sps:$4 sm:$0xff]  }
 0x133   : > { %v586_v52 = vpack.c.bf16 %v516_v49, %v509_v48  ;;  %v4727_v53 = vld [vmem:[#allocation5 + $0x134] ss:$8 sps:$4 sm:$0xff]   ;;  %v4725_v54 = vld [vmem:[#allocation5 + $0x130] ss:$8 sps:$4 sm:$0xff]   ;;  %v515_v57 = vld [vmem:[%s5711_s14 + $0x118] sm:$0xff] }
 0x134   : > { %1251 = vmatpush1.bf16.msra.mxu0 %v4682_v9  ;;  %v508_v56 = vld [vmem:[%s5711_s14 + $0xe0] sm:$0xff]  ;;  %v523_v58 = vld [vmem:[%s5711_s14 + $0x158] sm:$0xff]  ;;  %v530_v59 = vld [vmem:[%s5711_s14 + $0x190] sm:$0xff] }
 0x135   : > { %1252 = vmatprep.subr.bf16.mxu0 %v4683_v10  ;;  %v585_v60 = vpack.c.bf16 %v515_v57, %v508_v56  ;;  %v593_v62 = vpack.c.bf16 %v530_v59, %v523_v58  ;;  %v4733_v63 = vld [vmem:[#allocation5 + $0x154] ss:$8 sps:$4 sm:$0xff]   ;;  %v4731_v0 = vld [vmem:[#allocation5 + $0x150] ss:$8 sps:$4 sm:$0xff]   ;;  %v5749_v3 = vld [vmem:[#allocation5 + $0x300] ss:$8 sps:$4 sm:$0xff]  }
 0x136   : > { %v522_v1 = vld [vmem:[%s5711_s14 + $0x150] sm:$0xff]  ;;  %v529_v2 = vld [vmem:[%s5711_s14 + $0x188] sm:$0xff]  ;;  %v544_v7 = vld [vmem:[%s5711_s14 + $0x200] sm:$0xff] }
 0x137   : > { %v5751_v4 = vld [vmem:[#allocation5 + $0x304] ss:$8 sps:$4 sm:$0xff]   ;;  %v537_v6 = vld [vmem:[%s5711_s14 + $0x1c8] sm:$0xff]  ;;  %v592_v8 = vpack.c.bf16 %v529_v2, %v522_v1  ;;  %v4734_v9 = vld [vmem:[#allocation5 + $0x160] ss:$8 sps:$4 sm:$0xff]   ;;  %p6368_p11 = scmp.ne.s32.totalorder %s6367_s28, 0 }
 0x138   : > { %1253 = vmatpush1.bf16.msra.mxu0 %v4685_v11  ;;  %v4736_v5 = vld [vmem:[#allocation5 + $0x164] ss:$8 sps:$4 sm:$0xff]   ;;  %4420 = vmatprep.subr.bf16.mxu1 %v5751_v4  ;;  %v4739_v10 = vld [vmem:[#allocation5 + $0x174] ss:$8 sps:$4 sm:$0xff]   ;;  %v600_v11 = vpack.c.bf16 %v544_v7, %v537_v6  ;;  %v4755_v49 = vld [vmem:[#allocation5 + $0x1d0] ss:$8 sps:$4 sm:$0xff]  }
 0x139   : > { %1254 = vmatprep.subr.bf16.mxu0 %v4686_v12  ;;  %4421 = vmatpush1.bf16.msra.mxu1 %v5749_v3  ;;  %v4737_v12 = vld [vmem:[#allocation5 + $0x170] ss:$8 sps:$4 sm:$0xff]   ;;  %v4742_v13 = vld [vmem:[#allocation5 + $0x184] ss:$8 sps:$4 sm:$0xff]   ;;  %v4764_v59 = vld [vmem:[#allocation5 + $0x200] ss:$8 sps:$4 sm:$0xff]  }
 0x13a   : > { %v536_v14 = vld [vmem:[%s5711_s14 + $0x1c0] sm:$0xff]  ;;  %v543_v15 = vld [vmem:[%s5711_s14 + $0x1f8] sm:$0xff]  ;;  %v570_v47 = vld [vmem:[%s5711_s14 + $0x2d0] sm:$0xff]  ;;  %s6369_s20 = sld [smem:[#allocation25_spill]] (%p6368_p11) }
 0x13b   : > { %v564_v36 = vld [vmem:[%s5711_s14 + $0x2a0] sm:$0xff]  ;;  %v563_v38 = vld [vmem:[%s5711_s14 + $0x298] sm:$0xff]  ;;  %v619_v48 = vpack.c.bf16 %v570_v47, %v570_v47  ;;  %v497_v57 = vld [vmem:[%s5711_s14 + $0x88] sm:$0xff] }
 0x13c   : > { %1255 = vmatpush1.bf16.msra.mxu0 %v4688_v16  ;;  %v551_v16 = vld [vmem:[%s5711_s14 + $0x238] sm:$0xff]  ;;  %v556_v37 = vld [vmem:[%s5711_s14 + $0x260] sm:$0xff]  ;;  %v518_v6 = vld [vmem:[%s5711_s14 + $0x130] sm:$0xff] }
 0x13d   : > { %1256 = vmatprep.subr.bf16.mxu0 %v4689_v17  ;;  %v558_v17 = vld [vmem:[%s5711_s14 + $0x270] sm:$0xff]  ;;  %v504_v58 = vld [vmem:[%s5711_s14 + $0xc0] sm:$0xff]  ;;  %v503_v1 = vld [vmem:[%s5711_s14 + $0xb8] sm:$0xff] }
 0x13e   : > { %v4754_v39 = vld [vmem:[#allocation5 + $0x1c4] ss:$8 sps:$4 sm:$0xff]   ;;  %v4770_v7 = vld [vmem:[#allocation5 + $0x220] ss:$8 sps:$4 sm:$0xff]  }
 0x13f   : > { %v4766_v56 = vld [vmem:[#allocation5 + $0x204] ss:$8 sps:$4 sm:$0xff]  }
 0x140   : > { %1257 = vmatpush1.bf16.msra.mxu0 %v4691_v18  ;;  %v4740_v18 = vld [vmem:[#allocation5 + $0x180] ss:$8 sps:$4 sm:$0xff]   ;;  %v4772_v2 = vld [vmem:[#allocation5 + $0x224] ss:$8 sps:$4 sm:$0xff]   ;;  %s3755_s27 = smul.u32 (%p6368_p11), 13, %s6369_s20 }
 0x141   : > { %1258 = vmatprep.subr.bf16.mxu0 %v4692_v19  ;;  %v4745_v19 = vld [vmem:[#allocation5 + $0x194] ss:$8 sps:$4 sm:$0xff]  }
 0x142   : > { %s3756_s30 = ssub.s32 (%p6368_p11), 25, %s3755_s27 }
 0x143   : > { %p3757_p13 = scmp.lt.s32.totalorder (%p6368_p11), %s3756_s30, 13 }
 0x144   : > { %1259 = vmatpush1.bf16.msra.mxu0 %v4694_v20  ;;  %v599_v20 = vpack.c.bf16 %v543_v15, %v536_v14  ;;  %v4778_v14 = vld [vmem:[#allocation5 + $0x244] ss:$8 sps:$4 sm:$0xff]   ;;  %v525_v15 = vld [vmem:[%s5711_s14 + $0x168] sm:$0xff] }
 0x145   : > { %1260 = vmatprep.subr.bf16.mxu0 %v4695_v21  ;;  %v607_v21 = vpack.c.bf16 %v558_v17, %v551_v16  ;;  %v532_v16 = vld [vmem:[%s5711_s14 + $0x1a0] sm:$0xff] }
 0x146   : > { %v4776_v17 = vld [vmem:[#allocation5 + $0x240] ss:$8 sps:$4 sm:$0xff]  }
 0x148   : > { %1261 = vmatpush1.bf16.msra.mxu0 %v4697_v22  ;;  %v4743_v22 = vld [vmem:[#allocation5 + $0x190] ss:$8 sps:$4 sm:$0xff]  }
 0x149   : > { %1262 = vmatprep.subr.bf16.mxu0 %v4698_v23  ;;  %v542_v23 = vld [vmem:[%s5711_s14 + $0x1f0] sm:$0xff] }
 0x14c   : > { %1263 = vmatpush1.bf16.msra.mxu0 %v4700_v24  ;;  %v549_v24 = vld [vmem:[%s5711_s14 + $0x228] sm:$0xff] }
 0x14d   : > { %1264 = vmatprep.subr.bf16.mxu0 %v4701_v25  ;;  %v4748_v25 = vld [vmem:[#allocation5 + $0x1a4] ss:$8 sps:$4 sm:$0xff]  }
 0x150   : > { %1265 = vmatpush1.bf16.msra.mxu0 %v4703_v26  ;;  %v550_v26 = vld [vmem:[%s5711_s14 + $0x230] sm:$0xff] }
 0x151   : > { %1266 = vmatprep.subr.bf16.mxu0 %v4704_v27  ;;  %v605_v27 = vpack.c.bf16 %v549_v24, %v542_v23  ;;  %v531_v23 = vld [vmem:[%s5711_s14 + $0x198] sm:$0xff] }
 0x152   : > { %v4784_v24 = vld [vmem:[#allocation5 + $0x264] ss:$8 sps:$4 sm:$0xff]  }
 0x154   : > { %1267 = vmatpush1.bf16.msra.mxu0 %v4706_v28  ;;  %v557_v28 = vld [vmem:[%s5711_s14 + $0x268] sm:$0xff] }
 0x155   : > { %1268 = vmatprep.subr.bf16.mxu0 %v4707_v29  ;;  %v565_v29 = vld [vmem:[%s5711_s14 + $0x2a8] sm:$0xff] }
 0x158   : > { %1269 = vmatpush1.bf16.msra.mxu0 %v4709_v30  ;;  %v5368_v30 = vmov 0  }
 0x159   : > { %1270 = vmatprep.subr.bf16.mxu0 %v4710_v31  ;;  %1617 = vmatprep.mubr.bf16.mxu1 %v5368_v30  ;;  %v4746_v31 = vld [vmem:[#allocation5 + $0x1a0] ss:$8 sps:$4 sm:$0xff]  }
 0x15a   : > { %4045 = vmatmul.mubr.msk.bf16.vlgmr.msra.gmra.mrb[0].mxu1 %vm1220_vm0, %v605_v27  ;;  %v4782_v27 = vld [vmem:[#allocation5 + $0x260] ss:$8 sps:$4 sm:$0xff]  }
 0x15b   : > { %1627 = vmatprep.mubr.bf16.mxu1 %v5368_v30 }
 0x15c   : > { %1271 = vmatpush1.bf16.msra.mxu0 %v4712_v32  ;;  %v4751_v32 = vld [vmem:[#allocation5 + $0x1b4] ss:$8 sps:$4 sm:$0xff]  }
 0x15d   : > { %1272 = vmatprep.subr.bf16.mxu0 %v4713_v33  ;;  %v606_v33 = vpack.c.bf16 %v557_v28, %v550_v26  ;;  %v546_v26 = vld [vmem:[%s5711_s14 + $0x210] sm:$0xff] }
 0x15e   : > { %v4787_v28 = vld [vmem:[#allocation5 + $0x274] ss:$8 sps:$4 sm:$0xff]  }
 0x160   : > { %1273 = vmatpush1.bf16.msra.mxu0 %v4715_v34  ;;  %v614_v34 = vpack.c.bf16 %v565_v29, %v565_v29 }
 0x161   : > { %1343 = vmatprep.subr.bf16.mxu0 %v4718_v35  ;;  %v4749_v35 = vld [vmem:[#allocation5 + $0x1b0] ss:$8 sps:$4 sm:$0xff]  }
 0x163   : > { %1275 = vmatmul.mubr.bf16.vlgmr.msra.gmra.mrb[0].mxu0 %v571_v40  ;;  %v483_v40 = vld [vmem:[%s5711_s14 + $0x18] sm:$0xff] }
 0x164   : > { %1344 = vmatpush1.bf16.msra.mxu0 %v4716_v41  ;;  %1284 = vmatprep.mubr.bf16.mxu0 %v579_v42  ;;  %v612_v41 = vpack.c.bf16 %v563_v38, %v556_v37  ;;  %v490_v42 = vld [vmem:[%s5711_s14 + $0x50] sm:$0xff]  ;;  %v560_v37 = vld [vmem:[%s5711_s14 + $0x280] sm:$0xff] }
 0x165   : > { %1345 = vmatprep.subr.bf16.mxu0 %v4721_v43  ;;  %v4752_v43 = vld [vmem:[#allocation5 + $0x1c0] ss:$8 sps:$4 sm:$0xff]   ;;  %v574_v46 = vpack.c.bf16 %v490_v42, %v483_v40  ;;  %v4791_v42 = vld [vmem:[#allocation5 + $0x290] ss:$8 sps:$4 sm:$0xff]  }
 0x166   : > { %4046 = vmatmul.mubr.msk.bf16.gmra.mrb[4].mxu1 %vm1220_vm0, %v612_v41  ;;  %v4793_v41 = vld [vmem:[#allocation5 + $0x294] ss:$8 sps:$4 sm:$0xff]  }
 0x167   : > { %1637 = vmatprep.mubr.bf16.mxu1 %v5368_v30 }
 0x168   : > { %1346 = vmatpush1.bf16.msra.mxu0 %v4719_v44  ;;  %v4757_v44 = vld [vmem:[#allocation5 + $0x1d4] ss:$8 sps:$4 sm:$0xff]  }
 0x169   : > { %1347 = vmatprep.subr.bf16.mxu0 %v4724_v45  ;;  %v613_v45 = vpack.c.bf16 %v564_v36, %v564_v36  ;;  %v553_v36 = vld [vmem:[%s5711_s14 + $0x248] sm:$0xff] }
 0x16a   : > { %v609_v40 = vpack.c.bf16 %v560_v37, %v553_v36  ;;  %v568_v37 = vld [vmem:[%s5711_s14 + $0x2c0] sm:$0xff] }
 0x16b   : > { %1285 = vmatmul.mubr.bf16.gmra.mrb[4].mxu0 %v578_v50  ;;  %v4760_v50 = vld [vmem:[#allocation5 + $0x1e4] ss:$8 sps:$4 sm:$0xff]  }
 0x16c   : > { %1348 = vmatpush1.bf16.msra.mxu0 %v4722_v51  ;;  %1294 = vmatprep.mubr.bf16.mxu0 %v586_v52  ;;  %v4758_v51 = vld [vmem:[#allocation5 + $0x1e0] ss:$8 sps:$4 sm:$0xff]   ;;  %v4763_v52 = vld [vmem:[#allocation5 + $0x1f4] ss:$8 sps:$4 sm:$0xff]  }
 0x16d   : > { %1349 = vmatprep.subr.bf16.mxu0 %v4727_v53  ;;  %v4761_v53 = vld [vmem:[#allocation5 + $0x1f0] ss:$8 sps:$4 sm:$0xff]  }
 0x16e   : > { %4047 = vmatmul.mubr.msk.bf16.gmra.mrb[8].mxu1 %vm1220_vm0, %v619_v48  ;;  %v4794_v48 = vld [vmem:[#allocation5 + $0x2a0] ss:$8 sps:$4 sm:$0xff]  }
 0x170   : > { %1350 = vmatpush1.bf16.msra.mxu0 %v4725_v54  ;;  %v482_v54 = vld [vmem:[%s5711_s14 + $0x10] sm:$0xff] }
 0x171   : > { %1351 = vmatprep.subr.bf16.mxu0 %v4730_v55  ;;  %v489_v55 = vld [vmem:[%s5711_s14 + $0x48] sm:$0xff] }
 0x173   : > { %1295 = vmatmul.mubr.bf16.gmra.mrb[8].mxu0 %v585_v60  ;;  %v573_v60 = vpack.c.bf16 %v489_v55, %v482_v54  ;;  %v485_v54 = vld [vmem:[%s5711_s14 + $0x28] sm:$0xff]  ;;  %v492_v55 = vld [vmem:[%s5711_s14 + $0x60] sm:$0xff] }
 0x174   : > { %1352 = vmatpush1.bf16.msra.mxu0 %v4728_v61  ;;  %1304 = vmatprep.mubr.bf16.mxu0 %v593_v62  ;;  %v4769_v61 = vld [vmem:[#allocation5 + $0x214] ss:$8 sps:$4 sm:$0xff]   ;;  %v581_v62 = vpack.c.bf16 %v504_v58, %v497_v57  ;;  %v4800_v57 = vld [vmem:[#allocation5 + $0x2c0] ss:$8 sps:$4 sm:$0xff]   ;;  %v576_v58 = vpack.c.bf16 %v492_v55, %v485_v54 }
 0x175   : > { %1353 = vmatprep.subr.bf16.mxu0 %v4733_v63  ;;  %v4767_v63 = vld [vmem:[#allocation5 + $0x210] ss:$8 sps:$4 sm:$0xff]  }
 0x178   : > { %1354 = vmatpush1.bf16.msra.mxu0 %v4731_v0  ;;  %v496_v0 = vld [vmem:[%s5711_s14 + $0x80] sm:$0xff] }
 0x179   : > { %1355 = vmatprep.subr.bf16.mxu0 %v4736_v5  ;;  %v511_v5 = vld [vmem:[%s5711_s14 + $0xf8] sm:$0xff] }
 0x17b   : > { %1305 = vmatmul.mubr.bf16.gmra.mrb[12].mxu0 %v592_v8  ;;  %v4775_v8 = vld [vmem:[#allocation5 + $0x234] ss:$8 sps:$4 sm:$0xff]  }
 0x17c   : > { %1356 = vmatpush1.bf16.msra.mxu0 %v4734_v9  ;;  %1314 = vmatprep.mubr.bf16.mxu0 %v600_v11  ;;  %v580_v9 = vpack.c.bf16 %v503_v1, %v496_v0  ;;  %v4773_v11 = vld [vmem:[#allocation5 + $0x230] ss:$8 sps:$4 sm:$0xff]  }
 0x17d   : > { %1357 = vmatprep.subr.bf16.mxu0 %v4739_v10  ;;  %v588_v10 = vpack.c.bf16 %v518_v6, %v511_v5  ;;  %v4809_v0 = vld [vmem:[#allocation5 + $0x2f0] ss:$8 sps:$4 sm:$0xff]   ;;  %v499_v5 = vld [vmem:[%s5711_s14 + $0x98] sm:$0xff] }
 0x17e   : > { %v484_v1 = vld [vmem:[%s5711_s14 + $0x20] sm:$0xff]  ;;  %v506_v6 = vld [vmem:[%s5711_s14 + $0xd0] sm:$0xff] }
 0x180   : > { %1358 = vmatpush1.bf16.msra.mxu0 %v4737_v12  ;;  %v510_v12 = vld [vmem:[%s5711_s14 + $0xf0] sm:$0xff] }
 0x181   : > { %1359 = vmatprep.subr.bf16.mxu0 %v4742_v13  ;;  %v517_v13 = vld [vmem:[%s5711_s14 + $0x128] sm:$0xff] }
 0x183   : > { %1315 = vmatmul.mubr.bf16.gmra.mrb[16].mxu0 %v599_v20  ;;  %v595_v20 = vpack.c.bf16 %v532_v16, %v525_v15  ;;  %v512_v15 = vld [vmem:[%s5711_s14 + $0x100] sm:$0xff]  ;;  %v519_v16 = vld [vmem:[%s5711_s14 + $0x138] sm:$0xff] }
 0x184   : > { %1360 = vmatpush1.bf16.msra.mxu0 %v4740_v18  ;;  %1324 = vmatprep.mubr.bf16.mxu0 %v607_v21  ;;  %v4781_v18 = vld [vmem:[#allocation5 + $0x254] ss:$8 sps:$4 sm:$0xff]   ;;  %v4779_v21 = vld [vmem:[#allocation5 + $0x250] ss:$8 sps:$4 sm:$0xff]  }
 0x185   : > { %1361 = vmatprep.subr.bf16.mxu0 %v4745_v19  ;;  %v587_v19 = vpack.c.bf16 %v517_v13, %v510_v12  ;;  %v520_v12 = vld [vmem:[%s5711_s14 + $0x140] sm:$0xff] }
 0x188   : > { %1362 = vmatpush1.bf16.msra.mxu0 %v4743_v22  ;;  %v524_v22 = vld [vmem:[%s5711_s14 + $0x160] sm:$0xff] }
 0x189   : > { %1363 = vmatprep.subr.bf16.mxu0 %v4748_v25  ;;  %v539_v25 = vld [vmem:[%s5711_s14 + $0x1d8] sm:$0xff]  ;;  %v594_v29 = vpack.c.bf16 %v531_v23, %v524_v22  ;;  %v548_v22 = vld [vmem:[%s5711_s14 + $0x220] sm:$0xff] }
 0x18b   : > { %1325 = vmatmul.mubr.bf16.gmra.mrb[20].mxu0 %v606_v33  ;;  %v538_v33 = vld [vmem:[%s5711_s14 + $0x1d0] sm:$0xff] }
 0x18c   : > { %1364 = vmatpush1.bf16.msra.mxu0 %v4746_v31  ;;  %1334 = vmatprep.mubr.bf16.mxu0 %v614_v34  ;;  %v602_v31 = vpack.c.bf16 %v546_v26, %v539_v25  ;;  %v545_v34 = vld [vmem:[%s5711_s14 + $0x208] sm:$0xff]  ;;  %v540_v25 = vld [vmem:[%s5711_s14 + $0x1e0] sm:$0xff]  ;;  %v547_v26 = vld [vmem:[%s5711_s14 + $0x218] sm:$0xff] }
 0x18d   : > { %1365 = vmatprep.subr.bf16.mxu0 %v4751_v32  ;;  %v4785_v32 = vld [vmem:[#allocation5 + $0x270] ss:$8 sps:$4 sm:$0xff]   ;;  %v601_v38 = vpack.c.bf16 %v545_v34, %v538_v33 }
 0x18e   : > { %v561_v33 = vld [vmem:[%s5711_s14 + $0x288] sm:$0xff] }
 0x18f   : > { %v569_v34 = vld [vmem:[%s5711_s14 + $0x2c8] sm:$0xff] }
 0x190   : > { %1366 = vmatpush1.bf16.msra.mxu0 %v4749_v35  ;;  %v4790_v35 = vld [vmem:[#allocation5 + $0x284] ss:$8 sps:$4 sm:$0xff]   ;;  %v618_v36 = vpack.c.bf16 %v569_v34, %v569_v34 }
 0x191   : > { %1367 = vmatprep.subr.bf16.mxu0 %v4754_v39  ;;  %v4788_v39 = vld [vmem:[#allocation5 + $0x280] ss:$8 sps:$4 sm:$0xff]  }
 0x193   : > { %1335 = vmatmul.mubr.bf16.gmra.mrb[24].mxu0 %v613_v45  ;;  %v4796_v45 = vld [vmem:[#allocation5 + $0x2a4] ss:$8 sps:$4 sm:$0xff]  }
 0x194   : > { %1368 = vmatpush1.bf16.msra.mxu0 %v4752_v43  ;;  %1375 = vmatprep.mubr.bf16.mxu0 %v574_v46  ;;  %v552_v43 = vld [vmem:[%s5711_s14 + $0x240] sm:$0xff]  ;;  %v567_v46 = vld [vmem:[%s5711_s14 + $0x2b8] sm:$0xff] }
 0x195   : > { %1369 = vmatprep.subr.bf16.mxu0 %v4757_v44  ;;  %v559_v44 = vld [vmem:[%s5711_s14 + $0x278] sm:$0xff] }
 0x196   : > { %v608_v47 = vpack.c.bf16 %v559_v44, %v552_v43  ;;  %v507_v43 = vld [vmem:[%s5711_s14 + $0xd8] sm:$0xff] }
 0x198   : > { %1370 = vmatpush1.bf16.msra.mxu0 %v4755_v49  ;;  %v616_v49 = vpack.c.bf16 %v567_v46, %v567_v46  ;;  %v521_v46 = vld [vmem:[%s5711_s14 + $0x148] sm:$0xff] }
 0x199   : > { %1371 = vmatprep.subr.bf16.mxu0 %v4760_v50  ;;  %v4799_v50 = vld [vmem:[#allocation5 + $0x2b4] ss:$8 sps:$4 sm:$0xff]  }
 0x19c   : > { %1372 = vmatpush1.bf16.msra.mxu0 %v4758_v51  ;;  %v4797_v51 = vld [vmem:[#allocation5 + $0x2b0] ss:$8 sps:$4 sm:$0xff]  }
 0x19d   : > { %1373 = vmatprep.subr.bf16.mxu0 %v4763_v52  ;;  %v566_v52 = vld [vmem:[%s5711_s14 + $0x2b0] sm:$0xff] }
 0x1a0   : > { %1374 = vmatpush1.bf16.msra.mxu0 %v4761_v53  ;;  %v4802_v53 = vld [vmem:[#allocation5 + $0x2c4] ss:$8 sps:$4 sm:$0xff]  }
 0x1a1   : > { %1444 = vmatprep.subr.bf16.mxu0 %v4766_v56  ;;  %v615_v56 = vpack.c.bf16 %v566_v52, %v566_v52  ;;  %v4816_v52 = vld [vmem:[#allocation8] sm:$0xff]  }
 0x1a3   : > { %1376 = vmatmul.mubr.bf16.vlgmr.msra.gmra.mrb[0].mxu0 %v573_v60  ;;  %v4803_v60 = vld [vmem:[#allocation5 + $0x2d0] ss:$8 sps:$4 sm:$0xff]  }
 0x1a4   : > { %1445 = vmatpush1.bf16.msra.mxu0 %v4764_v59  ;;  %1385 = vmatprep.mubr.bf16.mxu0 %v581_v62  ;;  %v4805_v59 = vld [vmem:[#allocation5 + $0x2d4] ss:$8 sps:$4 sm:$0xff]   ;;  %v4806_v62 = vld [vmem:[#allocation5 + $0x2e0] ss:$8 sps:$4 sm:$0xff]  }
 0x1a5   : > { %1446 = vmatprep.subr.bf16.mxu0 %v4769_v61  ;;  %v4808_v61 = vld [vmem:[#allocation5 + $0x2e4] ss:$8 sps:$4 sm:$0xff]  }
 0x1a8   : > { %1447 = vmatpush1.bf16.msra.mxu0 %v4767_v63  ;;  %v4811_v63 = vld [vmem:[#allocation5 + $0x2f4] ss:$8 sps:$4 sm:$0xff]  }
 0x1a9   : > { %1448 = vmatprep.subr.bf16.mxu0 %v4772_v2  ;;  %v491_v2 = vld [vmem:[%s5711_s14 + $0x58] sm:$0xff] }
 0x1ab   : > { %1386 = vmatmul.mubr.bf16.gmra.mrb[4].mxu0 %v580_v9  ;;  %v498_v9 = vld [vmem:[%s5711_s14 + $0x90] sm:$0xff] }
 0x1ac   : > { %1449 = vmatpush1.bf16.msra.mxu0 %v4770_v7  ;;  %1395 = vmatprep.mubr.bf16.mxu0 %v588_v10  ;;  %v575_v7 = vpack.c.bf16 %v491_v2, %v484_v1  ;;  %v505_v10 = vld [vmem:[%s5711_s14 + $0xc8] sm:$0xff] }
 0x1ad   : > { %1450 = vmatprep.subr.bf16.mxu0 %v4775_v8  ;;  %v583_v8 = vpack.c.bf16 %v506_v6, %v499_v5  ;;  %v582_v13 = vpack.c.bf16 %v505_v10, %v498_v9  ;;  %v4822_v2 = vld [vmem:[#allocation8 + $0x18] sm:$0xff]   ;;  %v4823_v5 = vld [vmem:[#allocation8 + $0x60] sm:$0xff]   ;;  %v4825_v9 = vld [vmem:[#allocation8 + $0x68] sm:$0xff]  }
 0x1ae   : > { %v4824_v6 = vld [vmem:[#allocation8 + $0x20] sm:$0xff]  }
 0x1b0   : > { %1451 = vmatpush1.bf16.msra.mxu0 %v4773_v11  ;;  %v513_v11 = vld [vmem:[%s5711_s14 + $0x108] sm:$0xff] }
 0x1b1   : > { %1452 = vmatprep.subr.bf16.mxu0 %v4778_v14  ;;  %v590_v14 = vpack.c.bf16 %v520_v12, %v513_v11  ;;  %v4826_v11 = vld [vmem:[#allocation8 + $0x28] sm:$0xff]  }
 0x1b3   : > { %1396 = vmatmul.mubr.bf16.gmra.mrb[8].mxu0 %v587_v19  ;;  %v526_v19 = vld [vmem:[%s5711_s14 + $0x170] sm:$0xff] }
 0x1b4   : > { %1453 = vmatpush1.bf16.msra.mxu0 %v4776_v17  ;;  %1405 = vmatprep.mubr.bf16.mxu0 %v595_v20  ;;  %v589_v17 = vpack.c.bf16 %v519_v16, %v512_v15  ;;  %v533_v20 = vld [vmem:[%s5711_s14 + $0x1a8] sm:$0xff] }
 0x1b5   : > { %1454 = vmatprep.subr.bf16.mxu0 %v4781_v18  ;;  %v596_v23 = vpack.c.bf16 %v533_v20, %v526_v19  ;;  %v4829_v15 = vld [vmem:[#allocation8 + $0x78] sm:$0xff]  }
 0x1b6   : > { %v4830_v16 = vld [vmem:[#allocation8 + $0x38] sm:$0xff]  }
 0x1b7   : > { %v718_v19 = vld [vmem:[#allocation7] sm:$0x3] }
 0x1b8   : > { %1455 = vmatpush1.bf16.msra.mxu0 %v4779_v21  ;;  %v541_v21 = vld [vmem:[%s5711_s14 + $0x1e8] sm:$0xff] }
 0x1b9   : > { %1456 = vmatprep.subr.bf16.mxu0 %v4784_v24  ;;  %v604_v24 = vpack.c.bf16 %v548_v22, %v541_v21 }
 0x1bb   : > { %1406 = vmatmul.mubr.bf16.gmra.mrb[12].mxu0 %v594_v29  ;;  %v603_v29 = vpack.c.bf16 %v547_v26, %v540_v25 }
 0x1bc   : > { %1457 = vmatpush1.bf16.msra.mxu0 %v4782_v27  ;;  %1415 = vmatprep.mubr.bf16.mxu0 %v602_v31  ;;  %v555_v27 = vld [vmem:[%s5711_s14 + $0x258] sm:$0xff] }
 0x1bd   : > { %1458 = vmatprep.subr.bf16.mxu0 %v4787_v28  ;;  %v562_v28 = vld [vmem:[%s5711_s14 + $0x290] sm:$0xff] }
 0x1be   : > { %v611_v31 = vpack.c.bf16 %v562_v28, %v555_v27 }
 0x1c0   : > { %1459 = vmatpush1.bf16.msra.mxu0 %v4785_v32  ;;  %v554_v32 = vld [vmem:[%s5711_s14 + $0x250] sm:$0xff] }
 0x1c1   : > { %1460 = vmatprep.subr.bf16.mxu0 %v4790_v35  ;;  %v610_v35 = vpack.c.bf16 %v561_v33, %v554_v32 }
 0x1c3   : > { %1416 = vmatmul.mubr.bf16.gmra.mrb[16].mxu0 %v601_v38  ;;  %v617_v38 = vpack.c.bf16 %v568_v37, %v568_v37 }
 0x1c4   : > { %1461 = vmatpush1.bf16.msra.mxu0 %v4788_v39  ;;  %1425 = vmatprep.mubr.bf16.mxu0 %v609_v40  ;;  %v486_v39 = vld [vmem:[%s5711_s14 + $0x30] sm:$0xff]  ;;  %v493_v40 = vld [vmem:[%s5711_s14 + $0x68] sm:$0xff] }
 0x1c5   : > { %1462 = vmatprep.subr.bf16.mxu0 %v4793_v41  ;;  %v577_v41 = vpack.c.bf16 %v493_v40, %v486_v39 }
 0x1c8   : > { %1463 = vmatpush1.bf16.msra.mxu0 %v4791_v42  ;;  %v500_v42 = vld [vmem:[%s5711_s14 + $0xa0] sm:$0xff] }
 0x1c9   : > { %1464 = vmatprep.subr.bf16.mxu0 %v4796_v45  ;;  %v584_v44 = vpack.c.bf16 %v507_v43, %v500_v42  ;;  %v514_v45 = vld [vmem:[%s5711_s14 + $0x110] sm:$0xff] }
 0x1cb   : > { %1426 = vmatmul.mubr.bf16.gmra.mrb[20].mxu0 %v608_v47  ;;  %v591_v47 = vpack.c.bf16 %v521_v46, %v514_v45 }
 0x1cc   : > { %1465 = vmatpush1.bf16.msra.mxu0 %v4794_v48  ;;  %1435 = vmatprep.mubr.bf16.mxu0 %v616_v49  ;;  %v528_v48 = vld [vmem:[%s5711_s14 + $0x180] sm:$0xff]  ;;  %v535_v49 = vld [vmem:[%s5711_s14 + $0x1b8] sm:$0xff] }
 0x1cd   : > { %1466 = vmatprep.subr.bf16.mxu0 %v4799_v50  ;;  %v598_v50 = vpack.c.bf16 %v535_v49, %v528_v48 }
 0x1d0   : > { %1467 = vmatpush1.bf16.msra.mxu0 %v4797_v51  ;;  %v4815_v51 = vld [vmem:[#allocation8 + $0x40] sm:$0xff]  }
 0x1d1   : > { %1468 = vmatprep.subr.bf16.mxu0 %v4802_v53  ;;  %4304 = vmatprep.subr.bf16.mxu1 %v4815_v51 }
 0x1d2   : > { %4305 = vmatpush3.bf16.msra.mxu1 %v4816_v52 }
 0x1d3   : > { %1436 = vmatmul.mubr.bf16.gmra.mrb[24].mxu0 %v615_v56  ;;  %v4817_v56 = vld [vmem:[#allocation8 + $0x48] sm:$0xff]  }
 0x1d4   : > { %1469 = vmatpush1.bf16.msra.mxu0 %v4800_v57  ;;  %1476 = vmatprep.mubr.bf16.mxu0 %v576_v58  ;;  %v4818_v58 = vld [vmem:[#allocation8 + $0x8] sm:$0xff]  }
 0x1d5   : > { %1470 = vmatprep.subr.bf16.mxu0 %v4805_v59  ;;  %4306 = vmatprep.subr.bf16.mxu1 %v4817_v56  ;;  %v4819_v59 = vld [vmem:[#allocation8 + $0x50] sm:$0xff]  }
 0x1d6   : > { %4307 = vmatpush3.bf16.msra.mxu1 %v4818_v58 }
 0x1d7   : > { %4308 = vmatprep.subr.bf16.mxu1 %v4819_v59 }
 0x1d8   : > { %1471 = vmatpush1.bf16.msra.mxu0 %v4803_v60  ;;  %v4820_v60 = vld [vmem:[#allocation8 + $0x10] sm:$0xff]  }
 0x1d9   : > { %1472 = vmatprep.subr.bf16.mxu0 %v4808_v61 }
 0x1da   : > { %4309 = vmatpush3.bf16.msra.mxu1 %v4820_v60 }
 0x1dc   : > { %1473 = vmatpush1.bf16.msra.mxu0 %v4806_v62 }
 0x1dd   : > { %1474 = vmatprep.subr.bf16.mxu0 %v4811_v63 }
 0x1e0   : > { %1475 = vmatpush1.bf16.msra.mxu0 %v4809_v0  ;;  %v4821_v0 = vld [vmem:[#allocation8 + $0x58] sm:$0xff]  }
 0x1e1   : > { %1545 = vmatprep.subr.bf16.mxu0 %v5751_v4  ;;  %v527_v4 = vld [vmem:[%s5711_s14 + $0x178] sm:$0xff]  ;;  %4310 = vmatprep.subr.bf16.mxu1 %v4821_v0 }
 0x1e2   : > { %4311 = vmatpush3.bf16.msra.mxu1 %v4822_v2 }
 0x1e3   : > { %1477 = vmatmul.mubr.bf16.vlgmr.msra.gmra.mrb[0].mxu0 %v575_v7  ;;  %4312 = vmatprep.subr.bf16.mxu1 %v4823_v5 }
 0x1e4   : > { %1546 = vmatpush1.bf16.msra.mxu0 %v5749_v3  ;;  %1486 = vmatprep.mubr.bf16.mxu0 %v583_v8  ;;  %v534_v3 = vld [vmem:[%s5711_s14 + $0x1b0] sm:$0xff] }
 0x1e5   : > { %v597_v18 = vpack.c.bf16 %v534_v3, %v527_v4  ;;  %v4833_v4 = vld [vmem:[#allocation11 + $0x4] ss:$8 sps:$4 sm:$0xff]   ;;  %v720_v3 = vlaneseq }
 0x1e6   : > { %4313 = vmatpush3.bf16.msra.mxu1 %v4824_v6 }
 0x1e7   : > { %4314 = vmatprep.subr.bf16.mxu1 %v4825_v9 }
 0x1ea   : > { %4315 = vmatpush3.bf16.msra.mxu1 %v4826_v11 }
 0x1eb   : > { %1487 = vmatmul.mubr.bf16.gmra.mrb[4].mxu0 %v582_v13  ;;  %v4827_v13 = vld [vmem:[#allocation8 + $0x70] sm:$0xff]  }
 0x1ec   : > { %1496 = vmatprep.mubr.bf16.mxu0 %v590_v14  ;;  %v4828_v14 = vld [vmem:[#allocation8 + $0x30] sm:$0xff]   ;;  %4316 = vmatprep.subr.bf16.mxu1 %v4827_v13 }
 0x1ee   : > { %4317 = vmatpush3.bf16.msra.mxu1 %v4828_v14 }
 0x1ef   : > { %4318 = vmatprep.subr.bf16.mxu1 %v4829_v15 }
 0x1f2   : > { %4319 = vmatpush3.bf16.msra.mxu1 %v4830_v16 }
 0x1f3   : > { %1497 = vmatmul.mubr.bf16.gmra.mrb[8].mxu0 %v589_v17  ;;  %2037 = vmatprep.subr.bf16.mxu1 %v4833_v4  ;;  %v5856_v17 = vshrl.u32 %v720_v3, 7 }
 0x1f4   : > { %1506 = vmatprep.mubr.bf16.mxu0 %v597_v18 }
 0x1f5   : > { %v5859_v18 = vsub.s32 0, %v5856_v17  ;;  %v5862_v20 = vsub.s32 1, %v5856_v17 }
 0x1f7   : > { %v5865_v21 = vrot.slane %v718_v19, %v5859_v18  ;;  %v5868_v22 = vrot.slane %v718_v19, %v5862_v20 }
 0x1fb   : > { %1507 = vmatmul.mubr.bf16.gmra.mrb[12].mxu0 %v596_v23 }
 0x1fc   : > { %1516 = vmatprep.mubr.bf16.mxu0 %v604_v24 }
 0x203   : > { %1517 = vmatmul.mubr.bf16.gmra.mrb[16].mxu0 %v603_v29 }
 0x204   : > { %1526 = vmatprep.mubr.bf16.mxu0 %v611_v31 }
 0x20b   : > { %1527 = vmatmul.mubr.bf16.gmra.mrb[20].mxu0 %v610_v35 }
 0x20c   : > { %1536 = vmatprep.mubr.bf16.mxu0 %v618_v36 }
 0x213   : > { %1537 = vmatmul.mubr.bf16.gmra.mrb[24].mxu0 %v617_v38 }
 0x214   : > { %1577 = vmatprep.mubr.bf16.mxu0 %v5368_v30 }
 0x21b   : > { %4041 = vmatmul.mubr.msk.bf16.vlgmr.msra.gmra.mrb[0].mxu0 %vm1220_vm0, %v577_v41 }
 0x21c   : > { %1587 = vmatprep.mubr.bf16.mxu0 %v5368_v30 }
 0x223   : > { %4042 = vmatmul.mubr.msk.bf16.gmra.mrb[4].mxu0 %vm1220_vm0, %v584_v44 }
 0x224   : > { %1597 = vmatprep.mubr.bf16.mxu0 %v5368_v30 }
 0x22b   : > { %4043 = vmatmul.mubr.msk.bf16.gmra.mrb[8].mxu0 %vm1220_vm0, %v591_v47 }
 0x22c   : > { %1607 = vmatprep.mubr.bf16.mxu0 %v5368_v30 }
 0x22d   : > { %v1619_v53 = vpop.f32.mrb[0].mxu1 }
 0x22e   : > { %v1621_v54 = vpop.f32.mrb[1].mxu1 }
 0x22f   : > { %v1623_v55 = vpop.f32.mrb[2].mxu1 }
 0x230   : > { %v1625_v57 = vpop.f32.mrb[3].mxu1 }
 0x233   : > { %4044 = vmatmul.mubr.msk.bf16.gmra.mrb[12].mxu0 %vm1220_vm0, %v598_v50 }
 0x239   : > { %v5846_v61 = vpop.f32.mrb[4].mxu1 }
 0x23a   : > { %v5848_v62 = vpop.f32.mrb[5].mxu1 }
 0x23b   : > { %v5850_v63 = vpop.f32.mrb[6].mxu1 }
 0x23c   : > { %v1635_v1 = vpop.f32.mrb[7].mxu1 }
 0x241   : > { %v5852_v7 = vpop.f32.mrb[8].mxu1 }
 0x242   : > { %v5854_v8 = vpop.f32.mrb[9].mxu1 }
 0x243   : > { %v1643_v10 = vpop.f32.mrb[10].mxu1 }
 0x244   : > { %v1644_v12 = vpop.f32.mrb[11].mxu1 }
 0x2d6   : > { %v1518_v23 = vpop.f32.mrb[16].mxu0 }
 0x2d7   : > { %v4438_v24 = vadd.f32 %v1518_v23, %v5865_v21  ;;  %v1520_v25 = vpop.f32.mrb[17].mxu0 }
 0x2d8   : > { %v4440_v26 = vadd.f32 %v1520_v25, %v5868_v22  ;;  %v1522_v27 = vpop.f32.mrb[18].mxu0 }
 0x2d9   : > { %v4442_v28 = vadd.f32 %v1522_v27, %v5865_v21  ;;  %v4439_v29 = vadd.f32 %v4438_v24, %v1619_v53  ;;  %v1524_v31 = vpop.f32.mrb[19].mxu0  ;;  %v4831_v24 = vld [vmem:[#allocation11] ss:$8 sps:$4 sm:$0xff]   ;;  %v4836_v27 = vld [vmem:[#allocation11 + $0x14] ss:$8 sps:$4 sm:$0xff]  }
 0x2da   : > { %v4444_v32 = vadd.f32 %v1524_v31, %v5868_v22  ;;  %v4441_v33 = vadd.f32 %v4440_v26, %v1621_v54 }
 0x2db   : > { %v4443_v34 = vadd.f32 %v4442_v28, %v1623_v55  ;;  %v1662_v36 = vmax.f32 %v4439_v29, 0.0 }
 0x2dc   : > { %v4445_v35 = vadd.f32 %v4444_v32, %v1625_v57  ;;  %v1663_v38 = vmax.f32 %v4441_v33, 0.0 }
 0x2dd   : > { %v1664_v37 = vmax.f32 %v4443_v34, 0.0  ;;  %v4834_v34 = vld [vmem:[#allocation11 + $0x10] ss:$8 sps:$4 sm:$0xff]  }
 0x2de   : > { %v1665_v39 = vmax.f32 %v4445_v35, 0.0  ;;  %v1528_v40 = vpop.f32.mrb[20].mxu0 }
 0x2df   : > { %v5874_v41 = vpack.c.bf16 %v1664_v37, %v1662_v36  ;;  %v4446_v42 = vadd.f32 %v1528_v40, %v5865_v21  ;;  %v1530_v43 = vpop.f32.mrb[21].mxu0  ;;  %v4839_v37 = vld [vmem:[#allocation11 + $0x24] ss:$8 sps:$4 sm:$0xff]  }
 0x2e0   : > { %v5877_v44 = vpack.c.bf16 %v1665_v39, %v1663_v38  ;;  %v4448_v45 = vadd.f32 %v1530_v43, %v5868_v22  ;;  %v1532_v46 = vpop.f32.mrb[22].mxu0 }
 0x2e1   : > { %v4450_v47 = vadd.f32 %v1532_v46, %v5865_v21  ;;  %v4447_v48 = vadd.f32 %v4446_v42, %v5846_v61  ;;  %v1534_v49 = vpop.f32.mrb[23].mxu0 }
 0x2e2   : > { %v4452_v50 = vadd.f32 %v1534_v49, %v5868_v22  ;;  %v4449_v51 = vadd.f32 %v4448_v45, %v5848_v62  ;;  %v4837_v45 = vld [vmem:[#allocation11 + $0x20] ss:$8 sps:$4 sm:$0xff]  }
 0x2e3   : > { %v4451_v52 = vadd.f32 %v4450_v47, %v5850_v63  ;;  %v1666_v54 = vmax.f32 %v4447_v48, 0.0  ;;  %v4842_v48 = vld [vmem:[#allocation11 + $0x34] ss:$8 sps:$4 sm:$0xff]  }
 0x2e4   : > { %v4453_v53 = vadd.f32 %v4452_v50, %v1635_v1  ;;  %v1667_v56 = vmax.f32 %v4449_v51, 0.0 }
 0x2e5   : > { %v1668_v55 = vmax.f32 %v4451_v52, 0.0 }
 0x2e6   : > { %v1669_v57 = vmax.f32 %v4453_v53, 0.0  ;;  %v1538_v58 = vpop.f32.mrb[24].mxu0 }
 0x2e7   : > { %v5885_v59 = vpack.c.bf16 %v1668_v55, %v1666_v54  ;;  %v4454_v60 = vadd.f32 %v1538_v58, %v5865_v21  ;;  %v1540_v0 = vpop.f32.mrb[25].mxu0  ;;  %v4840_v54 = vld [vmem:[#allocation11 + $0x30] ss:$8 sps:$4 sm:$0xff]  }
 0x2e8   : > { %v5888_v2 = vpack.c.bf16 %v1669_v57, %v1667_v56  ;;  %v4456_v61 = vadd.f32 %v1540_v0, %v5868_v22  ;;  %v1542_v5 = vpop.f32.mrb[26].mxu0  ;;  %v4845_v57 = vld [vmem:[#allocation11 + $0x44] ss:$8 sps:$4 sm:$0xff]  }
 0x2e9   : > { %v5892_v62 = vadd.f32 %v4454_v60, %v5852_v7  ;;  %v1543_v63 = vpop.f32.mrb[27].mxu0 }
 0x2ea   : > { %v5895_v1 = vadd.f32 %v4456_v61, %v5854_v8  ;;  %v4843_v63 = vld [vmem:[#allocation11 + $0x40] ss:$8 sps:$4 sm:$0xff]  }
 0x2ee   : > { %v1579_v6 = vpop.f32.mrb[0].mxu0 }
 0x2ef   : > { %v4422_v9 = vadd.f32 %v1579_v6, %v5865_v21  ;;  %v1581_v10 = vpop.f32.mrb[1].mxu0 }
 0x2f0   : > { %v4423_v11 = vadd.f32 %v1581_v10, %v5868_v22  ;;  %v1583_v12 = vpop.f32.mrb[2].mxu0  ;;  %v4848_v10 = vld [vmem:[#allocation11 + $0x54] ss:$8 sps:$4 sm:$0xff]  }
 0x2f1   : > { %v4424_v13 = vadd.f32 %v1583_v12, %v5865_v21  ;;  %v1585_v14 = vpop.f32.mrb[3].mxu0  ;;  %v1646_v16 = vmax.f32 %v4422_v9, 0.0 }
 0x2f2   : > { %v4425_v15 = vadd.f32 %v1585_v14, %v5868_v22  ;;  %v1647_v7 = vmax.f32 %v4423_v11, 0.0 }
 0x2f3   : > { %v1648_v4 = vmax.f32 %v4424_v13, 0.0 }
 0x2f4   : > { %v1649_v3 = vmax.f32 %v4425_v15, 0.0 }
 0x2f5   : > { %v1672_v19 = vpack.c.bf16 %v1648_v4, %v1646_v16  ;;  %v4846_v16 = vld [vmem:[#allocation11 + $0x50] ss:$8 sps:$4 sm:$0xff]  }
 0x2f6   : > { %v1673_v23 = vpack.c.bf16 %v1649_v3, %v1647_v7  ;;  %v1589_v8 = vpop.f32.mrb[4].mxu0  ;;  %v4851_v3 = vld [vmem:[#allocation11 + $0x64] ss:$8 sps:$4 sm:$0xff]  }
 0x2f7   : > { %v4426_v25 = vadd.f32 %v1589_v8, %v5865_v21  ;;  %v1591_v26 = vpop.f32.mrb[5].mxu0 }
 0x2f8   : > { %v4427_v28 = vadd.f32 %v1591_v26, %v5868_v22  ;;  %v1593_v29 = vpop.f32.mrb[6].mxu0  ;;  %1853 = vmatprep.mubr.bf16.mxu1 %v1673_v23  ;;  %v1670_v26 = vmax.f32 %v5892_v62, 0.0  ;;  %v4893_v62 = vld [vmem:[#allocation14 + $0x88] ss:$28 sps:$4 sm:$0xff]  }
 0x2f9   : > { %v4428_v31 = vadd.f32 %v1593_v29, %v5865_v21  ;;  %v1595_v32 = vpop.f32.mrb[7].mxu0  ;;  %1854 = vmatmul.mubr.bf16.vlgmr.msra.gmra.mrb[12].mxu1 %v1672_v19  ;;  %v1650_v35 = vmax.f32 %v4426_v25, 0.0  ;;  %v4849_v25 = vld [vmem:[#allocation11 + $0x60] ss:$8 sps:$4 sm:$0xff]   ;;  %v4852_v29 = vld [vmem:[#allocation11 + $0x70] ss:$8 sps:$4 sm:$0xff]  }
 0x2fa   : > { %v4429_v33 = vadd.f32 %v1595_v32, %v5868_v22  ;;  %2038 = vmatpush1.bf16.msra.mxu1 %v4831_v24  ;;  %v1651_v38 = vmax.f32 %v4427_v28, 0.0  ;;  %v4854_v28 = vld [vmem:[#allocation11 + $0x74] ss:$8 sps:$4 sm:$0xff]  }
 0x2fb   : > { %v1652_v36 = vmax.f32 %v4428_v31, 0.0  ;;  %2039 = vmatprep.subr.bf16.mxu1 %v4836_v27  ;;  %v1684_v27 = vpack.c.bf16 %v1670_v26, %v1670_v26  ;;  %v4887_v31 = vld [vmem:[#allocation14 + $0x210] ss:$28 sps:$4 sm:$0xff]   ;;  %v4897_v32 = vld [vmem:[#allocation14 + $0x280] ss:$28 sps:$4 sm:$0xff]  }
 0x2fc   : > { %v1653_v39 = vmax.f32 %v4429_v33, 0.0  ;;  %v4898_v33 = vld [vmem:[#allocation14 + $0xc0] ss:$28 sps:$4 sm:$0xff]  }
 0x2fd   : > { %v1674_v40 = vpack.c.bf16 %v1652_v36, %v1650_v35  ;;  %v4903_v35 = vld [vmem:[#allocation14 + $0xf8] ss:$28 sps:$4 sm:$0xff]   ;;  %v4907_v36 = vld [vmem:[#allocation14 + $0x2f0] ss:$28 sps:$4 sm:$0xff]  }
 0x2fe   : > { %v1675_v42 = vpack.c.bf16 %v1653_v39, %v1651_v38  ;;  %v1599_v43 = vpop.f32.mrb[8].mxu0  ;;  %2040 = vmatpush1.bf16.msra.mxu1 %v4834_v34  ;;  %v4902_v34 = vld [vmem:[#allocation14 + $0x2b8] ss:$28 sps:$4 sm:$0xff]   ;;  %v5920_v38 = vld [vmem:[#allocation10] ss:$0 sm:$0xff] }
 0x2ff   : > { %v4430_v46 = vadd.f32 %v1599_v43, %v5865_v21  ;;  %v1601_v47 = vpop.f32.mrb[9].mxu0  ;;  %2041 = vmatprep.subr.bf16.mxu1 %v4839_v37 }
 0x300   : > { %v4431_v49 = vadd.f32 %v1601_v47, %v5868_v22  ;;  %v1603_v50 = vpop.f32.mrb[10].mxu0  ;;  %1861 = vmatprep.mubr.bf16.mxu1 %v1675_v42 }
 0x301   : > { %v4432_v51 = vadd.f32 %v1603_v50, %v5865_v21  ;;  %v1605_v52 = vpop.f32.mrb[11].mxu0  ;;  %1862 = vmatmul.mubr.bf16.gmra.mrb[16].mxu1 %v1674_v40  ;;  %v1654_v55 = vmax.f32 %v4430_v46, 0.0 }
 0x302   : > { %v4433_v53 = vadd.f32 %v1605_v52, %v5868_v22  ;;  %2042 = vmatpush1.bf16.msra.mxu1 %v4837_v45  ;;  %v1655_v58 = vmax.f32 %v4431_v49, 0.0  ;;  %v4855_v52 = vld [vmem:[#allocation14] ss:$28 sps:$4 sm:$0xff]  }
 0x303   : > { %v1656_v56 = vmax.f32 %v4432_v51, 0.0  ;;  %2043 = vmatprep.subr.bf16.mxu1 %v4842_v48 }
 0x304   : > { %v1657_v60 = vmax.f32 %v4433_v53, 0.0 }
 0x305   : > { %v1676_v0 = vpack.c.bf16 %v1656_v56, %v1654_v55  ;;  %v4860_v56 = vld [vmem:[#allocation14 + $0x3c] ss:$28 sps:$4 sm:$0xff]  }
 0x306   : > { %v1677_v61 = vpack.c.bf16 %v1657_v60, %v1655_v58  ;;  %v1609_v5 = vpop.f32.mrb[12].mxu0  ;;  %2044 = vmatpush1.bf16.msra.mxu1 %v4840_v54 }
 0x307   : > { %v4434_v6 = vadd.f32 %v1609_v5, %v5865_v21  ;;  %v1611_v9 = vpop.f32.mrb[13].mxu0  ;;  %2045 = vmatprep.subr.bf16.mxu1 %v4845_v57  ;;  %v4863_v5 = vld [vmem:[#allocation14 + $0x74] ss:$28 sps:$4 sm:$0xff]  }
 0x308   : > { %v4435_v11 = vadd.f32 %v1611_v9, %v5868_v22  ;;  %v1613_v12 = vpop.f32.mrb[14].mxu0  ;;  %1869 = vmatprep.mubr.bf16.mxu1 %v1677_v61 }
 0x309   : > { %v4436_v13 = vadd.f32 %v1613_v12, %v5865_v21  ;;  %v1615_v14 = vpop.f32.mrb[15].mxu0  ;;  %1870 = vmatmul.mubr.bf16.gmra.mrb[20].mxu1 %v1676_v0  ;;  %v1658_v4 = vmax.f32 %v4434_v6, 0.0  ;;  %v1671_v21 = vmax.f32 %v5895_v1, 0.0  ;;  %v4888_v1 = vld [vmem:[#allocation14 + $0x50] ss:$28 sps:$4 sm:$0xff]  }
 0x30a   : > { %v4437_v15 = vadd.f32 %v1615_v14, %v5868_v22  ;;  %2046 = vmatpush1.bf16.msra.mxu1 %v4843_v63  ;;  %v1659_v19 = vmax.f32 %v4435_v11, 0.0  ;;  %v4858_v0 = vld [vmem:[#allocation14 + $0x38] ss:$28 sps:$4 sm:$0xff]   ;;  %v4861_v11 = vld [vmem:[#allocation14 + $0x70] ss:$28 sps:$4 sm:$0xff]  }
 0x30b   : > { %v1660_v7 = vmax.f32 %v4436_v13, 0.0  ;;  %2047 = vmatprep.subr.bf16.mxu1 %v4848_v10  ;;  %v1685_v22 = vpack.c.bf16 %v1671_v21, %v1671_v21 }
 0x30c   : > { %v1661_v23 = vmax.f32 %v4437_v15, 0.0  ;;  %v4866_v15 = vld [vmem:[#allocation14 + $0xac] ss:$28 sps:$4 sm:$0xff]  }
 0x30d   : > { %v1678_v8 = vpack.c.bf16 %v1660_v7, %v1658_v4 }
 0x30e   : > { %v1679_v24 = vpack.c.bf16 %v1661_v23, %v1659_v19  ;;  %2048 = vmatpush1.bf16.msra.mxu1 %v4846_v16  ;;  %v4869_v23 = vld [vmem:[#allocation14 + $0xe4] ss:$28 sps:$4 sm:$0xff]  }
 0x30f   : > { %2049 = vmatprep.subr.bf16.mxu1 %v4851_v3  ;;  %v4864_v3 = vld [vmem:[#allocation14 + $0xa8] ss:$28 sps:$4 sm:$0xff]  }
 0x310   : > { %1877 = vmatprep.mubr.bf16.mxu1 %v1679_v24 }
 0x311   : > { %1878 = vmatmul.mubr.bf16.gmra.mrb[24].mxu1 %v1678_v8 }
 0x312   : > { %1885 = vmatprep.mubr.bf16.mxu1 %v5877_v44  ;;  %2050 = vmatpush1.bf16.msra.mxu1 %v4849_v25  ;;  %v4857_v44 = vld [vmem:[#allocation14 + $0x4] ss:$28 sps:$4 sm:$0xff]  }
 0x313   : > { %2051 = vmatprep.subr.bf16.mxu1 %v4854_v28 }
 0x316   : > { %2052 = vmatpush1.bf16.msra.mxu1 %v4852_v29  ;;  %v4872_v29 = vld [vmem:[#allocation14 + $0x11c] ss:$28 sps:$4 sm:$0xff]  }
 0x317   : > { %2919 = vmatprep.subr.bf16.mxu1 %v4857_v44 }
 0x319   : > { %1886 = vmatmul.mubr.bf16.gmra.mrb[28].mxu1 %v5874_v41  ;;  %v4882_v41 = vld [vmem:[#allocation14 + $0x1d8] ss:$28 sps:$4 sm:$0xff]  }
 0x31a   : > { %1893 = vmatprep.mubr.bf16.mxu1 %v5888_v2  ;;  %v4883_v2 = vld [vmem:[#allocation14 + $0x18] ss:$28 sps:$4 sm:$0xff]   ;;  %4362 = vmatprep.subr.bf16.mxu0 %v4882_v41 }
 0x31b   : > { %4363 = vmatpush3.bf16.msra.mxu0 %v4883_v2 }
 0x31c   : > { %4364 = vmatprep.subr.bf16.mxu0 %v4887_v31  ;;  %v4870_v31 = vld [vmem:[#allocation14 + $0x118] ss:$28 sps:$4 sm:$0xff]  }
 0x31f   : > { %4365 = vmatpush3.bf16.msra.mxu0 %v4888_v1 }
 0x321   : > { %1894 = vmatmul.mubr.bf16.gmra.mrb[32].mxu1 %v5885_v59  ;;  %v4892_v59 = vld [vmem:[#allocation14 + $0x248] ss:$28 sps:$4 sm:$0xff]  }
 0x322   : > { %1901 = vmatprep.mubr.bf16.mxu1 %v1685_v22  ;;  %4366 = vmatprep.subr.bf16.mxu0 %v4892_v59  ;;  %v4867_v22 = vld [vmem:[#allocation14 + $0xe0] ss:$28 sps:$4 sm:$0xff]   ;;  %v4875_v59 = vld [vmem:[#allocation14 + $0x154] ss:$28 sps:$4 sm:$0xff]  }
 0x323   : > { %4367 = vmatpush3.bf16.msra.mxu0 %v4893_v62 }
 0x324   : > { %4368 = vmatprep.subr.bf16.mxu0 %v4897_v32 }
 0x327   : > { %4369 = vmatpush3.bf16.msra.mxu0 %v4898_v33 }
 0x328   : > { %4370 = vmatprep.subr.bf16.mxu0 %v4902_v34 }
 0x329   : > { %1902 = vmatmul.mubr.bf16.gmra.mrb[36].mxu1 %v1684_v27 }
 0x32a   : > { %2069 = vmatprep.mubr.bf16.mxu1 %v5368_v30 }
 0x32b   : > { %4371 = vmatpush3.bf16.msra.mxu0 %v4903_v35  ;;  %v4873_v35 = vld [vmem:[#allocation14 + $0x150] ss:$28 sps:$4 sm:$0xff]  }
 0x32c   : > { %4372 = vmatprep.subr.bf16.mxu0 %v4907_v36 }
 0x3cc   : > { %v4320_v37 = vpop.f32.mrb[12].mxu1 }
 0x3cd   : > { %v4321_v39 = vpop.f32.mrb[13].mxu1 }
 0x3ce   : > { %v4322_v40 = vadd.f32 %v4321_v39, %v4320_v37  ;;  %v4323_v42 = vpop.f32.mrb[14].mxu1 }
 0x3cf   : > { %v4324_v43 = vpop.f32.mrb[15].mxu1 }
 0x3d0   : > { %v1856_v45 = vadd.f32 %v4322_v40, %v5920_v38  ;;  %v4325_v46 = vadd.f32 %v4324_v43, %v4323_v42  ;;  %v4878_v40 = vld [vmem:[#allocation14 + $0x18c] ss:$28 sps:$4 sm:$0xff]  }
 0x3d2   : > { %v1859_v47 = vadd.f32 %v4325_v46, %v5920_v38  ;;  %v1909_v48 = vmax.f32 %v1856_v45, 0.0  ;;  %v4876_v46 = vld [vmem:[#allocation14 + $0x188] ss:$28 sps:$4 sm:$0xff]  }
 0x3d4   : > { %v1910_v49 = vmax.f32 %v1859_v47, 0.0  ;;  %v4326_v50 = vpop.f32.mrb[16].mxu1 }
 0x3d5   : > { %v4327_v51 = vpop.f32.mrb[17].mxu1 }
 0x3d6   : > { %v1922_v53 = vpack.c.bf16 %v1910_v49, %v1909_v48  ;;  %v4328_v54 = vadd.f32 %v4327_v51, %v4326_v50  ;;  %v4329_v55 = vpop.f32.mrb[18].mxu1  ;;  %v4881_v48 = vld [vmem:[#allocation14 + $0x1c4] ss:$28 sps:$4 sm:$0xff]  }
 0x3d7   : > { %v4330_v57 = vpop.f32.mrb[19].mxu1 }
 0x3d8   : > { %v1864_v58 = vadd.f32 %v4328_v54, %v5920_v38  ;;  %v4331_v60 = vadd.f32 %v4330_v57, %v4329_v55  ;;  %2070 = vmatmul.mubr.bf16.vlgmr.msra.gmra.mrb[40].mxu1 %v1922_v53  ;;  %v4879_v53 = vld [vmem:[#allocation14 + $0x1c0] ss:$28 sps:$4 sm:$0xff]  }
 0x3d9   : > { %2079 = vmatprep.mubr.bf16.mxu1 %v5368_v30  ;;  %2920 = vmatpush1.bf16.msra.mxu1 %v4855_v52  ;;  %v4886_v57 = vld [vmem:[#allocation14 + $0x1fc] ss:$28 sps:$4 sm:$0xff]  }
 0x3da   : > { %v1867_v61 = vadd.f32 %v4331_v60, %v5920_v38  ;;  %2921 = vmatprep.subr.bf16.mxu1 %v4860_v56  ;;  %v1911_v63 = vmax.f32 %v1864_v58, 0.0 }
 0x3dc   : > { %v1912_v6 = vmax.f32 %v1867_v61, 0.0  ;;  %v4332_v9 = vpop.f32.mrb[20].mxu1  ;;  %v4884_v61 = vld [vmem:[#allocation14 + $0x1f8] ss:$28 sps:$4 sm:$0xff]  }
 0x3dd   : > { %v4333_v10 = vpop.f32.mrb[21].mxu1  ;;  %2922 = vmatpush1.bf16.msra.mxu1 %v4858_v0 }
 0x3de   : > { %v4334_v12 = vadd.f32 %v4333_v10, %v4332_v9  ;;  %v4335_v13 = vpop.f32.mrb[22].mxu1  ;;  %v1923_v14 = vpack.c.bf16 %v1912_v6, %v1911_v63  ;;  %2923 = vmatprep.subr.bf16.mxu1 %v4863_v5  ;;  %v4891_v63 = vld [vmem:[#allocation14 + $0x234] ss:$28 sps:$4 sm:$0xff]  }
 0x3df   : > { %v4336_v16 = vpop.f32.mrb[23].mxu1 }
 0x3e0   : > { %v1872_v4 = vadd.f32 %v4334_v12, %v5920_v38  ;;  %v4337_v7 = vadd.f32 %v4336_v16, %v4335_v13  ;;  %2080 = vmatmul.mubr.bf16.gmra.mrb[44].mxu1 %v1923_v14  ;;  %v4889_v12 = vld [vmem:[#allocation14 + $0x230] ss:$28 sps:$4 sm:$0xff]  }
 0x3e1   : > { %2089 = vmatprep.mubr.bf16.mxu1 %v5368_v30  ;;  %2924 = vmatpush1.bf16.msra.mxu1 %v4861_v11  ;;  %v4896_v16 = vld [vmem:[#allocation14 + $0x26c] ss:$28 sps:$4 sm:$0xff]  }
 0x3e2   : > { %v1875_v19 = vadd.f32 %v4337_v7, %v5920_v38  ;;  %2925 = vmatprep.subr.bf16.mxu1 %v4866_v15  ;;  %v1913_v8 = vmax.f32 %v1872_v4, 0.0 }
 0x3e4   : > { %v1914_v24 = vmax.f32 %v1875_v19, 0.0  ;;  %v4338_v25 = vpop.f32.mrb[24].mxu1 }
 0x3e5   : > { %v4339_v21 = vpop.f32.mrb[25].mxu1  ;;  %2926 = vmatpush1.bf16.msra.mxu1 %v4864_v3  ;;  %v4894_v3 = vld [vmem:[#allocation14 + $0x268] ss:$28 sps:$4 sm:$0xff]  }
 0x3e6   : > { %v4340_v26 = vadd.f32 %v4339_v21, %v4338_v25  ;;  %v4341_v27 = vpop.f32.mrb[26].mxu1  ;;  %v1924_v28 = vpack.c.bf16 %v1914_v24, %v1913_v8  ;;  %2927 = vmatprep.subr.bf16.mxu1 %v4869_v23  ;;  %v4901_v23 = vld [vmem:[#allocation14 + $0x2a4] ss:$28 sps:$4 sm:$0xff]   ;;  %v4906_v25 = vld [vmem:[#allocation14 + $0x2dc] ss:$28 sps:$4 sm:$0xff]  }
 0x3e7   : > { %v4342_v44 = vpop.f32.mrb[27].mxu1  ;;  %v4899_v8 = vld [vmem:[#allocation14 + $0x2a0] ss:$28 sps:$4 sm:$0xff]   ;;  %v4904_v21 = vld [vmem:[#allocation14 + $0x2d8] ss:$28 sps:$4 sm:$0xff]  }
 0x3e8   : > { %v1880_v41 = vadd.f32 %v4340_v26, %v5920_v38  ;;  %v4343_v2 = vadd.f32 %v4342_v44, %v4341_v27  ;;  %2090 = vmatmul.mubr.bf16.gmra.mrb[48].mxu1 %v1924_v28  ;;  %v4909_v26 = vld [vmem:[#allocation14 + $0x310] ss:$28 sps:$4 sm:$0xff]   ;;  %v4913_v27 = vld [vmem:[#allocation14 + $0x168] ss:$28 sps:$4 sm:$0xff]   ;;  %v4917_v44 = vld [vmem:[#allocation14 + $0x360] ss:$28 sps:$4 sm:$0xff]  }
 0x3e9   : > { %2099 = vmatprep.mubr.bf16.mxu1 %v5368_v30  ;;  %2928 = vmatpush1.bf16.msra.mxu1 %v4867_v22  ;;  %v4908_v22 = vld [vmem:[#allocation14 + $0x130] ss:$28 sps:$4 sm:$0xff]  }
 0x3ea   : > { %v1883_v1 = vadd.f32 %v4343_v2, %v5920_v38  ;;  %2929 = vmatprep.subr.bf16.mxu1 %v4872_v29  ;;  %v1915_v62 = vmax.f32 %v1880_v41, 0.0  ;;  %4373 = vmatpush3.bf16.msra.mxu0 %v4908_v22  ;;  %v4916_v28 = vld [vmem:[#allocation14 + $0x34c] ss:$28 sps:$4 sm:$0xff]   ;;  %v4918_v41 = vld [vmem:[#allocation14 + $0x1a0] ss:$28 sps:$4 sm:$0xff]  }
 0x3eb   : > { %v4914_v29 = vld [vmem:[#allocation14 + $0x348] ss:$28 sps:$4 sm:$0xff]  }
 0x3ec   : > { %v1916_v32 = vmax.f32 %v1883_v1, 0.0  ;;  %v4344_v33 = vpop.f32.mrb[28].mxu1  ;;  %v4921_v2 = vld [vmem:[#allocation14 + $0xc] ss:$28 sps:$4 sm:$0xff]  }
 0x3ed   : > { %v4345_v34 = vpop.f32.mrb[29].mxu1  ;;  %2930 = vmatpush1.bf16.msra.mxu1 %v4870_v31  ;;  %v1945_v31 = vld [vmem:[#allocation13] sm:$0x3] }
 0x3ee   : > { %v4346_v36 = vadd.f32 %v4345_v34, %v4344_v33  ;;  %v4347_v37 = vpop.f32.mrb[30].mxu1  ;;  %v1925_v39 = vpack.c.bf16 %v1916_v32, %v1915_v62  ;;  %2931 = vmatprep.subr.bf16.mxu1 %v4875_v59  ;;  %v5942_v1 = vrot.slane %v1945_v31, %v5859_v18  ;;  %v5945_v59 = vrot.slane %v1945_v31, %v5862_v20 }
 0x3ef   : > { %v4348_v42 = vpop.f32.mrb[31].mxu1 }
 0x3f0   : > { %v1888_v43 = vadd.f32 %v4346_v36, %v5920_v38  ;;  %v4349_v45 = vadd.f32 %v4348_v42, %v4347_v37  ;;  %2100 = vmatmul.mubr.bf16.gmra.mrb[52].mxu1 %v1925_v39 }
 0x3f1   : > { %2109 = vmatprep.mubr.bf16.mxu1 %v5368_v30  ;;  %2932 = vmatpush1.bf16.msra.mxu1 %v4873_v35 }
 0x3f2   : > { %v1891_v47 = vadd.f32 %v4349_v45, %v5920_v38  ;;  %2933 = vmatprep.subr.bf16.mxu1 %v4878_v40  ;;  %v1917_v49 = vmax.f32 %v1888_v43, 0.0 }
 0x3f4   : > { %v1918_v50 = vmax.f32 %v1891_v47, 0.0  ;;  %v4350_v51 = vpop.f32.mrb[32].mxu1 }
 0x3f5   : > { %v4351_v52 = vpop.f32.mrb[33].mxu1  ;;  %2934 = vmatpush1.bf16.msra.mxu1 %v4876_v46 }
 0x3f6   : > { %v4352_v54 = vadd.f32 %v4351_v52, %v4350_v51  ;;  %v4353_v55 = vpop.f32.mrb[34].mxu1  ;;  %v1926_v56 = vpack.c.bf16 %v1918_v50, %v1917_v49  ;;  %2935 = vmatprep.subr.bf16.mxu1 %v4881_v48  ;;  %v4919_v49 = vld [vmem:[#allocation14 + $0x8] ss:$28 sps:$4 sm:$0xff]  }
 0x3f7   : > { %v4354_v58 = vpop.f32.mrb[35].mxu1  ;;  %v4924_v52 = vld [vmem:[#allocation14 + $0x44] ss:$28 sps:$4 sm:$0xff]  }
 0x3f8   : > { %v1896_v60 = vadd.f32 %v4352_v54, %v5920_v38  ;;  %v4355_v0 = vadd.f32 %v4354_v58, %v4353_v55  ;;  %2110 = vmatmul.mubr.bf16.gmra.mrb[56].mxu1 %v1926_v56  ;;  %v4922_v58 = vld [vmem:[#allocation14 + $0x40] ss:$28 sps:$4 sm:$0xff]  }
 0x3f9   : > { %2119 = vmatprep.mubr.bf16.mxu1 %v5368_v30  ;;  %2936 = vmatpush1.bf16.msra.mxu1 %v4879_v53 }
 0x3fa   : > { %v1899_v5 = vadd.f32 %v4355_v0, %v5920_v38  ;;  %2937 = vmatprep.subr.bf16.mxu1 %v4886_v57  ;;  %v1919_v6 = vmax.f32 %v1896_v60, 0.0 }
 0x3fc   : > { %v1920_v9 = vmax.f32 %v1899_v5, 0.0  ;;  %v4356_v10 = vpop.f32.mrb[36].mxu1 }
 0x3fd   : > { %v4357_v11 = vpop.f32.mrb[37].mxu1  ;;  %2938 = vmatpush1.bf16.msra.mxu1 %v4884_v61  ;;  %v4927_v61 = vld [vmem:[#allocation14 + $0x7c] ss:$28 sps:$4 sm:$0xff]  }
 0x3fe   : > { %v4358_v13 = vadd.f32 %v4357_v11, %v4356_v10  ;;  %v4359_v14 = vpop.f32.mrb[38].mxu1  ;;  %v1927_v15 = vpack.c.bf16 %v1920_v9, %v1919_v6  ;;  %2939 = vmatprep.subr.bf16.mxu1 %v4891_v63  ;;  %v4925_v11 = vld [vmem:[#allocation14 + $0x78] ss:$28 sps:$4 sm:$0xff]  }
 0x3ff   : > { %v4360_v4 = vpop.f32.mrb[39].mxu1  ;;  %v4930_v14 = vld [vmem:[#allocation14 + $0xb4] ss:$28 sps:$4 sm:$0xff]  }
 0x400   : > { %v1904_v7 = vadd.f32 %v4358_v13, %v5920_v38  ;;  %2120 = vmatmul.mubr.bf16.gmra.mrb[60].mxu1 %v1927_v15  ;;  %v4911_v38 = vld [vmem:[#allocation14 + $0x314] ss:$28 sps:$4 sm:$0xff]  }
 0x401   : > { %2129 = vmatprep.mubr.bf16.mxu1 %v5368_v30  ;;  %2940 = vmatpush1.bf16.msra.mxu1 %v4889_v12  ;;  %v4912_v30 = vld [vmem:[#allocation14 + $0x328] ss:$28 sps:$4 sm:$0xff]  }
 0x402   : > { %v1921_v19 = vmax.f32 %v1904_v7, 0.0  ;;  %2941 = vmatprep.subr.bf16.mxu1 %v4896_v16  ;;  %4374 = vmatprep.subr.bf16.mxu0 %v4912_v30  ;;  %v4931_v30 = vld [vmem:[#allocation14 + $0xe8] ss:$28 sps:$4 sm:$0xff]  }
 0x403   : > { %4375 = vmatpush3.bf16.msra.mxu0 %v4913_v27 }
 0x404   : > { %v1928_v24 = vpack.c.bf16 %v1921_v19, %v1921_v19  ;;  %4376 = vmatprep.subr.bf16.mxu0 %v4917_v44  ;;  %v4928_v19 = vld [vmem:[#allocation14 + $0xb0] ss:$28 sps:$4 sm:$0xff]  }
 0x405   : > { %2942 = vmatpush1.bf16.msra.mxu1 %v4894_v3 }
 0x406   : > { %2943 = vmatprep.subr.bf16.mxu1 %v4901_v23 }
 0x407   : > { %4377 = vmatpush3.bf16.msra.mxu0 %v4918_v41 }
 0x408   : > { %2130 = vmatmul.mubr.bf16.gmra.mrb[64].mxu1 %v1928_v24  ;;  %v4933_v24 = vld [vmem:[#allocation14 + $0xec] ss:$28 sps:$4 sm:$0xff]  }
 0x409   : > { %2944 = vmatpush1.bf16.msra.mxu1 %v4899_v8 }
 0x40a   : > { %2945 = vmatprep.subr.bf16.mxu1 %v4906_v25 }
 0x40d   : > { %2946 = vmatpush1.bf16.msra.mxu1 %v4904_v21 }
 0x40e   : > { %2947 = vmatprep.subr.bf16.mxu1 %v4911_v38 }
 0x411   : > { %2948 = vmatpush1.bf16.msra.mxu1 %v4909_v26 }
 0x412   : > { %2949 = vmatprep.subr.bf16.mxu1 %v4916_v28 }
 0x415   : > { %2950 = vmatpush1.bf16.msra.mxu1 %v4914_v29  ;;  %v4936_v29 = vld [vmem:[#allocation14 + $0x124] ss:$28 sps:$4 sm:$0xff]  }
 0x416   : > { %3020 = vmatprep.subr.bf16.mxu1 %v4921_v2 }
 0x4ab   : > { %v2071_v62 = vpop.f32.mrb[40].mxu1 }
 0x4ac   : > { %v2072_v32 = vadd.f32 %v2071_v62, %v5942_v1  ;;  %v2073_v33 = vpop.f32.mrb[41].mxu1 }
 0x4ad   : > { %v2074_v34 = vadd.f32 %v2073_v33, %v5945_v59  ;;  %v2075_v35 = vpop.f32.mrb[42].mxu1 }
 0x4ae   : > { %v2076_v36 = vadd.f32 %v2075_v35, %v5942_v1  ;;  %v2077_v37 = vpop.f32.mrb[43].mxu1  ;;  %v2138_v40 = vmax.f32 %v2072_v32, 0.0  ;;  %v4934_v32 = vld [vmem:[#allocation14 + $0x120] ss:$28 sps:$4 sm:$0xff]  }
 0x4af   : > { %v2078_v39 = vadd.f32 %v2077_v37, %v5945_v59  ;;  %v2139_v43 = vmax.f32 %v2074_v34, 0.0  ;;  %v4939_v35 = vld [vmem:[#allocation14 + $0x15c] ss:$28 sps:$4 sm:$0xff]  }
 0x4b0   : > { %v2140_v42 = vmax.f32 %v2076_v36, 0.0 }
 0x4b1   : > { %v2141_v45 = vmax.f32 %v2078_v39, 0.0 }
 0x4b2   : > { %v5951_v46 = vpack.c.bf16 %v2140_v42, %v2138_v40 }
 0x4b3   : > { %v5953_v47 = vpack.c.bf16 %v2141_v45, %v2139_v43  ;;  %v2081_v48 = vpop.f32.mrb[44].mxu1  ;;  %v4937_v43 = vld [vmem:[#allocation14 + $0x158] ss:$28 sps:$4 sm:$0xff]  }
 0x4b4   : > { %v2082_v50 = vadd.f32 %v2081_v48, %v5942_v1  ;;  %v2083_v51 = vpop.f32.mrb[45].mxu1 }
 0x4b5   : > { %v2084_v53 = vadd.f32 %v2083_v51, %v5945_v59  ;;  %v2085_v54 = vpop.f32.mrb[46].mxu1  ;;  %2951 = vmatprep.mubr.bf16.mxu1 %v5953_v47  ;;  %3254 = vmatprep.mubr.bf16.mxu0 %v5953_v47 }
 0x4b6   : > { %v2086_v55 = vadd.f32 %v2085_v54, %v5942_v1  ;;  %v2087_v56 = vpop.f32.mrb[47].mxu1  ;;  %2952 = vmatmul.mubr.bf16.vlgmr.msra.gmra.mrb[68].mxu1 %v5951_v46  ;;  %3255 = vmatmul.mubr.bf16.vlgmr.msra.gmra.mrb[28].mxu0 %v5951_v46  ;;  %v2142_v60 = vmax.f32 %v2082_v50, 0.0 }
 0x4b7   : > { %v2088_v57 = vadd.f32 %v2087_v56, %v5945_v59  ;;  %3021 = vmatpush1.bf16.msra.mxu1 %v4919_v49  ;;  %v2143_v5 = vmax.f32 %v2084_v53, 0.0  ;;  %v4942_v49 = vld [vmem:[#allocation14 + $0x194] ss:$28 sps:$4 sm:$0xff]  }
 0x4b8   : > { %v2144_v0 = vmax.f32 %v2086_v55, 0.0  ;;  %3022 = vmatprep.subr.bf16.mxu1 %v4924_v52  ;;  %v4940_v55 = vld [vmem:[#allocation14 + $0x190] ss:$28 sps:$4 sm:$0xff]  }
 0x4b9   : > { %v2145_v63 = vmax.f32 %v2088_v57, 0.0 }
 0x4ba   : > { %v5963_v6 = vpack.c.bf16 %v2144_v0, %v2142_v60 }
 0x4bb   : > { %v5965_v9 = vpack.c.bf16 %v2145_v63, %v2143_v5  ;;  %3023 = vmatpush1.bf16.msra.mxu1 %v4922_v58  ;;  %v2091_v10 = vpop.f32.mrb[48].mxu1  ;;  %v4945_v58 = vld [vmem:[#allocation14 + $0x1cc] ss:$28 sps:$4 sm:$0xff]  }
 0x4bc   : > { %v2092_v12 = vadd.f32 %v2091_v10, %v5942_v1  ;;  %v2093_v13 = vpop.f32.mrb[49].mxu1  ;;  %3024 = vmatprep.subr.bf16.mxu1 %v4927_v61  ;;  %v4943_v10 = vld [vmem:[#allocation14 + $0x1c8] ss:$28 sps:$4 sm:$0xff]  }
 0x4bd   : > { %v2094_v15 = vadd.f32 %v2093_v13, %v5945_v59  ;;  %v2095_v16 = vpop.f32.mrb[50].mxu1  ;;  %2961 = vmatprep.mubr.bf16.mxu1 %v5965_v9  ;;  %3262 = vmatprep.mubr.bf16.mxu0 %v5965_v9  ;;  %v4948_v13 = vld [vmem:[#allocation14 + $0x204] ss:$28 sps:$4 sm:$0xff]  }
 0x4be   : > { %v2096_v4 = vadd.f32 %v2095_v16, %v5942_v1  ;;  %v2097_v7 = vpop.f32.mrb[51].mxu1  ;;  %2962 = vmatmul.mubr.bf16.gmra.mrb[72].mxu1 %v5963_v6  ;;  %3263 = vmatmul.mubr.bf16.gmra.mrb[32].mxu0 %v5963_v6  ;;  %v2146_v23 = vmax.f32 %v2092_v12, 0.0 }
 0x4bf   : > { %v2098_v3 = vadd.f32 %v2097_v7, %v5945_v59  ;;  %3025 = vmatpush1.bf16.msra.mxu1 %v4925_v11  ;;  %v2147_v25 = vmax.f32 %v2094_v15, 0.0 }
 0x4c0   : > { %v2148_v8 = vmax.f32 %v2096_v4, 0.0  ;;  %3026 = vmatprep.subr.bf16.mxu1 %v4930_v14 }
 0x4c1   : > { %v2149_v21 = vmax.f32 %v2098_v3, 0.0  ;;  %v4946_v3 = vld [vmem:[#allocation14 + $0x200] ss:$28 sps:$4 sm:$0xff]  }
 0x4c2   : > { %v5975_v22 = vpack.c.bf16 %v2148_v8, %v2146_v23  ;;  %v4951_v8 = vld [vmem:[#allocation14 + $0x23c] ss:$28 sps:$4 sm:$0xff]  }
 0x4c3   : > { %v5977_v38 = vpack.c.bf16 %v2149_v21, %v2147_v25  ;;  %3027 = vmatpush1.bf16.msra.mxu1 %v4928_v19  ;;  %v2101_v26 = vpop.f32.mrb[52].mxu1 }
 0x4c4   : > { %v2102_v27 = vadd.f32 %v2101_v26, %v5942_v1  ;;  %v2103_v28 = vpop.f32.mrb[53].mxu1  ;;  %3028 = vmatprep.subr.bf16.mxu1 %v4933_v24 }
 0x4c5   : > { %v2104_v44 = vadd.f32 %v2103_v28, %v5945_v59  ;;  %v2105_v41 = vpop.f32.mrb[54].mxu1  ;;  %2971 = vmatprep.mubr.bf16.mxu1 %v5977_v38  ;;  %3270 = vmatprep.mubr.bf16.mxu0 %v5977_v38 }
 0x4c6   : > { %v2106_v2 = vadd.f32 %v2105_v41, %v5942_v1  ;;  %v2107_v31 = vpop.f32.mrb[55].mxu1  ;;  %2972 = vmatmul.mubr.bf16.gmra.mrb[76].mxu1 %v5975_v22  ;;  %3271 = vmatmul.mubr.bf16.gmra.mrb[36].mxu0 %v5975_v22  ;;  %v2150_v33 = vmax.f32 %v2102_v27, 0.0  ;;  %v4949_v27 = vld [vmem:[#allocation14 + $0x238] ss:$28 sps:$4 sm:$0xff]  }
 0x4c7   : > { %v2108_v62 = vadd.f32 %v2107_v31, %v5945_v59  ;;  %3029 = vmatpush1.bf16.msra.mxu1 %v4931_v30  ;;  %v2151_v36 = vmax.f32 %v2104_v44, 0.0  ;;  %v4954_v44 = vld [vmem:[#allocation14 + $0x274] ss:$28 sps:$4 sm:$0xff]  }
 0x4c8   : > { %v2152_v34 = vmax.f32 %v2106_v2, 0.0  ;;  %3030 = vmatprep.subr.bf16.mxu1 %v4936_v29 }
 0x4c9   : > { %v2153_v37 = vmax.f32 %v2108_v62, 0.0 }
 0x4ca   : > { %v5987_v39 = vpack.c.bf16 %v2152_v34, %v2150_v33 }
 0x4cb   : > { %v5989_v40 = vpack.c.bf16 %v2153_v37, %v2151_v36  ;;  %3031 = vmatpush1.bf16.msra.mxu1 %v4934_v32  ;;  %v2111_v42 = vpop.f32.mrb[56].mxu1  ;;  %v4952_v32 = vld [vmem:[#allocation14 + $0x270] ss:$28 sps:$4 sm:$0xff]   ;;  %v4960_v36 = vld [vmem:[#allocation14 + $0x2e4] ss:$28 sps:$4 sm:$0xff]  }
 0x4cc   : > { %v2112_v45 = vadd.f32 %v2111_v42, %v5942_v1  ;;  %v2113_v48 = vpop.f32.mrb[57].mxu1  ;;  %3032 = vmatprep.subr.bf16.mxu1 %v4939_v35  ;;  %v4958_v37 = vld [vmem:[#allocation14 + $0x2e0] ss:$28 sps:$4 sm:$0xff]  }
 0x4cd   : > { %v2114_v50 = vadd.f32 %v2113_v48, %v5945_v59  ;;  %v2115_v51 = vpop.f32.mrb[58].mxu1  ;;  %2981 = vmatprep.mubr.bf16.mxu1 %v5989_v40  ;;  %3278 = vmatprep.mubr.bf16.mxu0 %v5989_v40  ;;  %v4963_v42 = vld [vmem:[#allocation14 + $0x31c] ss:$28 sps:$4 sm:$0xff]   ;;  %v4964_v48 = vld [vmem:[#allocation14 + $0x350] ss:$28 sps:$4 sm:$0xff]  }
 0x4ce   : > { %v2116_v52 = vadd.f32 %v2115_v51, %v5942_v1  ;;  %v2117_v53 = vpop.f32.mrb[59].mxu1  ;;  %2982 = vmatmul.mubr.bf16.gmra.mrb[80].mxu1 %v5987_v39  ;;  %3279 = vmatmul.mubr.bf16.gmra.mrb[40].mxu0 %v5987_v39  ;;  %v2154_v56 = vmax.f32 %v2112_v45, 0.0  ;;  %v4966_v45 = vld [vmem:[#allocation14 + $0x354] ss:$28 sps:$4 sm:$0xff]   ;;  %v4972_v51 = vld [vmem:[#allocation14 + $0x4c] ss:$28 sps:$4 sm:$0xff]  }
 0x4cf   : > { %v2118_v54 = vadd.f32 %v2117_v53, %v5945_v59  ;;  %3033 = vmatpush1.bf16.msra.mxu1 %v4937_v43  ;;  %v2155_v60 = vmax.f32 %v2114_v50, 0.0  ;;  %v4961_v43 = vld [vmem:[#allocation14 + $0x318] ss:$28 sps:$4 sm:$0xff]   ;;  %v4967_v50 = vld [vmem:[#allocation14 + $0x10] ss:$28 sps:$4 sm:$0xff]  }
 0x4d0   : > { %v2156_v57 = vmax.f32 %v2116_v52, 0.0  ;;  %3034 = vmatprep.subr.bf16.mxu1 %v4942_v49  ;;  %v4969_v49 = vld [vmem:[#allocation14 + $0x14] ss:$28 sps:$4 sm:$0xff]   ;;  %v4970_v52 = vld [vmem:[#allocation14 + $0x48] ss:$28 sps:$4 sm:$0xff]  }
 0x4d1   : > { %v2157_v0 = vmax.f32 %v2118_v54, 0.0  ;;  %v4975_v53 = vld [vmem:[#allocation14 + $0x84] ss:$28 sps:$4 sm:$0xff]  }
 0x4d2   : > { %v5999_v61 = vpack.c.bf16 %v2156_v57, %v2154_v56  ;;  %v4973_v54 = vld [vmem:[#allocation14 + $0x80] ss:$28 sps:$4 sm:$0xff]   ;;  %v4976_v56 = vld [vmem:[#allocation14 + $0xb8] ss:$28 sps:$4 sm:$0xff]  }
 0x4d3   : > { %v6001_v5 = vpack.c.bf16 %v2157_v0, %v2155_v60  ;;  %3035 = vmatpush1.bf16.msra.mxu1 %v4940_v55  ;;  %v2121_v63 = vpop.f32.mrb[60].mxu1  ;;  %v4978_v55 = vld [vmem:[#allocation14 + $0xbc] ss:$28 sps:$4 sm:$0xff]   ;;  %v4981_v57 = vld [vmem:[#allocation14 + $0xf4] ss:$28 sps:$4 sm:$0xff]  }
 0x4d4   : > { %v2122_v11 = vadd.f32 %v2121_v63, %v5942_v1  ;;  %v2123_v12 = vpop.f32.mrb[61].mxu1  ;;  %3036 = vmatprep.subr.bf16.mxu1 %v4945_v58  ;;  %v4979_v58 = vld [vmem:[#allocation14 + $0xf0] ss:$28 sps:$4 sm:$0xff]   ;;  %v4982_v0 = vld [vmem:[#allocation14 + $0x128] ss:$28 sps:$4 sm:$0xff]  }
 0x4d5   : > { %v2124_v14 = vadd.f32 %v2123_v12, %v5945_v59  ;;  %v2125_v15 = vpop.f32.mrb[62].mxu1  ;;  %2991 = vmatprep.mubr.bf16.mxu1 %v6001_v5  ;;  %3286 = vmatprep.mubr.bf16.mxu0 %v6001_v5  ;;  %v4984_v60 = vld [vmem:[#allocation14 + $0x12c] ss:$28 sps:$4 sm:$0xff]   ;;  %v4987_v63 = vld [vmem:[#allocation14 + $0x164] ss:$28 sps:$4 sm:$0xff]  }
 0x4d6   : > { %v2126_v16 = vadd.f32 %v2125_v15, %v5942_v1  ;;  %v2127_v4 = vpop.f32.mrb[63].mxu1  ;;  %2992 = vmatmul.mubr.bf16.gmra.mrb[84].mxu1 %v5999_v61  ;;  %3287 = vmatmul.mubr.bf16.gmra.mrb[44].mxu0 %v5999_v61  ;;  %v2158_v19 = vmax.f32 %v2122_v11, 0.0  ;;  %v4990_v11 = vld [vmem:[#allocation14 + $0x19c] ss:$28 sps:$4 sm:$0xff]   ;;  %v4996_v15 = vld [vmem:[#allocation14 + $0x20c] ss:$28 sps:$4 sm:$0xff]  }
 0x4d7   : > { %v2128_v7 = vadd.f32 %v2127_v4, %v5945_v59  ;;  %3037 = vmatpush1.bf16.msra.mxu1 %v4943_v10  ;;  %v2159_v24 = vmax.f32 %v2124_v14, 0.0  ;;  %v4985_v10 = vld [vmem:[#allocation14 + $0x160] ss:$28 sps:$4 sm:$0xff]   ;;  %v4988_v12 = vld [vmem:[#allocation14 + $0x198] ss:$28 sps:$4 sm:$0xff]  }
 0x4d8   : > { %v2160_v23 = vmax.f32 %v2126_v16, 0.0  ;;  %3038 = vmatprep.subr.bf16.mxu1 %v4948_v13  ;;  %v4993_v13 = vld [vmem:[#allocation14 + $0x1d4] ss:$28 sps:$4 sm:$0xff]   ;;  %v4994_v16 = vld [vmem:[#allocation14 + $0x208] ss:$28 sps:$4 sm:$0xff]  }
 0x4d9   : > { %v2161_v25 = vmax.f32 %v2128_v7, 0.0  ;;  %v4991_v14 = vld [vmem:[#allocation14 + $0x1d0] ss:$28 sps:$4 sm:$0xff]   ;;  %v4999_v4 = vld [vmem:[#allocation14 + $0x244] ss:$28 sps:$4 sm:$0xff]  }
 0x4da   : > { %v6011_v21 = vpack.c.bf16 %v2160_v23, %v2158_v19  ;;  %v4997_v7 = vld [vmem:[#allocation14 + $0x240] ss:$28 sps:$4 sm:$0xff]   ;;  %v5000_v19 = vld [vmem:[#allocation14 + $0x278] ss:$28 sps:$4 sm:$0xff]  }
 0x4db   : > { %v6013_v26 = vpack.c.bf16 %v2161_v25, %v2159_v24  ;;  %3039 = vmatpush1.bf16.msra.mxu1 %v4946_v3  ;;  %v2131_v30 = vpop.f32.mrb[64].mxu1  ;;  %v5002_v3 = vld [vmem:[#allocation14 + $0x27c] ss:$28 sps:$4 sm:$0xff]   ;;  %v5005_v23 = vld [vmem:[#allocation14 + $0x2b4] ss:$28 sps:$4 sm:$0xff]  }
 0x4dc   : > { %v2132_v28 = vadd.f32 %v2131_v30, %v5942_v1  ;;  %v2133_v29 = vpop.f32.mrb[65].mxu1  ;;  %3040 = vmatprep.subr.bf16.mxu1 %v4951_v8  ;;  %v4957_v1 = vld [vmem:[#allocation14 + $0x2ac] ss:$28 sps:$4 sm:$0xff]   ;;  %v5011_v30 = vld [vmem:[#allocation14 + $0x324] ss:$28 sps:$4 sm:$0xff]  }
 0x4dd   : > { %v2134_v41 = vadd.f32 %v2133_v29, %v5945_v59  ;;  %v2135_v2 = vpop.f32.mrb[66].mxu1  ;;  %3001 = vmatprep.mubr.bf16.mxu1 %v6013_v26  ;;  %3294 = vmatprep.mubr.bf16.mxu0 %v6013_v26  ;;  %v4955_v59 = vld [vmem:[#allocation14 + $0x2a8] ss:$28 sps:$4 sm:$0xff]   ;;  %v5003_v8 = vld [vmem:[#allocation14 + $0x2b0] ss:$28 sps:$4 sm:$0xff]  }
 0x4de   : > { %v2136_v31 = vpop.f32.mrb[67].mxu1  ;;  %3002 = vmatmul.mubr.bf16.gmra.mrb[88].mxu1 %v6011_v21  ;;  %3295 = vmatmul.mubr.bf16.gmra.mrb[48].mxu0 %v6011_v21  ;;  %v2162_v33 = vmax.f32 %v2132_v28, 0.0  ;;  %v5008_v24 = vld [vmem:[#allocation14 + $0x2ec] ss:$28 sps:$4 sm:$0xff]   ;;  %v5014_v28 = vld [vmem:[#allocation14 + $0x35c] ss:$28 sps:$4 sm:$0xff]  }
 0x4df   : > { %v2163_v62 = vmax.f32 %v2134_v41, 0.0  ;;  %3041 = vmatpush1.bf16.msra.mxu1 %v4949_v27  ;;  %v5006_v25 = vld [vmem:[#allocation14 + $0x2e8] ss:$28 sps:$4 sm:$0xff]   ;;  %v5009_v27 = vld [vmem:[#allocation14 + $0x320] ss:$28 sps:$4 sm:$0xff]  }
 0x4e0   : > { %3042 = vmatprep.subr.bf16.mxu1 %v4954_v44  ;;  %v6024_v35 = vpack.c.bf16 %v2162_v33, %v2162_v33  ;;  %v5012_v29 = vld [vmem:[#allocation14 + $0x358] ss:$28 sps:$4 sm:$0xff]  }
 0x4e1   : > { %v6021_v34 = vpack.c.bf16 %v2163_v62, %v2163_v62 }
 0x4e3   : > { %3043 = vmatpush1.bf16.msra.mxu1 %v4952_v32  ;;  %3011 = vmatprep.mubr.bf16.mxu1 %v6021_v34 }
 0x4e4   : > { %3302 = vmatprep.mubr.bf16.mxu0 %v6021_v34  ;;  %3044 = vmatprep.subr.bf16.mxu1 %v4957_v1 }
 0x4e6   : > { %3012 = vmatmul.mubr.bf16.gmra.mrb[92].mxu1 %v6024_v35  ;;  %3303 = vmatmul.mubr.bf16.gmra.mrb[52].mxu0 %v6024_v35 }
 0x4e7   : > { %3045 = vmatpush1.bf16.msra.mxu1 %v4955_v59  ;;  %3052 = vmatprep.mubr.bf16.mxu1 %v5953_v47 }
 0x4e8   : > { %3046 = vmatprep.subr.bf16.mxu1 %v4960_v36 }
 0x4eb   : > { %3047 = vmatpush1.bf16.msra.mxu1 %v4958_v37 }
 0x4ec   : > { %3048 = vmatprep.subr.bf16.mxu1 %v4963_v42 }
 0x4ef   : > { %3049 = vmatpush1.bf16.msra.mxu1 %v4961_v43 }
 0x4f0   : > { %3050 = vmatprep.subr.bf16.mxu1 %v4966_v45 }
 0x4f3   : > { %3051 = vmatpush1.bf16.msra.mxu1 %v4964_v48 }
 0x4f4   : > { %3121 = vmatprep.subr.bf16.mxu1 %v4969_v49 }
 0x4f6   : > { %3053 = vmatmul.mubr.bf16.vlgmr.msra.gmra.mrb[96].mxu1 %v5951_v46 }
 0x4f7   : > { %3062 = vmatprep.mubr.bf16.mxu1 %v5965_v9  ;;  %3122 = vmatpush1.bf16.msra.mxu1 %v4967_v50 }
 0x4f8   : > { %3123 = vmatprep.subr.bf16.mxu1 %v4972_v51 }
 0x4fb   : > { %3124 = vmatpush1.bf16.msra.mxu1 %v4970_v52 }
 0x4fc   : > { %3125 = vmatprep.subr.bf16.mxu1 %v4975_v53 }
 0x4fe   : > { %3063 = vmatmul.mubr.bf16.gmra.mrb[100].mxu1 %v5963_v6 }
 0x4ff   : > { %3072 = vmatprep.mubr.bf16.mxu1 %v5977_v38  ;;  %3126 = vmatpush1.bf16.msra.mxu1 %v4973_v54 }
 0x500   : > { %3127 = vmatprep.subr.bf16.mxu1 %v4978_v55 }
 0x503   : > { %3128 = vmatpush1.bf16.msra.mxu1 %v4976_v56 }
 0x504   : > { %3129 = vmatprep.subr.bf16.mxu1 %v4981_v57 }
 0x506   : > { %3073 = vmatmul.mubr.bf16.gmra.mrb[104].mxu1 %v5975_v22 }
 0x507   : > { %3082 = vmatprep.mubr.bf16.mxu1 %v5989_v40  ;;  %3130 = vmatpush1.bf16.msra.mxu1 %v4979_v58 }
 0x508   : > { %3131 = vmatprep.subr.bf16.mxu1 %v4984_v60 }
 0x50b   : > { %3132 = vmatpush1.bf16.msra.mxu1 %v4982_v0 }
 0x50c   : > { %3133 = vmatprep.subr.bf16.mxu1 %v4987_v63 }
 0x50e   : > { %3083 = vmatmul.mubr.bf16.gmra.mrb[108].mxu1 %v5987_v39 }
 0x50f   : > { %3092 = vmatprep.mubr.bf16.mxu1 %v6001_v5  ;;  %3134 = vmatpush1.bf16.msra.mxu1 %v4985_v10 }
 0x510   : > { %3135 = vmatprep.subr.bf16.mxu1 %v4990_v11 }
 0x513   : > { %3136 = vmatpush1.bf16.msra.mxu1 %v4988_v12 }
 0x514   : > { %3137 = vmatprep.subr.bf16.mxu1 %v4993_v13 }
 0x516   : > { %3093 = vmatmul.mubr.bf16.gmra.mrb[112].mxu1 %v5999_v61 }
 0x517   : > { %3102 = vmatprep.mubr.bf16.mxu1 %v6013_v26  ;;  %3138 = vmatpush1.bf16.msra.mxu1 %v4991_v14 }
 0x518   : > { %3139 = vmatprep.subr.bf16.mxu1 %v4996_v15 }
 0x51b   : > { %3140 = vmatpush1.bf16.msra.mxu1 %v4994_v16 }
 0x51c   : > { %3141 = vmatprep.subr.bf16.mxu1 %v4999_v4 }
 0x51e   : > { %3103 = vmatmul.mubr.bf16.gmra.mrb[116].mxu1 %v6011_v21 }
 0x51f   : > { %3112 = vmatprep.mubr.bf16.mxu1 %v6021_v34  ;;  %3142 = vmatpush1.bf16.msra.mxu1 %v4997_v7 }
 0x520   : > { %3143 = vmatprep.subr.bf16.mxu1 %v5002_v3 }
 0x523   : > { %3144 = vmatpush1.bf16.msra.mxu1 %v5000_v19 }
 0x524   : > { %3145 = vmatprep.subr.bf16.mxu1 %v5005_v23 }
 0x526   : > { %3113 = vmatmul.mubr.bf16.gmra.mrb[120].mxu1 %v6024_v35 }
 0x527   : > { %3146 = vmatpush1.bf16.msra.mxu1 %v5003_v8  ;;  %3153 = vmatprep.mubr.bf16.mxu1 %v5953_v47  ;;  %v2334_v47 = vsub.s32 6, %v5856_v17 }
 0x528   : > { %3147 = vmatprep.subr.bf16.mxu1 %v5008_v24 }
 0x52b   : > { %3148 = vmatpush1.bf16.msra.mxu1 %v5006_v25 }
 0x52c   : > { %3149 = vmatprep.subr.bf16.mxu1 %v5011_v30 }
 0x52f   : > { %3150 = vmatpush1.bf16.msra.mxu1 %v5009_v27 }
 0x530   : > { %3151 = vmatprep.subr.bf16.mxu1 %v5014_v28 }
 0x533   : > { %3152 = vmatpush1.bf16.msra.mxu1 %v5012_v29 }
 0x536   : > { %3154 = vmatmul.mubr.bf16.vlgmr.msra.gmra.mrb[124].mxu1 %v5951_v46  ;;  %v6057_v46 = vld [vmem:[#allocation16] sm:$0x7f] }
 0x537   : > { %3163 = vmatprep.mubr.bf16.mxu1 %v5965_v9  ;;  %v6066_v9 = vrot.slane %v6057_v46, %v5862_v20 }
 0x53e   : > { %3164 = vmatmul.mubr.bf16.gmra.mrb[128].mxu1 %v5963_v6  ;;  %v6062_v6 = vrot.slane %v6057_v46, %v5859_v18 }
 0x53f   : > { %3173 = vmatprep.mubr.bf16.mxu1 %v5977_v38 }
 0x546   : > { %3174 = vmatmul.mubr.bf16.gmra.mrb[132].mxu1 %v5975_v22 }
 0x547   : > { %3183 = vmatprep.mubr.bf16.mxu1 %v5989_v40 }
 0x54e   : > { %3184 = vmatmul.mubr.bf16.gmra.mrb[136].mxu1 %v5987_v39  ;;  %v6069_v39 = vrot.slane %v6057_v46, %v2334_v47 }
 0x54f   : > { %3193 = vmatprep.mubr.bf16.mxu1 %v6001_v5 }
 0x556   : > { %3194 = vmatmul.mubr.bf16.gmra.mrb[140].mxu1 %v5999_v61 }
 0x557   : > { %3203 = vmatprep.mubr.bf16.mxu1 %v6013_v26 }
 0x55e   : > { %3204 = vmatmul.mubr.bf16.gmra.mrb[144].mxu1 %v6011_v21 }
 0x55f   : > { %3213 = vmatprep.mubr.bf16.mxu1 %v6021_v34 }
 0x566   : > { %3214 = vmatmul.mubr.bf16.gmra.mrb[148].mxu1 %v6024_v35 }
 0x589   : > { %v2953_v22 = vpop.f32.mrb[68].mxu1  ;;  %v4378_v38 = vpop.f32.mrb[28].mxu0 }
 0x58a   : > { %v2954_v40 = vadd.f32 %v2953_v22, %v6062_v6  ;;  %v2955_v61 = vpop.f32.mrb[69].mxu1  ;;  %v4379_v5 = vpop.f32.mrb[29].mxu0 }
 0x58b   : > { %v2956_v21 = vadd.f32 %v2955_v61, %v6066_v9  ;;  %v4380_v26 = vadd.f32 %v4379_v5, %v4378_v38  ;;  %v2957_v44 = vpop.f32.mrb[70].mxu1  ;;  %v4381_v18 = vpop.f32.mrb[30].mxu0 }
 0x58c   : > { %v3310_v41 = vmax.f32 %v2954_v40, 0.0  ;;  %v2958_v2 = vadd.f32 %v2957_v44, %v6062_v6  ;;  %v2959_v20 = vpop.f32.mrb[71].mxu1  ;;  %v4382_v31 = vpop.f32.mrb[31].mxu0 }
 0x58d   : > { %v3311_v62 = vmax.f32 %v2956_v21, 0.0  ;;  %v3257_v32 = vadd.f32 %v4380_v26, %v6069_v39  ;;  %v2960_v33 = vadd.f32 %v2959_v20, %v6066_v9  ;;  %v4383_v1 = vadd.f32 %v4382_v31, %v4381_v18 }
 0x58e   : > { %v3317_v34 = vmax.f32 %v2958_v2, 0.0 }
 0x58f   : > { %v4252_v59 = vpack.c.bf16 %v3311_v62, %v3310_v41  ;;  %v3316_v35 = vmax.f32 %v3257_v32, 0.0  ;;  %v3318_v36 = vmax.f32 %v2960_v33, 0.0  ;;  %v3260_v37 = vadd.f32 %v4383_v1, %v6069_v39 }
 0x591   : > { %3694 = vst [vmem:[%s6078_s13] sm:$0xff] %v4252_v59  ;;  %v4255_v42 = vpack.c.bf16 %v3316_v35, %v3316_v35  ;;  %v4256_v43 = vpack.c.bf16 %v3318_v36, %v3317_v34  ;;  %v3323_v45 = vmax.f32 %v3260_v37, 0.0  ;;  %v2963_v48 = vpop.f32.mrb[72].mxu1  ;;  %v4384_v49 = vpop.f32.mrb[32].mxu0 }
 0x592   : > { %v2964_v50 = vadd.f32 %v2963_v48, %v6062_v6  ;;  %v2965_v51 = vpop.f32.mrb[73].mxu1  ;;  %v4385_v52 = vpop.f32.mrb[33].mxu0 }
 0x593   : > { %3698 = vst.msk [vmem:[%s6078_s13 + $0x18] sm:$0xf] %vm3697_vm1, %v4255_v42  ;;  %3699 = vst [vmem:[%s6078_s13 + $0x1c] sm:$0xff] %v4256_v43  ;;  %v4259_v53 = vpack.c.bf16 %v3323_v45, %v3323_v45  ;;  %v2966_v54 = vadd.f32 %v2965_v51, %v6066_v9  ;;  %v4386_v55 = vadd.f32 %v4385_v52, %v4384_v49  ;;  %v2967_v56 = vpop.f32.mrb[74].mxu1  ;;  %v4387_v57 = vpop.f32.mrb[34].mxu0 }
 0x594   : > { %v3324_v58 = vmax.f32 %v2964_v50, 0.0  ;;  %v2968_v60 = vadd.f32 %v2967_v56, %v6062_v6  ;;  %v2969_v0 = vpop.f32.mrb[75].mxu1  ;;  %v4388_v63 = vpop.f32.mrb[35].mxu0 }
 0x595   : > { %3702 = vst.msk [vmem:[%s6078_s13 + $0x34] sm:$0xf] %vm3697_vm1, %v4259_v53  ;;  %v3325_v10 = vmax.f32 %v2966_v54, 0.0  ;;  %v3265_v11 = vadd.f32 %v4386_v55, %v6069_v39  ;;  %v2970_v12 = vadd.f32 %v2969_v0, %v6066_v9  ;;  %v4389_v13 = vadd.f32 %v4388_v63, %v4387_v57 }
 0x596   : > { %v3331_v14 = vmax.f32 %v2968_v60, 0.0 }
 0x597   : > { %v4260_v15 = vpack.c.bf16 %v3325_v10, %v3324_v58  ;;  %v3330_v16 = vmax.f32 %v3265_v11, 0.0  ;;  %v3332_v4 = vmax.f32 %v2970_v12, 0.0  ;;  %v3268_v7 = vadd.f32 %v4389_v13, %v6069_v39 }
 0x599   : > { %3703 = vst [vmem:[%s6078_s13 + $0x38] sm:$0xff] %v4260_v15  ;;  %v4263_v3 = vpack.c.bf16 %v3330_v16, %v3330_v16  ;;  %v4264_v19 = vpack.c.bf16 %v3332_v4, %v3331_v14  ;;  %v3337_v23 = vmax.f32 %v3268_v7, 0.0  ;;  %v2973_v8 = vpop.f32.mrb[76].mxu1  ;;  %v4390_v24 = vpop.f32.mrb[36].mxu0 }
 0x59a   : > { %v2974_v25 = vadd.f32 %v2973_v8, %v6062_v6  ;;  %v2975_v30 = vpop.f32.mrb[77].mxu1  ;;  %v4391_v27 = vpop.f32.mrb[37].mxu0 }
 0x59b   : > { %3706 = vst.msk [vmem:[%s6078_s13 + $0x50] sm:$0xf] %vm3697_vm1, %v4263_v3  ;;  %3707 = vst [vmem:[%s6078_s13 + $0x54] sm:$0xff] %v4264_v19  ;;  %v4267_v28 = vpack.c.bf16 %v3337_v23, %v3337_v23  ;;  %v2976_v29 = vadd.f32 %v2975_v30, %v6066_v9  ;;  %v4392_v47 = vadd.f32 %v4391_v27, %v4390_v24  ;;  %v2977_v22 = vpop.f32.mrb[78].mxu1  ;;  %v4393_v38 = vpop.f32.mrb[38].mxu0 }
 0x59c   : > { %v3338_v40 = vmax.f32 %v2974_v25, 0.0  ;;  %v2978_v61 = vadd.f32 %v2977_v22, %v6062_v6  ;;  %v2979_v5 = vpop.f32.mrb[79].mxu1  ;;  %v4394_v21 = vpop.f32.mrb[39].mxu0 }
 0x59d   : > { %3710 = vst.msk [vmem:[%s6078_s13 + $0x6c] sm:$0xf] %vm3697_vm1, %v4267_v28  ;;  %v3339_v26 = vmax.f32 %v2976_v29, 0.0  ;;  %v3273_v44 = vadd.f32 %v4392_v47, %v6069_v39  ;;  %v2980_v18 = vadd.f32 %v2979_v5, %v6066_v9  ;;  %v4395_v41 = vadd.f32 %v4394_v21, %v4393_v38 }
 0x59e   : > { %v3345_v2 = vmax.f32 %v2978_v61, 0.0 }
 0x59f   : > { %v4268_v20 = vpack.c.bf16 %v3339_v26, %v3338_v40  ;;  %v3344_v31 = vmax.f32 %v3273_v44, 0.0  ;;  %v3346_v62 = vmax.f32 %v2980_v18, 0.0  ;;  %v3276_v32 = vadd.f32 %v4395_v41, %v6069_v39 }
 0x5a1   : > { %3711 = vst [vmem:[%s6078_s13 + $0x70] sm:$0xff] %v4268_v20  ;;  %v4271_v33 = vpack.c.bf16 %v3344_v31, %v3344_v31  ;;  %v4272_v1 = vpack.c.bf16 %v3346_v62, %v3345_v2  ;;  %v3351_v34 = vmax.f32 %v3276_v32, 0.0  ;;  %v2983_v59 = vpop.f32.mrb[80].mxu1  ;;  %v4396_v35 = vpop.f32.mrb[40].mxu0 }
 0x5a2   : > { %v2984_v36 = vadd.f32 %v2983_v59, %v6062_v6  ;;  %v2985_v37 = vpop.f32.mrb[81].mxu1  ;;  %v4397_v42 = vpop.f32.mrb[41].mxu0 }
 0x5a3   : > { %3714 = vst.msk [vmem:[%s6078_s13 + $0x88] sm:$0xf] %vm3697_vm1, %v4271_v33  ;;  %3715 = vst [vmem:[%s6078_s13 + $0x8c] sm:$0xff] %v4272_v1  ;;  %v4275_v43 = vpack.c.bf16 %v3351_v34, %v3351_v34  ;;  %v2986_v45 = vadd.f32 %v2985_v37, %v6066_v9  ;;  %v4398_v48 = vadd.f32 %v4397_v42, %v4396_v35  ;;  %v2987_v49 = vpop.f32.mrb[82].mxu1  ;;  %v4399_v50 = vpop.f32.mrb[42].mxu0 }
 0x5a4   : > { %v3352_v51 = vmax.f32 %v2984_v36, 0.0  ;;  %v2988_v52 = vadd.f32 %v2987_v49, %v6062_v6  ;;  %v2989_v53 = vpop.f32.mrb[83].mxu1  ;;  %v4400_v54 = vpop.f32.mrb[43].mxu0 }
 0x5a5   : > { %3718 = vst.msk [vmem:[%s6078_s13 + $0xa4] sm:$0xf] %vm3697_vm1, %v4275_v43  ;;  %v3353_v55 = vmax.f32 %v2986_v45, 0.0  ;;  %v3281_v56 = vadd.f32 %v4398_v48, %v6069_v39  ;;  %v2990_v57 = vadd.f32 %v2989_v53, %v6066_v9  ;;  %v4401_v58 = vadd.f32 %v4400_v54, %v4399_v50 }
 0x5a6   : > { %v3359_v60 = vmax.f32 %v2988_v52, 0.0 }
 0x5a7   : > { %v4276_v0 = vpack.c.bf16 %v3353_v55, %v3352_v51  ;;  %v3358_v63 = vmax.f32 %v3281_v56, 0.0  ;;  %v3360_v10 = vmax.f32 %v2990_v57, 0.0  ;;  %v3284_v11 = vadd.f32 %v4401_v58, %v6069_v39 }
 0x5a9   : > { %3719 = vst [vmem:[%s6078_s13 + $0xa8] sm:$0xff] %v4276_v0  ;;  %v4279_v12 = vpack.c.bf16 %v3358_v63, %v3358_v63  ;;  %v4280_v13 = vpack.c.bf16 %v3360_v10, %v3359_v60  ;;  %v3365_v14 = vmax.f32 %v3284_v11, 0.0  ;;  %v2993_v15 = vpop.f32.mrb[84].mxu1  ;;  %v4402_v16 = vpop.f32.mrb[44].mxu0 }
 0x5aa   : > { %v2994_v4 = vadd.f32 %v2993_v15, %v6062_v6  ;;  %v2995_v7 = vpop.f32.mrb[85].mxu1  ;;  %v4403_v3 = vpop.f32.mrb[45].mxu0 }
 0x5ab   : > { %3722 = vst.msk [vmem:[%s6078_s13 + $0xc0] sm:$0xf] %vm3697_vm1, %v4279_v12  ;;  %3723 = vst [vmem:[%s6078_s13 + $0xc4] sm:$0xff] %v4280_v13  ;;  %v4283_v19 = vpack.c.bf16 %v3365_v14, %v3365_v14  ;;  %v2996_v23 = vadd.f32 %v2995_v7, %v6066_v9  ;;  %v4404_v8 = vadd.f32 %v4403_v3, %v4402_v16  ;;  %v2997_v24 = vpop.f32.mrb[86].mxu1  ;;  %v4405_v25 = vpop.f32.mrb[46].mxu0 }
 0x5ac   : > { %v3366_v30 = vmax.f32 %v2994_v4, 0.0  ;;  %v2998_v27 = vadd.f32 %v2997_v24, %v6062_v6  ;;  %v2999_v28 = vpop.f32.mrb[87].mxu1  ;;  %v4406_v29 = vpop.f32.mrb[47].mxu0 }
 0x5ad   : > { %3726 = vst.msk [vmem:[%s6078_s13 + $0xdc] sm:$0xf] %vm3697_vm1, %v4283_v19  ;;  %v3367_v47 = vmax.f32 %v2996_v23, 0.0  ;;  %v3289_v22 = vadd.f32 %v4404_v8, %v6069_v39  ;;  %v3000_v38 = vadd.f32 %v2999_v28, %v6066_v9  ;;  %v4407_v40 = vadd.f32 %v4406_v29, %v4405_v25 }
 0x5ae   : > { %v3373_v61 = vmax.f32 %v2998_v27, 0.0 }
 0x5af   : > { %v4284_v5 = vpack.c.bf16 %v3367_v47, %v3366_v30  ;;  %v3372_v21 = vmax.f32 %v3289_v22, 0.0  ;;  %v3374_v26 = vmax.f32 %v3000_v38, 0.0  ;;  %v3292_v44 = vadd.f32 %v4407_v40, %v6069_v39 }
 0x5b0   : > { %v2318_v30 = vsub.s32 2, %v5856_v17 }
 0x5b1   : > { %3727 = vst [vmem:[%s6078_s13 + $0xe0] sm:$0xff] %v4284_v5  ;;  %v4287_v18 = vpack.c.bf16 %v3372_v21, %v3372_v21  ;;  %v4288_v41 = vpack.c.bf16 %v3374_v26, %v3373_v61  ;;  %v3379_v2 = vmax.f32 %v3292_v44, 0.0  ;;  %v3003_v20 = vpop.f32.mrb[88].mxu1  ;;  %v4408_v31 = vpop.f32.mrb[48].mxu0 }
 0x5b2   : > { %v3004_v62 = vadd.f32 %v3003_v20, %v6062_v6  ;;  %v3005_v32 = vpop.f32.mrb[89].mxu1  ;;  %v4409_v33 = vpop.f32.mrb[49].mxu0  ;;  %v6155_v27 = vrot.slane %v6057_v46, %v2318_v30 }
 0x5b3   : > { %3730 = vst.msk [vmem:[%s6078_s13 + $0xf8] sm:$0xf] %vm3697_vm1, %v4287_v18  ;;  %3731 = vst [vmem:[%s6078_s13 + $0xfc] sm:$0xff] %v4288_v41  ;;  %v4291_v1 = vpack.c.bf16 %v3379_v2, %v3379_v2  ;;  %v3006_v34 = vadd.f32 %v3005_v32, %v6066_v9  ;;  %v4410_v59 = vadd.f32 %v4409_v33, %v4408_v31  ;;  %v3007_v35 = vpop.f32.mrb[90].mxu1  ;;  %v4411_v36 = vpop.f32.mrb[50].mxu0 }
 0x5b4   : > { %v3380_v37 = vmax.f32 %v3004_v62, 0.0  ;;  %v3008_v42 = vadd.f32 %v3007_v35, %v6062_v6  ;;  %v3009_v43 = vpop.f32.mrb[91].mxu1  ;;  %v4412_v45 = vpop.f32.mrb[51].mxu0 }
 0x5b5   : > { %3734 = vst.msk [vmem:[%s6078_s13 + $0x114] sm:$0xf] %vm3697_vm1, %v4291_v1  ;;  %v3381_v48 = vmax.f32 %v3006_v34, 0.0  ;;  %v3297_v49 = vadd.f32 %v4410_v59, %v6069_v39  ;;  %v3010_v50 = vadd.f32 %v3009_v43, %v6066_v9  ;;  %v4413_v51 = vadd.f32 %v4412_v45, %v4411_v36 }
 0x5b6   : > { %v3387_v52 = vmax.f32 %v3008_v42, 0.0 }
 0x5b7   : > { %v4292_v53 = vpack.c.bf16 %v3381_v48, %v3380_v37  ;;  %v3386_v54 = vmax.f32 %v3297_v49, 0.0  ;;  %v3388_v55 = vmax.f32 %v3010_v50, 0.0  ;;  %v3300_v56 = vadd.f32 %v4413_v51, %v6069_v39 }
 0x5b9   : > { %3735 = vst [vmem:[%s6078_s13 + $0x118] sm:$0xff] %v4292_v53  ;;  %v4295_v57 = vpack.c.bf16 %v3386_v54, %v3386_v54  ;;  %v4296_v58 = vpack.c.bf16 %v3388_v55, %v3387_v52  ;;  %v3393_v60 = vmax.f32 %v3300_v56, 0.0  ;;  %v3013_v0 = vpop.f32.mrb[92].mxu1  ;;  %v4414_v63 = vpop.f32.mrb[52].mxu0 }
 0x5ba   : > { %v3014_v10 = vadd.f32 %v3013_v0, %v6062_v6  ;;  %v3015_v11 = vpop.f32.mrb[93].mxu1  ;;  %v4415_v12 = vpop.f32.mrb[53].mxu0 }
 0x5bb   : > { %3738 = vst.msk [vmem:[%s6078_s13 + $0x130] sm:$0xf] %vm3697_vm1, %v4295_v57  ;;  %3739 = vst [vmem:[%s6078_s13 + $0x134] sm:$0xff] %v4296_v58  ;;  %v4299_v13 = vpack.c.bf16 %v3393_v60, %v3393_v60  ;;  %v3016_v14 = vadd.f32 %v3015_v11, %v6066_v9  ;;  %v4416_v15 = vadd.f32 %v4415_v12, %v4414_v63  ;;  %v3017_v16 = vpop.f32.mrb[94].mxu1  ;;  %v4417_v4 = vpop.f32.mrb[54].mxu0  ;;  %v2322_v9 = vsub.s32 3, %v5856_v17 }
 0x5bc   : > { %v3394_v7 = vmax.f32 %v3014_v10, 0.0  ;;  %v3018_v3 = vpop.f32.mrb[95].mxu1  ;;  %v4418_v19 = vpop.f32.mrb[55].mxu0 }
 0x5bd   : > { %3742 = vst.msk [vmem:[%s6078_s13 + $0x14c] sm:$0xf] %vm3697_vm1, %v4299_v13  ;;  %v3395_v23 = vmax.f32 %v3016_v14, 0.0  ;;  %v3305_v6 = vadd.f32 %v4416_v15, %v6069_v39  ;;  %v6158_v28 = vrot.slane %v6057_v46, %v2322_v9 }
 0x5bf   : > { %v4300_v8 = vpack.c.bf16 %v3395_v23, %v3394_v7  ;;  %v3400_v24 = vmax.f32 %v3305_v6, 0.0 }
 0x5c1   : > { %3743 = vst [vmem:[%s6078_s13 + $0x150] sm:$0xff] %v4300_v8  ;;  %v4303_v25 = vpack.c.bf16 %v3400_v24, %v3400_v24 }
 0x5c3   : > { %3746 = vst.msk [vmem:[%s6078_s13 + $0x168] sm:$0xf] %vm3697_vm1, %v4303_v25 }
 0x5c9   : > { %v3054_v29 = vpop.f32.mrb[96].mxu1 }
 0x5ca   : > { %v3055_v39 = vadd.f32 %v3054_v29, %v6155_v27  ;;  %v3056_v47 = vpop.f32.mrb[97].mxu1 }
 0x5cb   : > { %v3057_v22 = vadd.f32 %v3056_v47, %v6158_v28  ;;  %v3058_v38 = vpop.f32.mrb[98].mxu1 }
 0x5cc   : > { %v3312_v40 = vmax.f32 %v3055_v39, 0.0  ;;  %v3059_v61 = vadd.f32 %v3058_v38, %v6155_v27  ;;  %v3060_v5 = vpop.f32.mrb[99].mxu1 }
 0x5cd   : > { %v3313_v21 = vmax.f32 %v3057_v22, 0.0  ;;  %v3061_v26 = vadd.f32 %v3060_v5, %v6158_v28 }
 0x5ce   : > { %v3319_v44 = vmax.f32 %v3059_v61, 0.0 }
 0x5cf   : > { %v4253_v18 = vpack.c.bf16 %v3313_v21, %v3312_v40  ;;  %v3320_v41 = vmax.f32 %v3061_v26, 0.0 }
 0x5d1   : > { %3695 = vst [vmem:[%s6078_s13 + $0x8] sm:$0xff] %v4253_v18  ;;  %v4257_v2 = vpack.c.bf16 %v3320_v41, %v3319_v44  ;;  %v3064_v20 = vpop.f32.mrb[100].mxu1 }
 0x5d2   : > { %v3065_v31 = vadd.f32 %v3064_v20, %v6155_v27  ;;  %v3066_v62 = vpop.f32.mrb[101].mxu1 }
 0x5d3   : > { %3700 = vst [vmem:[%s6078_s13 + $0x24] sm:$0xff] %v4257_v2  ;;  %v3067_v32 = vadd.f32 %v3066_v62, %v6158_v28  ;;  %v3068_v33 = vpop.f32.mrb[102].mxu1 }
 0x5d4   : > { %v3326_v1 = vmax.f32 %v3065_v31, 0.0  ;;  %v3069_v34 = vadd.f32 %v3068_v33, %v6155_v27  ;;  %v3070_v59 = vpop.f32.mrb[103].mxu1 }
 0x5d5   : > { %v3327_v35 = vmax.f32 %v3067_v32, 0.0  ;;  %v3071_v36 = vadd.f32 %v3070_v59, %v6158_v28 }
 0x5d6   : > { %v3333_v37 = vmax.f32 %v3069_v34, 0.0 }
 0x5d7   : > { %v4261_v42 = vpack.c.bf16 %v3327_v35, %v3326_v1  ;;  %v3334_v43 = vmax.f32 %v3071_v36, 0.0 }
 0x5d9   : > { %3704 = vst [vmem:[%s6078_s13 + $0x40] sm:$0xff] %v4261_v42  ;;  %v4265_v45 = vpack.c.bf16 %v3334_v43, %v3333_v37  ;;  %v3074_v48 = vpop.f32.mrb[104].mxu1 }
 0x5da   : > { %v3075_v49 = vadd.f32 %v3074_v48, %v6155_v27  ;;  %v3076_v50 = vpop.f32.mrb[105].mxu1 }
 0x5db   : > { %3708 = vst [vmem:[%s6078_s13 + $0x5c] sm:$0xff] %v4265_v45  ;;  %v3077_v51 = vadd.f32 %v3076_v50, %v6158_v28  ;;  %v3078_v52 = vpop.f32.mrb[106].mxu1 }
 0x5dc   : > { %v3340_v53 = vmax.f32 %v3075_v49, 0.0  ;;  %v3079_v54 = vadd.f32 %v3078_v52, %v6155_v27  ;;  %v3080_v55 = vpop.f32.mrb[107].mxu1 }
 0x5dd   : > { %v3341_v56 = vmax.f32 %v3077_v51, 0.0  ;;  %v3081_v57 = vadd.f32 %v3080_v55, %v6158_v28 }
 0x5de   : > { %v3347_v58 = vmax.f32 %v3079_v54, 0.0  ;;  %v2330_v54 = vsub.s32 5, %v5856_v17 }
 0x5df   : > { %v4269_v60 = vpack.c.bf16 %v3341_v56, %v3340_v53  ;;  %v3348_v0 = vmax.f32 %v3081_v57, 0.0  ;;  %v2326_v53 = vsub.s32 4, %v5856_v17 }
 0x5e1   : > { %3712 = vst [vmem:[%s6078_s13 + $0x78] sm:$0xff] %v4269_v60  ;;  %v4273_v63 = vpack.c.bf16 %v3348_v0, %v3347_v58  ;;  %v3084_v10 = vpop.f32.mrb[108].mxu1  ;;  %v6202_v55 = vrot.slane %v6057_v46, %v2326_v53 }
 0x5e2   : > { %v3085_v11 = vadd.f32 %v3084_v10, %v6155_v27  ;;  %v3086_v12 = vpop.f32.mrb[109].mxu1 }
 0x5e3   : > { %3716 = vst [vmem:[%s6078_s13 + $0x94] sm:$0xff] %v4273_v63  ;;  %v3087_v13 = vadd.f32 %v3086_v12, %v6158_v28  ;;  %v3088_v14 = vpop.f32.mrb[110].mxu1 }
 0x5e4   : > { %v3354_v15 = vmax.f32 %v3085_v11, 0.0  ;;  %v3089_v16 = vadd.f32 %v3088_v14, %v6155_v27  ;;  %v3090_v4 = vpop.f32.mrb[111].mxu1 }
 0x5e5   : > { %v3355_v7 = vmax.f32 %v3087_v13, 0.0  ;;  %v3091_v3 = vadd.f32 %v3090_v4, %v6158_v28 }
 0x5e6   : > { %v3361_v19 = vmax.f32 %v3089_v16, 0.0 }
 0x5e7   : > { %v4277_v23 = vpack.c.bf16 %v3355_v7, %v3354_v15  ;;  %v3362_v6 = vmax.f32 %v3091_v3, 0.0 }
 0x5e9   : > { %3720 = vst [vmem:[%s6078_s13 + $0xb0] sm:$0xff] %v4277_v23  ;;  %v4281_v8 = vpack.c.bf16 %v3362_v6, %v3361_v19  ;;  %v3094_v24 = vpop.f32.mrb[112].mxu1 }
 0x5ea   : > { %v3095_v25 = vadd.f32 %v3094_v24, %v6155_v27  ;;  %v3096_v30 = vpop.f32.mrb[113].mxu1 }
 0x5eb   : > { %3724 = vst [vmem:[%s6078_s13 + $0xcc] sm:$0xff] %v4281_v8  ;;  %v3097_v9 = vadd.f32 %v3096_v30, %v6158_v28  ;;  %v3098_v29 = vpop.f32.mrb[114].mxu1 }
 0x5ec   : > { %v3368_v39 = vmax.f32 %v3095_v25, 0.0  ;;  %v3099_v47 = vadd.f32 %v3098_v29, %v6155_v27  ;;  %v3100_v22 = vpop.f32.mrb[115].mxu1 }
 0x5ed   : > { %v3369_v38 = vmax.f32 %v3097_v9, 0.0  ;;  %v3101_v40 = vadd.f32 %v3100_v22, %v6158_v28 }
 0x5ee   : > { %v3375_v61 = vmax.f32 %v3099_v47, 0.0 }
 0x5ef   : > { %v4285_v5 = vpack.c.bf16 %v3369_v38, %v3368_v39  ;;  %v3376_v21 = vmax.f32 %v3101_v40, 0.0 }
 0x5f1   : > { %3728 = vst [vmem:[%s6078_s13 + $0xe8] sm:$0xff] %v4285_v5  ;;  %v4289_v26 = vpack.c.bf16 %v3376_v21, %v3375_v61  ;;  %v3104_v44 = vpop.f32.mrb[116].mxu1 }
 0x5f2   : > { %v3105_v18 = vadd.f32 %v3104_v44, %v6155_v27  ;;  %v3106_v41 = vpop.f32.mrb[117].mxu1 }
 0x5f3   : > { %3732 = vst [vmem:[%s6078_s13 + $0x104] sm:$0xff] %v4289_v26  ;;  %v3107_v2 = vadd.f32 %v3106_v41, %v6158_v28  ;;  %v3108_v20 = vpop.f32.mrb[118].mxu1 }
 0x5f4   : > { %v3382_v31 = vmax.f32 %v3105_v18, 0.0  ;;  %v3109_v62 = vadd.f32 %v3108_v20, %v6155_v27  ;;  %v3110_v32 = vpop.f32.mrb[119].mxu1 }
 0x5f5   : > { %v3383_v33 = vmax.f32 %v3107_v2, 0.0  ;;  %v3111_v1 = vadd.f32 %v3110_v32, %v6158_v28 }
 0x5f6   : > { %v3389_v34 = vmax.f32 %v3109_v62, 0.0 }
 0x5f7   : > { %v4293_v59 = vpack.c.bf16 %v3383_v33, %v3382_v31  ;;  %v3390_v35 = vmax.f32 %v3111_v1, 0.0 }
 0x5f9   : > { %3736 = vst [vmem:[%s6078_s13 + $0x120] sm:$0xff] %v4293_v59  ;;  %v4297_v36 = vpack.c.bf16 %v3390_v35, %v3389_v34  ;;  %v3114_v37 = vpop.f32.mrb[120].mxu1 }
 0x5fa   : > { %v3115_v42 = vadd.f32 %v3114_v37, %v6155_v27  ;;  %v3116_v43 = vpop.f32.mrb[121].mxu1  ;;  %v6205_v27 = vrot.slane %v6057_v46, %v2330_v54 }
 0x5fb   : > { %3740 = vst [vmem:[%s6078_s13 + $0x13c] sm:$0xff] %v4297_v36  ;;  %v3117_v45 = vadd.f32 %v3116_v43, %v6158_v28  ;;  %v3118_v48 = vpop.f32.mrb[122].mxu1 }
 0x5fc   : > { %v3396_v49 = vmax.f32 %v3115_v42, 0.0  ;;  %v3119_v50 = vpop.f32.mrb[123].mxu1 }
 0x5fd   : > { %v3397_v51 = vmax.f32 %v3117_v45, 0.0 }
 0x5ff   : > { %v4301_v52 = vpack.c.bf16 %v3397_v51, %v3396_v49 }
 0x601   : > { %3744 = vst [vmem:[%s6078_s13 + $0x158] sm:$0xff] %v4301_v52 }
 0x609   : > { %v3155_v56 = vpop.f32.mrb[124].mxu1 }
 0x60a   : > { %v3156_v28 = vadd.f32 %v3155_v56, %v6202_v55  ;;  %v3157_v57 = vpop.f32.mrb[125].mxu1 }
 0x60b   : > { %v3158_v58 = vadd.f32 %v3157_v57, %v6205_v27  ;;  %v3159_v60 = vpop.f32.mrb[126].mxu1 }
 0x60c   : > { %v3314_v0 = vmax.f32 %v3156_v28, 0.0  ;;  %v3160_v63 = vadd.f32 %v3159_v60, %v6202_v55  ;;  %v3161_v10 = vpop.f32.mrb[127].mxu1 }
 0x60d   : > { %v3315_v17 = vmax.f32 %v3158_v58, 0.0  ;;  %v3162_v11 = vadd.f32 %v3161_v10, %v6205_v27 }
 0x60e   : > { %v3321_v12 = vmax.f32 %v3160_v63, 0.0 }
 0x60f   : > { %v4254_v13 = vpack.c.bf16 %v3315_v17, %v3314_v0  ;;  %v3322_v14 = vmax.f32 %v3162_v11, 0.0 }
 0x611   : > { %3696 = vst [vmem:[%s6078_s13 + $0x10] sm:$0xff] %v4254_v13  ;;  %v4258_v46 = vpack.c.bf16 %v3322_v14, %v3321_v12  ;;  %v3165_v15 = vpop.f32.mrb[128].mxu1 }
 0x612   : > { %v3166_v16 = vadd.f32 %v3165_v15, %v6202_v55  ;;  %v3167_v4 = vpop.f32.mrb[129].mxu1 }
 0x613   : > { %3701 = vst [vmem:[%s6078_s13 + $0x2c] sm:$0xff] %v4258_v46  ;;  %v3168_v7 = vadd.f32 %v3167_v4, %v6205_v27  ;;  %v3169_v3 = vpop.f32.mrb[130].mxu1 }
 0x614   : > { %v3328_v19 = vmax.f32 %v3166_v16, 0.0  ;;  %v3170_v23 = vadd.f32 %v3169_v3, %v6202_v55  ;;  %v3171_v6 = vpop.f32.mrb[131].mxu1 }
 0x615   : > { %v3329_v8 = vmax.f32 %v3168_v7, 0.0  ;;  %v3172_v24 = vadd.f32 %v3171_v6, %v6205_v27 }
 0x616   : > { %v3335_v25 = vmax.f32 %v3170_v23, 0.0 }
 0x617   : > { %v4262_v30 = vpack.c.bf16 %v3329_v8, %v3328_v19  ;;  %v3336_v9 = vmax.f32 %v3172_v24, 0.0 }
 0x619   : > { %3705 = vst [vmem:[%s6078_s13 + $0x48] sm:$0xff] %v4262_v30  ;;  %v4266_v29 = vpack.c.bf16 %v3336_v9, %v3335_v25  ;;  %v3175_v39 = vpop.f32.mrb[132].mxu1 }
 0x61a   : > { %v3176_v47 = vadd.f32 %v3175_v39, %v6202_v55  ;;  %v3177_v22 = vpop.f32.mrb[133].mxu1 }
 0x61b   : > { %3709 = vst [vmem:[%s6078_s13 + $0x64] sm:$0xff] %v4266_v29  ;;  %v3178_v38 = vadd.f32 %v3177_v22, %v6205_v27  ;;  %v3179_v40 = vpop.f32.mrb[134].mxu1 }
 0x61c   : > { %v3342_v61 = vmax.f32 %v3176_v47, 0.0  ;;  %v3180_v5 = vadd.f32 %v3179_v40, %v6202_v55  ;;  %v3181_v21 = vpop.f32.mrb[135].mxu1 }
 0x61d   : > { %v3343_v26 = vmax.f32 %v3178_v38, 0.0  ;;  %v3182_v44 = vadd.f32 %v3181_v21, %v6205_v27 }
 0x61e   : > { %v3349_v18 = vmax.f32 %v3180_v5, 0.0 }
 0x61f   : > { %v4270_v41 = vpack.c.bf16 %v3343_v26, %v3342_v61  ;;  %v3350_v2 = vmax.f32 %v3182_v44, 0.0 }
 0x621   : > { %3713 = vst [vmem:[%s6078_s13 + $0x80] sm:$0xff] %v4270_v41  ;;  %v4274_v20 = vpack.c.bf16 %v3350_v2, %v3349_v18  ;;  %v3185_v31 = vpop.f32.mrb[136].mxu1 }
 0x622   : > { %v3186_v62 = vadd.f32 %v3185_v31, %v6202_v55  ;;  %v3187_v32 = vpop.f32.mrb[137].mxu1 }
 0x623   : > { %3717 = vst [vmem:[%s6078_s13 + $0x9c] sm:$0xff] %v4274_v20  ;;  %v3188_v33 = vadd.f32 %v3187_v32, %v6205_v27  ;;  %v3189_v1 = vpop.f32.mrb[138].mxu1 }
 0x624   : > { %v3356_v34 = vmax.f32 %v3186_v62, 0.0  ;;  %v3190_v59 = vadd.f32 %v3189_v1, %v6202_v55  ;;  %v3191_v35 = vpop.f32.mrb[139].mxu1 }
 0x625   : > { %v3357_v36 = vmax.f32 %v3188_v33, 0.0  ;;  %v3192_v37 = vadd.f32 %v3191_v35, %v6205_v27 }
 0x626   : > { %v3363_v42 = vmax.f32 %v3190_v59, 0.0 }
 0x627   : > { %v4278_v43 = vpack.c.bf16 %v3357_v36, %v3356_v34  ;;  %v3364_v45 = vmax.f32 %v3192_v37, 0.0 }
 0x629   : > { %3721 = vst [vmem:[%s6078_s13 + $0xb8] sm:$0xff] %v4278_v43  ;;  %v4282_v48 = vpack.c.bf16 %v3364_v45, %v3363_v42  ;;  %v3195_v49 = vpop.f32.mrb[140].mxu1 }
 0x62a   : > { %v3196_v50 = vadd.f32 %v3195_v49, %v6202_v55  ;;  %v3197_v51 = vpop.f32.mrb[141].mxu1 }
 0x62b   : > { %3725 = vst [vmem:[%s6078_s13 + $0xd4] sm:$0xff] %v4282_v48  ;;  %v3198_v52 = vadd.f32 %v3197_v51, %v6205_v27  ;;  %v3199_v53 = vpop.f32.mrb[142].mxu1 }
 0x62c   : > { %v3370_v54 = vmax.f32 %v3196_v50, 0.0  ;;  %v3200_v56 = vadd.f32 %v3199_v53, %v6202_v55  ;;  %v3201_v28 = vpop.f32.mrb[143].mxu1 }
 0x62d   : > { %v3371_v57 = vmax.f32 %v3198_v52, 0.0  ;;  %v3202_v58 = vadd.f32 %v3201_v28, %v6205_v27 }
 0x62e   : > { %v3377_v60 = vmax.f32 %v3200_v56, 0.0 }
 0x62f   : > { %v4286_v0 = vpack.c.bf16 %v3371_v57, %v3370_v54  ;;  %v3378_v63 = vmax.f32 %v3202_v58, 0.0 }
 0x631   : > { %3729 = vst [vmem:[%s6078_s13 + $0xf0] sm:$0xff] %v4286_v0  ;;  %v4290_v10 = vpack.c.bf16 %v3378_v63, %v3377_v60  ;;  %v3205_v17 = vpop.f32.mrb[144].mxu1 }
 0x632   : > { %v3206_v11 = vadd.f32 %v3205_v17, %v6202_v55  ;;  %v3207_v12 = vpop.f32.mrb[145].mxu1 }
 0x633   : > { %3733 = vst [vmem:[%s6078_s13 + $0x10c] sm:$0xff] %v4290_v10  ;;  %v3208_v13 = vadd.f32 %v3207_v12, %v6205_v27  ;;  %v3209_v14 = vpop.f32.mrb[146].mxu1 }
 0x634   : > { %v3384_v46 = vmax.f32 %v3206_v11, 0.0  ;;  %v3210_v15 = vadd.f32 %v3209_v14, %v6202_v55  ;;  %v3211_v16 = vpop.f32.mrb[147].mxu1 }
 0x635   : > { %v3385_v4 = vmax.f32 %v3208_v13, 0.0  ;;  %v3212_v7 = vadd.f32 %v3211_v16, %v6205_v27 }
 0x636   : > { %v3391_v3 = vmax.f32 %v3210_v15, 0.0 }
 0x637   : > { %v4294_v19 = vpack.c.bf16 %v3385_v4, %v3384_v46  ;;  %v3392_v23 = vmax.f32 %v3212_v7, 0.0 }
 0x639   : > { %3737 = vst [vmem:[%s6078_s13 + $0x128] sm:$0xff] %v4294_v19  ;;  %v4298_v6 = vpack.c.bf16 %v3392_v23, %v3391_v3  ;;  %v3215_v8 = vpop.f32.mrb[148].mxu1 }
 0x63a   : > { %v3216_v24 = vadd.f32 %v3215_v8, %v6202_v55  ;;  %v3217_v25 = vpop.f32.mrb[149].mxu1 }
 0x63b   : > { %3741 = vst [vmem:[%s6078_s13 + $0x144] sm:$0xff] %v4298_v6  ;;  %v3218_v30 = vadd.f32 %v3217_v25, %v6205_v27  ;;  %v3219_v9 = vpop.f32.mrb[150].mxu1  ;;  %3754 = sbr.rel (!%p6368_p11) target bundleno = 1632 (0x660), region = 96 }
 0x63c   : > { %v3398_v29 = vmax.f32 %v3216_v24, 0.0  ;;  %v3220_v39 = vpop.f32.mrb[151].mxu1 }
 0x63d   : > { %v3399_v47 = vmax.f32 %v3218_v30, 0.0 }
 0x63f   : > { %v4302_v22 = vpack.c.bf16 %v3399_v47, %v3398_v29 }
 0x641   : > { %3745 = vst [vmem:[%s6078_s13 + $0x160] sm:$0xff] %v4302_v22 }
 0x642   : > { %s6382_s30 = smov (!%p3757_p13, %s3756_s30), 13 }
 0x643   : > { %s6250_s9 = smul.u32 448, %s6382_s30 }
 0x645   : > { %s3762_s24 = ssub.s32 5824, %s6250_s9 }
 0x646   : > { %3763 = vsyncadd %s3748_s17, %s3762_s24  ;;  %p4247_p0 = scmp.ne.s32.totalorder %s6250_s9, 0  ;;  %s4615_s21 = smul.u32 5824, %s6369_s20 }
 0x647   : > { %s3769_s18 = sshll.u32 %s6078_s13, 4  ;;  %s6370_s15 = sld [smem:[#allocation32_spill]]  ;;  %s6263_s18 = int_to_ptr.vmem [resolvable:$true] %s3769_s18 }
 0x648   : > { %s5267_s16 = scalar_lea.vmem %s6263_s18, %s6250_s9  ;;  %s5369_s1 = smov [#allocation17]  }
 0x649   : > { %p5268_p12 = scmp.ne.s32.totalorder %s6263_s18, %s5267_s16  ;;  %s5271_s14 = sshll.u32 %s5369_s1, 4  ;;  %s5272_s14 = int_to_ptr.vmem [resolvable:$false] %s5271_s14 }
 0x64a   : > { %s5273_s26 = scalar_lea.vmem %s5272_s14, 11648  ;;  %p5274_p8 = scmp.lt.s32.totalorder %s6263_s18, %s5272_s14 }
 0x64b   : > { %p5269_p7 = pnand %p5268_p12, %p4247_p0  ;;  %p5275_p9 = scmp.lt.s32.totalorder %s5273_s26, %s5267_s16 }
 0x64d   : > { %s6261_s19 = scalar_lea.hbm %s6370_s15, %s4615_s21  ;;  %p5270_p2 = pneg %p5269_p7 }
 0x64e   : > { %p5276_p10 = por %p5275_p9, %p5274_p8 }
 0x650   : > { %p5277_p1 = pnand %p5276_p10, %p5270_p2 }
 0x652   : > { %5280 = shalt.err (!%p5277_p1)
}
 0x653   : > { %s5281_s23 = scalar_lea.hbm %s6261_s19, %s6250_s9  ;;  %s5285_s20 = scalar_lea.hbm %s6370_s15, 11200 }
 0x654   : > { %p5282_p3 = scmp.ne.s32.totalorder %s6261_s19, %s5281_s23  ;;  %p5286_p11 = scmp.lt.u32.totalorder %s6261_s19, %s6370_s15 }
 0x655   : > { %p5287_p13 = scmp.lt.u32.totalorder %s5285_s20, %s5281_s23  ;;  %p5289_p7 = scmp.lt.u32.totalorder %s5281_s23, %s6261_s19 }
 0x656   : > { %p5283_p5 = pnand %p5282_p3, %p4247_p0 }
 0x657   : > { %p5288_p12 = por %p5287_p13, %p5286_p11 }
 0x658   : > { %p5284_p6 = pneg %p5283_p5 }
 0x659   : > { %p5290_p2 = por %p5289_p7, %p5288_p12 }
 0x65b   : > { %p5291_p8 = pnand %p5290_p2, %p5284_p6 }
 0x65d   : > { %5294 = shalt.err (!%p5291_p8)
}
 0x65e   : > { %s5370_s24 = smov 448   ;;  %s5371_s21 = smov 28  }
 0x65f   : > { %3775 = dma.vmem_to_hbm [thread:$0]  (%p4247_p0), %s6263_s18, %s6250_s9, %s6261_s19, %s3748_s17, %s5370_s24, %s5370_s24, %s5371_s21  }
 0x660 PF: > { %s6371_s22 = sld [smem:[#allocation24_spill]]  ;;  %s6372_s25 = sld [smem:[#allocation30_spill]] }
 0x666   : > { %s3784_s16 = sand.u32 1, %s6371_s22   ;;  %p6373_p9 = scmp.ne.s32.totalorder %s6372_s25, 0 }
 0x667   : > { %s3785_s1 = scalar_lea.sflag [#allocation4], %s3784_s16 }
 0x668   : > { %p4595_p10 = pnand %p3928_p4, %p6373_p9 }
 0x66a   : > { %5332 = dma.done.wait (!%p4595_p10), %s3785_s1, 5824  }
 0x66b   : > { %5334 = vsyncadd (!%p4595_p10), %s3785_s1, 4294961472  ;;  %s6374_s12 = sld [smem:[#allocation26_spill]]  ;;  %s6375_s14 = sld [smem:[#allocation27_spill]] }
 0x66c   : > { %s6376_s30 = smov %s5341_s10  ;;  %s6377_s10 = smov %s5345_s11 }
 0x671   : > { %p26_p1 = scmp.ge.s32.totalorder %s6374_s12, 4   ;;  %s6378_s11 = smov %s6375_s14 }
 0x673   :  { %28 = sbr.rel (!%p26_p1) target bundleno = 12 (0xc), region = 133 }
 0x67a   :  { %3790 = vsyncpa [#allocation3], 1 }
 0x67b   :  { %3792 = vsyncpa [#allocation3 + $0x1], 1 }
 0x67c   :  { %3793 = vsyncpa [#allocation6], 1 }
 0x67d   :  { %3794 = vsyncpa [#allocation9], 1 }
 0x67e   :  { %3795 = vsyncpa [#allocation12], 1 }
 0x67f   :  { %3796 = vsyncpa [#allocation15], 1 }
 0x680   :  { %3797 = vsyncpa [#allocation4], 1 }
 0x681   :  { %3799 = vsyncpa [#allocation4 + $0x1], 1 }

</bundles_post_ra>
